<compile_context>
chip_gen: v7x
topology: tpu7x:2x2x1
jax: 0.10.0
libtpu: 0.0.40
codegen_flags: <defaults>
</compile_context>

<pallas_src>
from functools import partial

import numpy as np
import jax
import jax.numpy as jnp
from jax import lax
from jax.experimental import pallas as pl
from jax.experimental.pallas import tpu as pltpu

LANE = 128


def _round_up(x, m):
    return (x + m - 1) // m * m


# ----------------------------------------------------------------------------
# Pass 1: conv1 (1x1x1) + bn1 + relu  ->  spatially padded, border-zeroed y1
# ----------------------------------------------------------------------------
def _conv1_kernel(mask_ref, x_ref, w_ref, b_ref, y_ref, *, depth):
    dp = pl.program_id(1)                       # padded depth index in [0, D+2)
    interior = jnp.logical_and(dp >= 1, dp <= depth)

    @pl.when(interior)
    def _():
        acc = jnp.dot(x_ref[...], w_ref[...], preferred_element_type=jnp.float32)
        y = jnp.maximum(acc + b_ref[...], 0.0)          # bn1 scale folded into w1
        y_ref[...] = (y * mask_ref[...]).astype(y_ref.dtype)

    @pl.when(jnp.logical_not(interior))
    def _():
        y_ref[...] = jnp.zeros_like(y_ref)              # pure depth-padding slice


def conv1_bn_relu(x_flat, mask_m2, w1, b1, *, depth):
    """x_flat: [B, D+2, M2, Cp] bf16 -> y1: [B, D+2, M2, Pp] f32 (zero borders)."""
    B, dp2, M2, Cp = x_flat.shape
    Pp = w1.shape[1]
    return pl.pallas_call(
        partial(_conv1_kernel, depth=depth),
        out_shape=jax.ShapeDtypeStruct((B, dp2, M2, Pp), jnp.float32),
        grid=(B, dp2),
        in_specs=[
            pl.BlockSpec((M2, 1), lambda b, d: (0, 0)),
            pl.BlockSpec((None, None, M2, Cp), lambda b, d: (b, d, 0, 0)),
            pl.BlockSpec((Cp, Pp), lambda b, d: (0, 0)),
            pl.BlockSpec((1, Pp), lambda b, d: (0, 0)),
        ],
        out_specs=pl.BlockSpec((None, None, M2, Pp), lambda b, d: (b, d, 0, 0)),
        compiler_params=pltpu.CompilerParams(
            dimension_semantics=("parallel", "parallel")),
    )(mask_m2, x_flat, w1, b1)


# ----------------------------------------------------------------------------
# Pass 2: conv2 (3x3x3) + bn2 + relu + conv3 (1x1x1) + bn3 + partial SE pool
# ----------------------------------------------------------------------------
def _conv2_conv3_pool_kernel(mask_ref, y1m_ref, y1c_ref, y1p_ref,
                             w2_ref, b2_ref, w3_ref, b3_ref,
                             y3_ref, pool_ref, *, rows, pp, width):
    # SE-pool accumulator: zero it on the first depth slice of each batch.
    @pl.when(pl.program_id(1) == 0)
    def _():
        pool_ref[...] = jnp.zeros_like(pool_ref)

    wp2 = width + 2
    slabs = (y1m_ref, y1c_ref, y1p_ref)          # depth taps d-1, d, d+1 (padded)
    acc2 = jnp.zeros((rows, pp), jnp.float32)
    # conv2 as 27 shifted matmuls accumulated in f32 (MXU operands in bf16).
    for kd in range(3):
        slab = slabs[kd]
        for kh in range(3):
            for kw in range(3):
                off = kh * wp2 + kw
                tap = (kd * 3 + kh) * 3 + kw
                lhs = slab[pl.ds(off, rows), :].astype(jnp.bfloat16)
                rhs = w2_ref[pl.ds(tap * pp, pp), :]
                acc2 = acc2 + jnp.dot(lhs, rhs,
                                      preferred_element_type=jnp.float32)

    y2 = jnp.maximum(acc2 + b2_ref[...], 0.0)            # bn2 scale folded into w2
    y3 = jnp.dot(y2.astype(jnp.bfloat16), w3_ref[...],
                 preferred_element_type=jnp.float32) + b3_ref[...]   # conv3 + bn3
    y3_ref[...] = y3.astype(y3_ref.dtype)
    # Masked partial sum for the SE global average pool (junk columns excluded).
    pool_ref[...] += jnp.sum(y3 * mask_ref[...], axis=0, keepdims=True)


def conv2_conv3_pool(y1, mask_r, w2, b2, w3, b3, *, depth, rows, width):
    """y1: [B,D+2,M2,Pp] f32 -> (y3: [B,D,R,C4p] bf16, pool: [B,1,C4p] f32)."""
    B, _, M2, Pp = y1.shape
    C4p = w3.shape[1]
    return pl.pallas_call(
        partial(_conv2_conv3_pool_kernel, rows=rows, pp=Pp, width=width),
        out_shape=(jax.ShapeDtypeStruct((B, depth, rows, C4p), jnp.bfloat16),
                   jax.ShapeDtypeStruct((B, 1, C4p), jnp.float32)),
        grid=(B, depth),
        in_specs=[
            pl.BlockSpec((rows, 1), lambda b, d: (0, 0)),
            pl.BlockSpec((None, None, M2, Pp), lambda b, d: (b, d, 0, 0)),
            pl.BlockSpec((None, None, M2, Pp), lambda b, d: (b, d + 1, 0, 0)),
            pl.BlockSpec((None, None, M2, Pp), lambda b, d: (b, d + 2, 0, 0)),
            pl.BlockSpec((27 * Pp, Pp), lambda b, d: (0, 0)),
            pl.BlockSpec((1, Pp), lambda b, d: (0, 0)),
            pl.BlockSpec((Pp, C4p), lambda b, d: (0, 0)),
            pl.BlockSpec((1, C4p), lambda b, d: (0, 0)),
        ],
        out_specs=(
            pl.BlockSpec((None, None, rows, C4p), lambda b, d: (b, d, 0, 0)),
            pl.BlockSpec((None, 1, C4p), lambda b, d: (b, 0, 0)),
        ),
        compiler_params=pltpu.CompilerParams(
            dimension_semantics=("parallel", "arbitrary")),
    )(mask_r, y1, y1, y1, w2, b2, w3, b3)


# ----------------------------------------------------------------------------
# Pass 3: SE gate apply + residual add + final relu
# ----------------------------------------------------------------------------
def _se_apply_kernel(y3_ref, res_ref, gate_ref, o_ref):
    out = y3_ref[...].astype(jnp.float32) * gate_ref[...] + res_ref[...]
    o_ref[...] = jnp.maximum(out, 0.0).astype(o_ref.dtype)


def se_residual_relu(y3, res, gate):
    B, D, R, C4p = y3.shape
    return pl.pallas_call(
        _se_apply_kernel,
        out_shape=jax.ShapeDtypeStruct((B, D, R, C4p), jnp.float32),
        grid=(B, D),
        in_specs=[
            pl.BlockSpec((None, None, R, C4p), lambda b, d: (b, d, 0, 0)),
            pl.BlockSpec((None, None, R, C4p), lambda b, d: (b, d, 0, 0)),
            pl.BlockSpec((None, 1, C4p), lambda b, d: (b, 0, 0)),
        ],
        out_specs=pl.BlockSpec((None, None, R, C4p), lambda b, d: (b, d, 0, 0)),
        compiler_params=pltpu.CompilerParams(
            dimension_semantics=("parallel", "parallel")),
    )(y3, res, gate)


# ----------------------------------------------------------------------------
# Parameter folding / padding (BN scale folded into weights, 128-lane padding)
# ----------------------------------------------------------------------------
def fold_bn(gamma, beta, mean, var, eps=1e-5):
    scale = gamma / jnp.sqrt(var + eps)
    return scale, beta - mean * scale


def _pad2(a, r, c):
    return jnp.pad(a, ((0, r - a.shape[0]), (0, c - a.shape[1])))


def prepare_params(p):
    P = p["w1"].shape[0]
    Cin = p["w1"].shape[1]
    C4 = p["w3"].shape[0]
    Pp = _round_up(P, LANE)
    Cp = _round_up(Cin, LANE)
    C4p = _round_up(C4, LANE)

    s1, b1 = fold_bn(p["bn1_g"], p["bn1_b"], p["bn1_m"], p["bn1_v"])
    s2, b2 = fold_bn(p["bn2_g"], p["bn2_b"], p["bn2_m"], p["bn2_v"])
    s3, b3 = fold_bn(p["bn3_g"], p["bn3_b"], p["bn3_m"], p["bn3_v"])

    w1m = p["w1"][:, :, 0, 0, 0].T * s1[None, :]                  # [Cin, P]
    w3m = p["w3"][:, :, 0, 0, 0].T * s3[None, :]                  # [P, C4]
    w2t = (jnp.transpose(p["w2"], (2, 3, 4, 1, 0)) * s2).reshape(27, P, P)
    w2p = jnp.pad(w2t, ((0, 0), (0, Pp - P), (0, Pp - P))).reshape(27 * Pp, Pp)

    return {
        "Pp": Pp, "Cp": Cp, "C4p": C4p, "C4": C4,
        "w1": _pad2(w1m, Cp, Pp).astype(jnp.bfloat16),
        "b1": _pad2(b1.reshape(1, P), 1, Pp).astype(jnp.float32),
        "w2": w2p.astype(jnp.bfloat16),
        "b2": _pad2(b2.reshape(1, P), 1, Pp).astype(jnp.float32),
        "w3": _pad2(w3m, Pp, C4p).astype(jnp.bfloat16),
        "b3": _pad2(b3.reshape(1, C4), 1, C4p).astype(jnp.float32),
        "se_w1": p["se_w1"], "se_w2": p["se_w2"],
    }


# ----------------------------------------------------------------------------
# Forward pass (layout glue in plain JAX, hot path in the 3 kernels above)
# ----------------------------------------------------------------------------
def bottleneck2_forward(x_ncdhw, params):
    """x_ncdhw: [B, C, D, H, W] (PyTorch layout). Returns same layout."""
    B, Cin, D, H, W = x_ncdhw.shape
    q = prepare_params(params)
    Pp, Cp, C4p, C4 = q["Pp"], q["Cp"], q["C4p"], q["C4"]
    assert Cin == C4, "downsample=None requires in_planes == planes * expansion"

    M2 = (H + 2) * (W + 2)
    R = H * (W + 2) - 2            # conv rows per depth slice (2 junk cols / row)
    assert R + 2 * (W + 2) + 2 == M2

    # ---- layout glue: NCDHW -> channels-last, lane pad, spatial pad, flatten ----
    x_cl = jnp.transpose(x_ncdhw, (0, 2, 3, 4, 1))                        # [B,D,H,W,C]
    x_cp = jnp.pad(x_cl, ((0, 0),) * 4 + ((0, Cp - Cin),))
    x_sp = jnp.pad(x_cp, ((0, 0), (1, 1), (1, 1), (1, 1), (0, 0)))
    x_flat = x_sp.reshape(B, D + 2, M2, Cp).astype(jnp.bfloat16)
    # residual arranged in the same flattened row layout as the conv output
    res = jnp.pad(x_cp, ((0, 0), (0, 0), (0, 0), (0, 2), (0, 0)))
    res = res.reshape(B, D, H * (W + 2), Cp)[:, :, :R, :].astype(jnp.float32)

    # compile-time validity masks
    m2 = np.zeros((H + 2, W + 2), np.float32)
    m2[1:H + 1, 1:W + 1] = 1.0
    mask_m2 = jnp.asarray(m2.reshape(M2, 1))
    mask_r = jnp.asarray(((np.arange(R) % (W + 2)) < W)
                         .astype(np.float32).reshape(R, 1))

    # ---- pass 1: conv1 + bn1 + relu (padded layout, zeroed borders) ----
    y1 = conv1_bn_relu(x_flat, mask_m2, q["w1"], q["b1"], depth=D)

    # ---- pass 2: conv2 + bn2 + relu + conv3 + bn3 + SE pool partials ----
    y3, pool = conv2_conv3_pool(y1, mask_r, q["w2"], q["b2"], q["w3"], q["b3"],
                                depth=D, rows=R, width=W)

    # ---- SE excitation FCs (tiny [B,C4] matmuls -> plain-JAX glue) ----
    pooled = pool[:, 0, :C4] / float(D * H * W)
    gate = jax.nn.sigmoid(jax.nn.relu(pooled @ q["se_w1"].T) @ q["se_w2"].T)
    gate = jnp.pad(gate, ((0, 0), (0, C4p - C4))).reshape(B, 1, C4p)

    # ---- pass 3: out = relu(y3 * gate + residual) ----
    out = se_residual_relu(y3, res, gate)

    # ---- layout glue: crop junk columns / padded lanes, back to NCDHW ----
    out = jnp.pad(out, ((0, 0), (0, 0), (0, H * (W + 2) - R), (0, 0)))
    out = out.reshape(B, D, H, W + 2, C4p)[:, :, :, :W, :C4]
    return jnp.transpose(out, (0, 4, 1, 2, 3))


# ----------------------------------------------------------------------------
# Pure-JAX (channels-first, f32) reference for the correctness check
# ----------------------------------------------------------------------------
def reference_forward(x, p, eps=1e-5):
    dn = ("NCDHW", "OIDHW", "NCDHW")

    def bn(v, g, b, m, var):
        sh = (1, -1, 1, 1, 1)
        return (v - m.reshape(sh)) / jnp.sqrt(var.reshape(sh) + eps) * g.reshape(sh) + b.reshape(sh)

    out = lax.conv_general_dilated(x, p["w1"], (1, 1, 1), "VALID", dimension_numbers=dn)
    out = jax.nn.relu(bn(out, p["bn1_g"], p["bn1_b"], p["bn1_m"], p["bn1_v"]))
    out = lax.conv_general_dilated(out, p["w2"], (1, 1, 1), [(1, 1)] * 3, dimension_numbers=dn)
    out = jax.nn.relu(bn(out, p["bn2_g"], p["bn2_b"], p["bn2_m"], p["bn2_v"]))
    out = lax.conv_general_dilated(out, p["w3"], (1, 1, 1), "VALID", dimension_numbers=dn)
    out = bn(out, p["bn3_g"], p["bn3_b"], p["bn3_m"], p["bn3_v"])
    pooled = jnp.mean(out, axis=(2, 3, 4))
    h = jax.nn.relu(pooled @ p["se_w1"].T)
    gate = jax.nn.sigmoid(h @ p["se_w2"].T)
    out = out * gate[:, :, None, None, None]
    return jax.nn.relu(out + x)


# ----------------------------------------------------------------------------
# Deterministic synthetic parameters
# ----------------------------------------------------------------------------
def init_params(key, in_planes, planes, expansion=4, reduction=2):
    C4 = planes * expansion
    Cr = C4 // reduction
    ks = jax.random.split(key, 8)
    f32 = jnp.float32

    w1 = jax.random.normal(ks[0], (planes, in_planes, 1, 1, 1), f32) * 0.1
    w2 = jax.random.normal(ks[1], (planes, planes, 3, 3, 3), f32) * 0.1
    w3 = jax.random.normal(ks[2], (C4, planes, 1, 1, 1), f32) * 0.1
    se_w1 = jax.random.normal(ks[3], (Cr, C4), f32) * 0.1   # nn.Linear(C4, Cr)
    se_w2 = jax.random.normal(ks[4], (C4, Cr), f32) * 0.1   # nn.Linear(Cr, C4)

    def bn_params(k, c):
        ka, kb, kc, kd = jax.random.split(k, 4)
        return (jax.random.uniform(ka, (c,), f32, 0.5, 1.5),   # gamma
                jax.random.normal(kb, (c,), f32) * 0.1,        # beta
                jax.random.normal(kc, (c,), f32) * 0.1,        # running_mean
                jax.random.uniform(kd, (c,), f32, 0.5, 1.5))   # running_var

    bn1 = bn_params(ks[5], planes)
    bn2 = bn_params(ks[6], planes)
    bn3 = bn_params(ks[7], C4)

    return {
        "w1": w1, "w2": w2, "w3": w3, "se_w1": se_w1, "se_w2": se_w2,
        "bn1_g": bn1[0], "bn1_b": bn1[1], "bn1_m": bn1[2], "bn1_v": bn1[3],
        "bn2_g": bn2[0], "bn2_b": bn2[1], "bn2_m": bn2[2], "bn2_v": bn2[3],
        "bn3_g": bn3[0], "bn3_b": bn3[1], "bn3_m": bn3[2], "bn3_v": bn3[3],
    }


# ----------------------------------------------------------------------------
if __name__ == "__main__":
    # downsample=None requires in_planes == planes * expansion for the residual.
    B, planes, expansion = 2, 4, 4
    in_planes = planes * expansion          # 16
    D = H = W = 8

    key = jax.random.PRNGKey(0)
    kx, kp = jax.random.split(key)
    x = jax.random.normal(kx, (B, in_planes, D, H, W), jnp.float32)   # NCDHW
    params = init_params(kp, in_planes, planes, expansion)

    fwd = jax.jit(bottleneck2_forward)
    out = jax.block_until_ready(fwd(x, params))
    ref = jax.block_until_ready(reference_forward(x, params))

    assert out.shape == (B, in_planes, D, H, W), out.shape
    # Kernels feed the MXU bf16 operands (f32 accumulation / f32 epilogues),
    # so compare against the pure-f32 reference with a bf16-appropriate tolerance.
    np.testing.assert_allclose(np.asarray(out), np.asarray(ref), rtol=3e-2, atol=3e-2)
    print("KERNEL_OK")
</pallas_src>

<mosaic_0001>
module attributes {stable_mosaic.version = 11 : i64} {
  func.func @_conv1_kernel(%arg0: i32, %arg1: i32, %arg2: memref<100x1xf32, #tpu.memory_space<vmem>>, %arg3: memref<1x1x100x128xbf16, #tpu.memory_space<vmem>>, %arg4: memref<128x128xbf16, #tpu.memory_space<vmem>>, %arg5: memref<1x128xf32, #tpu.memory_space<vmem>>, %arg6: memref<1x1x100x128xf32, #tpu.memory_space<vmem>>) attributes {dimension_semantics = [#tpu.dimension_semantics<parallel>, #tpu.dimension_semantics<parallel>], iteration_bounds = array<i64: 2, 10>, scalar_prefetch = 0 : i64, scratch_operands = 0 : i64, tpu.core_type = #tpu.core_type<tc>, window_params = [{pipeline_mode = #tpu.pipeline_mode<synchronous>, transform_indices = @transform_0, window_bounds = array<i64: 100, 1>}, {transform_indices = @transform_1, window_bounds = array<i64: 1, 1, 100, 128>}, {pipeline_mode = #tpu.pipeline_mode<synchronous>, transform_indices = @transform_2, window_bounds = array<i64: 128, 128>}, {pipeline_mode = #tpu.pipeline_mode<synchronous>, transform_indices = @transform_3, window_bounds = array<i64: 1, 128>}, {transform_indices = @transform_4, window_bounds = array<i64: 1, 1, 100, 128>}]} {
    %c1_i32 = arith.constant 1 : i32
    %0 = arith.cmpi sge, %arg1, %c1_i32 : i32
    %c8_i32 = arith.constant 8 : i32
    %1 = arith.cmpi sle, %arg1, %c8_i32 : i32
    %2 = arith.andi %0, %1 : i1
    %3 = arith.extui %2 : i1 to i32
    %c0_i32 = arith.constant 0 : i32
    %4 = arith.cmpi ne, %3, %c0_i32 : i32
    scf.if %4 {
      %c0 = arith.constant 0 : index
      %c0_1 = arith.constant 0 : index
      %c0_2 = arith.constant 0 : index
      %c0_3 = arith.constant 0 : index
      %8 = vector.load %arg3[%c0, %c0_1, %c0_2, %c0_3] : memref<1x1x100x128xbf16, #tpu.memory_space<vmem>>, vector<1x1x100x128xbf16>
      %9 = vector.shape_cast %8 : vector<1x1x100x128xbf16> to vector<100x128xbf16>
      %c0_4 = arith.constant 0 : index
      %c0_5 = arith.constant 0 : index
      %10 = vector.load %arg4[%c0_4, %c0_5] : memref<128x128xbf16, #tpu.memory_space<vmem>>, vector<128x128xbf16>
      %cst = arith.constant dense<0.000000e+00> : vector<100x128xf32>
      %11 = tpu.matmul %9, %10, %cst {dimension_numbers = #tpu.dot_dimension_numbers<[1], [0], [0], [1], [0, 0, 1, 1], [], []>} : vector<100x128xbf16>, vector<128x128xbf16>, vector<100x128xf32> -> vector<100x128xf32>
      %c0_6 = arith.constant 0 : index
      %c0_7 = arith.constant 0 : index
      %12 = vector.load %arg5[%c0_6, %c0_7] : memref<1x128xf32, #tpu.memory_space<vmem>>, vector<1x128xf32>
      %13 = vector.broadcast %12 : vector<1x128xf32> to vector<100x128xf32>
      %14 = arith.addf %11, %13 : vector<100x128xf32>
      %cst_8 = arith.constant 0.000000e+00 : f32
      %15 = vector.broadcast %cst_8 : f32 to vector<100x128xf32>
      %16 = arith.maximumf %14, %15 : vector<100x128xf32>
      %c0_9 = arith.constant 0 : index
      %c0_10 = arith.constant 0 : index
      %17 = vector.load %arg2[%c0_9, %c0_10] : memref<100x1xf32, #tpu.memory_space<vmem>>, vector<100x1xf32>
      %18 = vector.broadcast %17 : vector<100x1xf32> to vector<100x128xf32>
      %19 = arith.mulf %16, %18 : vector<100x128xf32>
      %c0_11 = arith.constant 0 : index
      %c0_12 = arith.constant 0 : index
      %c0_13 = arith.constant 0 : index
      %c0_14 = arith.constant 0 : index
      %20 = vector.load %arg6[%c0_11, %c0_12, %c0_13, %c0_14] : memref<1x1x100x128xf32, #tpu.memory_space<vmem>>, vector<1x1x100x128xf32>
      %21 = vector.shape_cast %20 : vector<1x1x100x128xf32> to vector<100x128xf32>
      %22 = vector.shape_cast %19 : vector<100x128xf32> to vector<1x1x100x128xf32>
      tpu.vector_store %arg6[%c0_11, %c0_12, %c0_13, %c0_14], %22 {strides = array<i32>} : memref<1x1x100x128xf32, #tpu.memory_space<vmem>>, vector<1x1x100x128xf32>,
    } else {
    }
    %true = arith.constant true
    %5 = arith.xori %2, %true : i1
    %6 = arith.extui %5 : i1 to i32
    %c0_i32_0 = arith.constant 0 : i32
    %7 = arith.cmpi ne, %6, %c0_i32_0 : i32
    scf.if %7 {
      %cst = arith.constant 0.000000e+00 : f32
      %8 = vector.broadcast %cst : f32 to vector<100x128xf32>
      %c0 = arith.constant 0 : index
      %c0_1 = arith.constant 0 : index
      %c0_2 = arith.constant 0 : index
      %c0_3 = arith.constant 0 : index
      %9 = vector.load %arg6[%c0, %c0_1, %c0_2, %c0_3] : memref<1x1x100x128xf32, #tpu.memory_space<vmem>>, vector<1x1x100x128xf32>
      %10 = vector.shape_cast %9 : vector<1x1x100x128xf32> to vector<100x128xf32>
      %11 = vector.shape_cast %8 : vector<100x128xf32> to vector<1x1x100x128xf32>
      tpu.vector_store %arg6[%c0, %c0_1, %c0_2, %c0_3], %11 {strides = array<i32>} : memref<1x1x100x128xf32, #tpu.memory_space<vmem>>, vector<1x1x100x128xf32>,
    } else {
    }
    return
  }
  func.func @transform_0(%arg0: i32, %arg1: i32) -> (i32, i32) {
    %c0_i32 = arith.constant 0 : i32
    %c0_i32_0 = arith.constant 0 : i32
    %c0_i32_1 = arith.constant 0 : i32
    return %c0_i32, %c0_i32_0 : i32, i32
  }
  func.func @transform_1(%arg0: i32, %arg1: i32) -> (i32, i32, i32, i32) {
    %c0_i32 = arith.constant 0 : i32
    %c0_i32_0 = arith.constant 0 : i32
    %c0_i32_1 = arith.constant 0 : i32
    return %arg0, %arg1, %c0_i32, %c0_i32_0 : i32, i32, i32, i32
  }
  func.func @transform_2(%arg0: i32, %arg1: i32) -> (i32, i32) {
    %c0_i32 = arith.constant 0 : i32
    %c0_i32_0 = arith.constant 0 : i32
    %c0_i32_1 = arith.constant 0 : i32
    return %c0_i32, %c0_i32_0 : i32, i32
  }
  func.func @transform_3(%arg0: i32, %arg1: i32) -> (i32, i32) {
    %c0_i32 = arith.constant 0 : i32
    %c0_i32_0 = arith.constant 0 : i32
    %c0_i32_1 = arith.constant 0 : i32
    return %c0_i32, %c0_i32_0 : i32, i32
  }
  func.func @transform_4(%arg0: i32, %arg1: i32) -> (i32, i32, i32, i32) {
    %c0_i32 = arith.constant 0 : i32
    %c0_i32_0 = arith.constant 0 : i32
    %c0_i32_1 = arith.constant 0 : i32
    return %arg0, %arg1, %c0_i32, %c0_i32_0 : i32, i32, i32, i32
  }
}

module attributes {stable_mosaic.version = 11 : i64} {
  func.func @_conv2_conv3_pool_kernel(%arg0: i32, %arg1: i32, %arg2: memref<78x1xf32, #tpu.memory_space<vmem>>, %arg3: memref<1x1x100x128xf32, #tpu.memory_space<vmem>>, %arg4: memref<1x1x100x128xf32, #tpu.memory_space<vmem>>, %arg5: memref<1x1x100x128xf32, #tpu.memory_space<vmem>>, %arg6: memref<3456x128xbf16, #tpu.memory_space<vmem>>, %arg7: memref<1x128xf32, #tpu.memory_space<vmem>>, %arg8: memref<128x128xbf16, #tpu.memory_space<vmem>>, %arg9: memref<1x128xf32, #tpu.memory_space<vmem>>, %arg10: memref<1x1x78x128xbf16, #tpu.memory_space<vmem>>, %arg11: memref<1x1x128xf32, #tpu.memory_space<vmem>>) attributes {dimension_semantics = [#tpu.dimension_semantics<parallel>, #tpu.dimension_semantics<arbitrary>], iteration_bounds = array<i64: 2, 8>, scalar_prefetch = 0 : i64, scratch_operands = 0 : i64, tpu.core_type = #tpu.core_type<tc>, window_params = [{pipeline_mode = #tpu.pipeline_mode<synchronous>, transform_indices = @transform_0, window_bounds = array<i64: 78, 1>}, {transform_indices = @transform_1, window_bounds = array<i64: 1, 1, 100, 128>}, {transform_indices = @transform_2, window_bounds = array<i64: 1, 1, 100, 128>}, {transform_indices = @transform_3, window_bounds = array<i64: 1, 1, 100, 128>}, {pipeline_mode = #tpu.pipeline_mode<synchronous>, transform_indices = @transform_4, window_bounds = array<i64: 3456, 128>}, {pipeline_mode = #tpu.pipeline_mode<synchronous>, transform_indices = @transform_5, window_bounds = array<i64: 1, 128>}, {pipeline_mode = #tpu.pipeline_mode<synchronous>, transform_indices = @transform_6, window_bounds = array<i64: 128, 128>}, {pipeline_mode = #tpu.pipeline_mode<synchronous>, transform_indices = @transform_7, window_bounds = array<i64: 1, 128>}, {transform_indices = @transform_8, window_bounds = array<i64: 1, 1, 78, 128>}, {transform_indices = @transform_9, window_bounds = array<i64: 1, 1, 128>}]} {
    %c0_i32 = arith.constant 0 : i32
    %0 = arith.cmpi eq, %arg1, %c0_i32 : i32
    %1 = arith.extui %0 : i1 to i32
    %c0_i32_0 = arith.constant 0 : i32
    %2 = arith.cmpi ne, %1, %c0_i32_0 : i32
    scf.if %2 {
      %cst_176 = arith.constant 0.000000e+00 : f32
      %192 = vector.broadcast %cst_176 : f32 to vector<1x128xf32>
      %c0_177 = arith.constant 0 : index
      %c0_178 = arith.constant 0 : index
      %c0_179 = arith.constant 0 : index
      %193 = vector.load %arg11[%c0_177, %c0_178, %c0_179] : memref<1x1x128xf32, #tpu.memory_space<vmem>>, vector<1x1x128xf32>
      %194 = vector.shape_cast %193 : vector<1x1x128xf32> to vector<1x128xf32>
      %195 = vector.shape_cast %192 : vector<1x128xf32> to vector<1x1x128xf32>
      tpu.vector_store %arg11[%c0_177, %c0_178, %c0_179], %195 {strides = array<i32>} : memref<1x1x128xf32, #tpu.memory_space<vmem>>, vector<1x1x128xf32>,
    } else {
    }
    %cst = arith.constant 0.000000e+00 : f32
    %3 = vector.broadcast %cst : f32 to vector<78x128xf32>
    %c0 = arith.constant 0 : index
    %c0_1 = arith.constant 0 : index
    %c0_2 = arith.constant 0 : index
    %c0_3 = arith.constant 0 : index
    %4 = vector.load %arg3[%c0, %c0_1, %c0_2, %c0_3] : memref<1x1x100x128xf32, #tpu.memory_space<vmem>>, vector<1x1x78x128xf32>
    %5 = vector.shape_cast %4 : vector<1x1x78x128xf32> to vector<78x128xf32>
    %6 = arith.truncf %5 : vector<78x128xf32> to vector<78x128xbf16>
    %c0_4 = arith.constant 0 : index
    %c0_5 = arith.constant 0 : index
    %7 = vector.load %arg6[%c0_4, %c0_5] : memref<3456x128xbf16, #tpu.memory_space<vmem>>, vector<128x128xbf16>
    %cst_6 = arith.constant dense<0.000000e+00> : vector<78x128xf32>
    %8 = tpu.matmul %6, %7, %cst_6 {dimension_numbers = #tpu.dot_dimension_numbers<[1], [0], [0], [1], [0, 0, 1, 1], [], []>} : vector<78x128xbf16>, vector<128x128xbf16>, vector<78x128xf32> -> vector<78x128xf32>
    %9 = arith.addf %3, %8 : vector<78x128xf32>
    %c0_7 = arith.constant 0 : index
    %c0_8 = arith.constant 0 : index
    %c1 = arith.constant 1 : index
    %c0_9 = arith.constant 0 : index
    %10 = vector.load %arg3[%c0_7, %c0_8, %c1, %c0_9] : memref<1x1x100x128xf32, #tpu.memory_space<vmem>>, vector<1x1x78x128xf32>
    %11 = vector.shape_cast %10 : vector<1x1x78x128xf32> to vector<78x128xf32>
    %12 = arith.truncf %11 : vector<78x128xf32> to vector<78x128xbf16>
    %c128 = arith.constant 128 : index
    %c0_10 = arith.constant 0 : index
    %13 = vector.load %arg6[%c128, %c0_10] : memref<3456x128xbf16, #tpu.memory_space<vmem>>, vector<128x128xbf16>
    %cst_11 = arith.constant dense<0.000000e+00> : vector<78x128xf32>
    %14 = tpu.matmul %12, %13, %cst_11 {dimension_numbers = #tpu.dot_dimension_numbers<[1], [0], [0], [1], [0, 0, 1, 1], [], []>} : vector<78x128xbf16>, vector<128x128xbf16>, vector<78x128xf32> -> vector<78x128xf32>
    %15 = arith.addf %9, %14 : vector<78x128xf32>
    %c0_12 = arith.constant 0 : index
    %c0_13 = arith.constant 0 : index
    %c2 = arith.constant 2 : index
    %c0_14 = arith.constant 0 : index
    %16 = vector.load %arg3[%c0_12, %c0_13, %c2, %c0_14] : memref<1x1x100x128xf32, #tpu.memory_space<vmem>>, vector<1x1x78x128xf32>
    %17 = vector.shape_cast %16 : vector<1x1x78x128xf32> to vector<78x128xf32>
    %18 = arith.truncf %17 : vector<78x128xf32> to vector<78x128xbf16>
    %c256 = arith.constant 256 : index
    %c0_15 = arith.constant 0 : index
    %19 = vector.load %arg6[%c256, %c0_15] : memref<3456x128xbf16, #tpu.memory_space<vmem>>, vector<128x128xbf16>
    %cst_16 = arith.constant dense<0.000000e+00> : vector<78x128xf32>
    %20 = tpu.matmul %18, %19, %cst_16 {dimension_numbers = #tpu.dot_dimension_numbers<[1], [0], [0], [1], [0, 0, 1, 1], [], []>} : vector<78x128xbf16>, vector<128x128xbf16>, vector<78x128xf32> -> vector<78x128xf32>
    %21 = arith.addf %15, %20 : vector<78x128xf32>
    %c0_17 = arith.constant 0 : index
    %c0_18 = arith.constant 0 : index
    %c10 = arith.constant 10 : index
    %c0_19 = arith.constant 0 : index
    %22 = vector.load %arg3[%c0_17, %c0_18, %c10, %c0_19] : memref<1x1x100x128xf32, #tpu.memory_space<vmem>>, vector<1x1x78x128xf32>
    %23 = vector.shape_cast %22 : vector<1x1x78x128xf32> to vector<78x128xf32>
    %24 = arith.truncf %23 : vector<78x128xf32> to vector<78x128xbf16>
    %c384 = arith.constant 384 : index
    %c0_20 = arith.constant 0 : index
    %25 = vector.load %arg6[%c384, %c0_20] : memref<3456x128xbf16, #tpu.memory_space<vmem>>, vector<128x128xbf16>
    %cst_21 = arith.constant dense<0.000000e+00> : vector<78x128xf32>
    %26 = tpu.matmul %24, %25, %cst_21 {dimension_numbers = #tpu.dot_dimension_numbers<[1], [0], [0], [1], [0, 0, 1, 1], [], []>} : vector<78x128xbf16>, vector<128x128xbf16>, vector<78x128xf32> -> vector<78x128xf32>
    %27 = arith.addf %21, %26 : vector<78x128xf32>
    %c0_22 = arith.constant 0 : index
    %c0_23 = arith.constant 0 : index
    %c11 = arith.constant 11 : index
    %c0_24 = arith.constant 0 : index
    %28 = vector.load %arg3[%c0_22, %c0_23, %c11, %c0_24] : memref<1x1x100x128xf32, #tpu.memory_space<vmem>>, vector<1x1x78x128xf32>
    %29 = vector.shape_cast %28 : vector<1x1x78x128xf32> to vector<78x128xf32>
    %30 = arith.truncf %29 : vector<78x128xf32> to vector<78x128xbf16>
    %c512 = arith.constant 512 : index
    %c0_25 = arith.constant 0 : index
    %31 = vector.load %arg6[%c512, %c0_25] : memref<3456x128xbf16, #tpu.memory_space<vmem>>, vector<128x128xbf16>
    %cst_26 = arith.constant dense<0.000000e+00> : vector<78x128xf32>
    %32 = tpu.matmul %30, %31, %cst_26 {dimension_numbers = #tpu.dot_dimension_numbers<[1], [0], [0], [1], [0, 0, 1, 1], [], []>} : vector<78x128xbf16>, vector<128x128xbf16>, vector<78x128xf32> -> vector<78x128xf32>
    %33 = arith.addf %27, %32 : vector<78x128xf32>
    %c0_27 = arith.constant 0 : index
    %c0_28 = arith.constant 0 : index
    %c12 = arith.constant 12 : index
    %c0_29 = arith.constant 0 : index
    %34 = vector.load %arg3[%c0_27, %c0_28, %c12, %c0_29] : memref<1x1x100x128xf32, #tpu.memory_space<vmem>>, vector<1x1x78x128xf32>
    %35 = vector.shape_cast %34 : vector<1x1x78x128xf32> to vector<78x128xf32>
    %36 = arith.truncf %35 : vector<78x128xf32> to vector<78x128xbf16>
    %c640 = arith.constant 640 : index
    %c0_30 = arith.constant 0 : index
    %37 = vector.load %arg6[%c640, %c0_30] : memref<3456x128xbf16, #tpu.memory_space<vmem>>, vector<128x128xbf16>
    %cst_31 = arith.constant dense<0.000000e+00> : vector<78x128xf32>
    %38 = tpu.matmul %36, %37, %cst_31 {dimension_numbers = #tpu.dot_dimension_numbers<[1], [0], [0], [1], [0, 0, 1, 1], [], []>} : vector<78x128xbf16>, vector<128x128xbf16>, vector<78x128xf32> -> vector<78x128xf32>
    %39 = arith.addf %33, %38 : vector<78x128xf32>
    %c0_32 = arith.constant 0 : index
    %c0_33 = arith.constant 0 : index
    %c20 = arith.constant 20 : index
    %c0_34 = arith.constant 0 : index
    %40 = vector.load %arg3[%c0_32, %c0_33, %c20, %c0_34] : memref<1x1x100x128xf32, #tpu.memory_space<vmem>>, vector<1x1x78x128xf32>
    %41 = vector.shape_cast %40 : vector<1x1x78x128xf32> to vector<78x128xf32>
    %42 = arith.truncf %41 : vector<78x128xf32> to vector<78x128xbf16>
    %c768 = arith.constant 768 : index
    %c0_35 = arith.constant 0 : index
    %43 = vector.load %arg6[%c768, %c0_35] : memref<3456x128xbf16, #tpu.memory_space<vmem>>, vector<128x128xbf16>
    %cst_36 = arith.constant dense<0.000000e+00> : vector<78x128xf32>
    %44 = tpu.matmul %42, %43, %cst_36 {dimension_numbers = #tpu.dot_dimension_numbers<[1], [0], [0], [1], [0, 0, 1, 1], [], []>} : vector<78x128xbf16>, vector<128x128xbf16>, vector<78x128xf32> -> vector<78x128xf32>
    %45 = arith.addf %39, %44 : vector<78x128xf32>
    %c0_37 = arith.constant 0 : index
    %c0_38 = arith.constant 0 : index
    %c21 = arith.constant 21 : index
    %c0_39 = arith.constant 0 : index
    %46 = vector.load %arg3[%c0_37, %c0_38, %c21, %c0_39] : memref<1x1x100x128xf32, #tpu.memory_space<vmem>>, vector<1x1x78x128xf32>
    %47 = vector.shape_cast %46 : vector<1x1x78x128xf32> to vector<78x128xf32>
    %48 = arith.truncf %47 : vector<78x128xf32> to vector<78x128xbf16>
    %c896 = arith.constant 896 : index
    %c0_40 = arith.constant 0 : index
    %49 = vector.load %arg6[%c896, %c0_40] : memref<3456x128xbf16, #tpu.memory_space<vmem>>, vector<128x128xbf16>
    %cst_41 = arith.constant dense<0.000000e+00> : vector<78x128xf32>
    %50 = tpu.matmul %48, %49, %cst_41 {dimension_numbers = #tpu.dot_dimension_numbers<[1], [0], [0], [1], [0, 0, 1, 1], [], []>} : vector<78x128xbf16>, vector<128x128xbf16>, vector<78x128xf32> -> vector<78x128xf32>
    %51 = arith.addf %45, %50 : vector<78x128xf32>
    %c0_42 = arith.constant 0 : index
    %c0_43 = arith.constant 0 : index
    %c22 = arith.constant 22 : index
    %c0_44 = arith.constant 0 : index
    %52 = vector.load %arg3[%c0_42, %c0_43, %c22, %c0_44] : memref<1x1x100x128xf32, #tpu.memory_space<vmem>>, vector<1x1x78x128xf32>
    %53 = vector.shape_cast %52 : vector<1x1x78x128xf32> to vector<78x128xf32>
    %54 = arith.truncf %53 : vector<78x128xf32> to vector<78x128xbf16>
    %c1024 = arith.constant 1024 : index
    %c0_45 = arith.constant 0 : index
    %55 = vector.load %arg6[%c1024, %c0_45] : memref<3456x128xbf16, #tpu.memory_space<vmem>>, vector<128x128xbf16>
    %cst_46 = arith.constant dense<0.000000e+00> : vector<78x128xf32>
    %56 = tpu.matmul %54, %55, %cst_46 {dimension_numbers = #tpu.dot_dimension_numbers<[1], [0], [0], [1], [0, 0, 1, 1], [], []>} : vector<78x128xbf16>, vector<128x128xbf16>, vector<78x128xf32> -> vector<78x128xf32>
    %57 = arith.addf %51, %56 : vector<78x128xf32>
    %c0_47 = arith.constant 0 : index
    %c0_48 = arith.constant 0 : index
    %c0_49 = arith.constant 0 : index
    %c0_50 = arith.constant 0 : index
    %58 = vector.load %arg4[%c0_47, %c0_48, %c0_49, %c0_50] : memref<1x1x100x128xf32, #tpu.memory_space<vmem>>, vector<1x1x78x128xf32>
    %59 = vector.shape_cast %58 : vector<1x1x78x128xf32> to vector<78x128xf32>
    %60 = arith.truncf %59 : vector<78x128xf32> to vector<78x128xbf16>
    %c1152 = arith.constant 1152 : index
    %c0_51 = arith.constant 0 : index
    %61 = vector.load %arg6[%c1152, %c0_51] : memref<3456x128xbf16, #tpu.memory_space<vmem>>, vector<128x128xbf16>
    %cst_52 = arith.constant dense<0.000000e+00> : vector<78x128xf32>
    %62 = tpu.matmul %60, %61, %cst_52 {dimension_numbers = #tpu.dot_dimension_numbers<[1], [0], [0], [1], [0, 0, 1, 1], [], []>} : vector<78x128xbf16>, vector<128x128xbf16>, vector<78x128xf32> -> vector<78x128xf32>
    %63 = arith.addf %57, %62 : vector<78x128xf32>
    %c0_53 = arith.constant 0 : index
    %c0_54 = arith.constant 0 : index
    %c1_55 = arith.constant 1 : index
    %c0_56 = arith.constant 0 : index
    %64 = vector.load %arg4[%c0_53, %c0_54, %c1_55, %c0_56] : memref<1x1x100x128xf32, #tpu.memory_space<vmem>>, vector<1x1x78x128xf32>
    %65 = vector.shape_cast %64 : vector<1x1x78x128xf32> to vector<78x128xf32>
    %66 = arith.truncf %65 : vector<78x128xf32> to vector<78x128xbf16>
    %c1280 = arith.constant 1280 : index
    %c0_57 = arith.constant 0 : index
    %67 = vector.load %arg6[%c1280, %c0_57] : memref<3456x128xbf16, #tpu.memory_space<vmem>>, vector<128x128xbf16>
    %cst_58 = arith.constant dense<0.000000e+00> : vector<78x128xf32>
    %68 = tpu.matmul %66, %67, %cst_58 {dimension_numbers = #tpu.dot_dimension_numbers<[1], [0], [0], [1], [0, 0, 1, 1], [], []>} : vector<78x128xbf16>, vector<128x128xbf16>, vector<78x128xf32> -> vector<78x128xf32>
    %69 = arith.addf %63, %68 : vector<78x128xf32>
    %c0_59 = arith.constant 0 : index
    %c0_60 = arith.constant 0 : index
    %c2_61 = arith.constant 2 : index
    %c0_62 = arith.constant 0 : index
    %70 = vector.load %arg4[%c0_59, %c0_60, %c2_61, %c0_62] : memref<1x1x100x128xf32, #tpu.memory_space<vmem>>, vector<1x1x78x128xf32>
    %71 = vector.shape_cast %70 : vector<1x1x78x128xf32> to vector<78x128xf32>
    %72 = arith.truncf %71 : vector<78x128xf32> to vector<78x128xbf16>
    %c1408 = arith.constant 1408 : index
    %c0_63 = arith.constant 0 : index
    %73 = vector.load %arg6[%c1408, %c0_63] : memref<3456x128xbf16, #tpu.memory_space<vmem>>, vector<128x128xbf16>
    %cst_64 = arith.constant dense<0.000000e+00> : vector<78x128xf32>
    %74 = tpu.matmul %72, %73, %cst_64 {dimension_numbers = #tpu.dot_dimension_numbers<[1], [0], [0], [1], [0, 0, 1, 1], [], []>} : vector<78x128xbf16>, vector<128x128xbf16>, vector<78x128xf32> -> vector<78x128xf32>
    %75 = arith.addf %69, %74 : vector<78x128xf32>
    %c0_65 = arith.constant 0 : index
    %c0_66 = arith.constant 0 : index
    %c10_67 = arith.constant 10 : index
    %c0_68 = arith.constant 0 : index
    %76 = vector.load %arg4[%c0_65, %c0_66, %c10_67, %c0_68] : memref<1x1x100x128xf32, #tpu.memory_space<vmem>>, vector<1x1x78x128xf32>
    %77 = vector.shape_cast %76 : vector<1x1x78x128xf32> to vector<78x128xf32>
    %78 = arith.truncf %77 : vector<78x128xf32> to vector<78x128xbf16>
    %c1536 = arith.constant 1536 : index
    %c0_69 = arith.constant 0 : index
    %79 = vector.load %arg6[%c1536, %c0_69] : memref<3456x128xbf16, #tpu.memory_space<vmem>>, vector<128x128xbf16>
    %cst_70 = arith.constant dense<0.000000e+00> : vector<78x128xf32>
    %80 = tpu.matmul %78, %79, %cst_70 {dimension_numbers = #tpu.dot_dimension_numbers<[1], [0], [0], [1], [0, 0, 1, 1], [], []>} : vector<78x128xbf16>, vector<128x128xbf16>, vector<78x128xf32> -> vector<78x128xf32>
    %81 = arith.addf %75, %80 : vector<78x128xf32>
    %c0_71 = arith.constant 0 : index
    %c0_72 = arith.constant 0 : index
    %c11_73 = arith.constant 11 : index
    %c0_74 = arith.constant 0 : index
    %82 = vector.load %arg4[%c0_71, %c0_72, %c11_73, %c0_74] : memref<1x1x100x128xf32, #tpu.memory_space<vmem>>, vector<1x1x78x128xf32>
    %83 = vector.shape_cast %82 : vector<1x1x78x128xf32> to vector<78x128xf32>
    %84 = arith.truncf %83 : vector<78x128xf32> to vector<78x128xbf16>
    %c1664 = arith.constant 1664 : index
    %c0_75 = arith.constant 0 : index
    %85 = vector.load %arg6[%c1664, %c0_75] : memref<3456x128xbf16, #tpu.memory_space<vmem>>, vector<128x128xbf16>
    %cst_76 = arith.constant dense<0.000000e+00> : vector<78x128xf32>
    %86 = tpu.matmul %84, %85, %cst_76 {dimension_numbers = #tpu.dot_dimension_numbers<[1], [0], [0], [1], [0, 0, 1, 1], [], []>} : vector<78x128xbf16>, vector<128x128xbf16>, vector<78x128xf32> -> vector<78x128xf32>
    %87 = arith.addf %81, %86 : vector<78x128xf32>
    %c0_77 = arith.constant 0 : index
    %c0_78 = arith.constant 0 : index
    %c12_79 = arith.constant 12 : index
    %c0_80 = arith.constant 0 : index
    %88 = vector.load %arg4[%c0_77, %c0_78, %c12_79, %c0_80] : memref<1x1x100x128xf32, #tpu.memory_space<vmem>>, vector<1x1x78x128xf32>
    %89 = vector.shape_cast %88 : vector<1x1x78x128xf32> to vector<78x128xf32>
    %90 = arith.truncf %89 : vector<78x128xf32> to vector<78x128xbf16>
    %c1792 = arith.constant 1792 : index
    %c0_81 = arith.constant 0 : index
    %91 = vector.load %arg6[%c1792, %c0_81] : memref<3456x128xbf16, #tpu.memory_space<vmem>>, vector<128x128xbf16>
    %cst_82 = arith.constant dense<0.000000e+00> : vector<78x128xf32>
    %92 = tpu.matmul %90, %91, %cst_82 {dimension_numbers = #tpu.dot_dimension_numbers<[1], [0], [0], [1], [0, 0, 1, 1], [], []>} : vector<78x128xbf16>, vector<128x128xbf16>, vector<78x128xf32> -> vector<78x128xf32>
    %93 = arith.addf %87, %92 : vector<78x128xf32>
    %c0_83 = arith.constant 0 : index
    %c0_84 = arith.constant 0 : index
    %c20_85 = arith.constant 20 : index
    %c0_86 = arith.constant 0 : index
    %94 = vector.load %arg4[%c0_83, %c0_84, %c20_85, %c0_86] : memref<1x1x100x128xf32, #tpu.memory_space<vmem>>, vector<1x1x78x128xf32>
    %95 = vector.shape_cast %94 : vector<1x1x78x128xf32> to vector<78x128xf32>
    %96 = arith.truncf %95 : vector<78x128xf32> to vector<78x128xbf16>
    %c1920 = arith.constant 1920 : index
    %c0_87 = arith.constant 0 : index
    %97 = vector.load %arg6[%c1920, %c0_87] : memref<3456x128xbf16, #tpu.memory_space<vmem>>, vector<128x128xbf16>
    %cst_88 = arith.constant dense<0.000000e+00> : vector<78x128xf32>
    %98 = tpu.matmul %96, %97, %cst_88 {dimension_numbers = #tpu.dot_dimension_numbers<[1], [0], [0], [1], [0, 0, 1, 1], [], []>} : vector<78x128xbf16>, vector<128x128xbf16>, vector<78x128xf32> -> vector<78x128xf32>
    %99 = arith.addf %93, %98 : vector<78x128xf32>
    %c0_89 = arith.constant 0 : index
    %c0_90 = arith.constant 0 : index
    %c21_91 = arith.constant 21 : index
    %c0_92 = arith.constant 0 : index
    %100 = vector.load %arg4[%c0_89, %c0_90, %c21_91, %c0_92] : memref<1x1x100x128xf32, #tpu.memory_space<vmem>>, vector<1x1x78x128xf32>
    %101 = vector.shape_cast %100 : vector<1x1x78x128xf32> to vector<78x128xf32>
    %102 = arith.truncf %101 : vector<78x128xf32> to vector<78x128xbf16>
    %c2048 = arith.constant 2048 : index
    %c0_93 = arith.constant 0 : index
    %103 = vector.load %arg6[%c2048, %c0_93] : memref<3456x128xbf16, #tpu.memory_space<vmem>>, vector<128x128xbf16>
    %cst_94 = arith.constant dense<0.000000e+00> : vector<78x128xf32>
    %104 = tpu.matmul %102, %103, %cst_94 {dimension_numbers = #tpu.dot_dimension_numbers<[1], [0], [0], [1], [0, 0, 1, 1], [], []>} : vector<78x128xbf16>, vector<128x128xbf16>, vector<78x128xf32> -> vector<78x128xf32>
    %105 = arith.addf %99, %104 : vector<78x128xf32>
    %c0_95 = arith.constant 0 : index
    %c0_96 = arith.constant 0 : index
    %c22_97 = arith.constant 22 : index
    %c0_98 = arith.constant 0 : index
    %106 = vector.load %arg4[%c0_95, %c0_96, %c22_97, %c0_98] : memref<1x1x100x128xf32, #tpu.memory_space<vmem>>, vector<1x1x78x128xf32>
    %107 = vector.shape_cast %106 : vector<1x1x78x128xf32> to vector<78x128xf32>
    %108 = arith.truncf %107 : vector<78x128xf32> to vector<78x128xbf16>
    %c2176 = arith.constant 2176 : index
    %c0_99 = arith.constant 0 : index
    %109 = vector.load %arg6[%c2176, %c0_99] : memref<3456x128xbf16, #tpu.memory_space<vmem>>, vector<128x128xbf16>
    %cst_100 = arith.constant dense<0.000000e+00> : vector<78x128xf32>
    %110 = tpu.matmul %108, %109, %cst_100 {dimension_numbers = #tpu.dot_dimension_numbers<[1], [0], [0], [1], [0, 0, 1, 1], [], []>} : vector<78x128xbf16>, vector<128x128xbf16>, vector<78x128xf32> -> vector<78x128xf32>
    %111 = arith.addf %105, %110 : vector<78x128xf32>
    %c0_101 = arith.constant 0 : index
    %c0_102 = arith.constant 0 : index
    %c0_103 = arith.constant 0 : index
    %c0_104 = arith.constant 0 : index
    %112 = vector.load %arg5[%c0_101, %c0_102, %c0_103, %c0_104] : memref<1x1x100x128xf32, #tpu.memory_space<vmem>>, vector<1x1x78x128xf32>
    %113 = vector.shape_cast %112 : vector<1x1x78x128xf32> to vector<78x128xf32>
    %114 = arith.truncf %113 : vector<78x128xf32> to vector<78x128xbf16>
    %c2304 = arith.constant 2304 : index
    %c0_105 = arith.constant 0 : index
    %115 = vector.load %arg6[%c2304, %c0_105] : memref<3456x128xbf16, #tpu.memory_space<vmem>>, vector<128x128xbf16>
    %cst_106 = arith.constant dense<0.000000e+00> : vector<78x128xf32>
    %116 = tpu.matmul %114, %115, %cst_106 {dimension_numbers = #tpu.dot_dimension_numbers<[1], [0], [0], [1], [0, 0, 1, 1], [], []>} : vector<78x128xbf16>, vector<128x128xbf16>, vector<78x128xf32> -> vector<78x128xf32>
    %117 = arith.addf %111, %116 : vector<78x128xf32>
    %c0_107 = arith.constant 0 : index
    %c0_108 = arith.constant 0 : index
    %c1_109 = arith.constant 1 : index
    %c0_110 = arith.constant 0 : index
    %118 = vector.load %arg5[%c0_107, %c0_108, %c1_109, %c0_110] : memref<1x1x100x128xf32, #tpu.memory_space<vmem>>, vector<1x1x78x128xf32>
    %119 = vector.shape_cast %118 : vector<1x1x78x128xf32> to vector<78x128xf32>
    %120 = arith.truncf %119 : vector<78x128xf32> to vector<78x128xbf16>
    %c2432 = arith.constant 2432 : index
    %c0_111 = arith.constant 0 : index
    %121 = vector.load %arg6[%c2432, %c0_111] : memref<3456x128xbf16, #tpu.memory_space<vmem>>, vector<128x128xbf16>
    %cst_112 = arith.constant dense<0.000000e+00> : vector<78x128xf32>
    %122 = tpu.matmul %120, %121, %cst_112 {dimension_numbers = #tpu.dot_dimension_numbers<[1], [0], [0], [1], [0, 0, 1, 1], [], []>} : vector<78x128xbf16>, vector<128x128xbf16>, vector<78x128xf32> -> vector<78x128xf32>
    %123 = arith.addf %117, %122 : vector<78x128xf32>
    %c0_113 = arith.constant 0 : index
    %c0_114 = arith.constant 0 : index
    %c2_115 = arith.constant 2 : index
    %c0_116 = arith.constant 0 : index
    %124 = vector.load %arg5[%c0_113, %c0_114, %c2_115, %c0_116] : memref<1x1x100x128xf32, #tpu.memory_space<vmem>>, vector<1x1x78x128xf32>
    %125 = vector.shape_cast %124 : vector<1x1x78x128xf32> to vector<78x128xf32>
    %126 = arith.truncf %125 : vector<78x128xf32> to vector<78x128xbf16>
    %c2560 = arith.constant 2560 : index
    %c0_117 = arith.constant 0 : index
    %127 = vector.load %arg6[%c2560, %c0_117] : memref<3456x128xbf16, #tpu.memory_space<vmem>>, vector<128x128xbf16>
    %cst_118 = arith.constant dense<0.000000e+00> : vector<78x128xf32>
    %128 = tpu.matmul %126, %127, %cst_118 {dimension_numbers = #tpu.dot_dimension_numbers<[1], [0], [0], [1], [0, 0, 1, 1], [], []>} : vector<78x128xbf16>, vector<128x128xbf16>, vector<78x128xf32> -> vector<78x128xf32>
    %129 = arith.addf %123, %128 : vector<78x128xf32>
    %c0_119 = arith.constant 0 : index
    %c0_120 = arith.constant 0 : index
    %c10_121 = arith.constant 10 : index
    %c0_122 = arith.constant 0 : index
    %130 = vector.load %arg5[%c0_119, %c0_120, %c10_121, %c0_122] : memref<1x1x100x128xf32, #tpu.memory_space<vmem>>, vector<1x1x78x128xf32>
    %131 = vector.shape_cast %130 : vector<1x1x78x128xf32> to vector<78x128xf32>
    %132 = arith.truncf %131 : vector<78x128xf32> to vector<78x128xbf16>
    %c2688 = arith.constant 2688 : index
    %c0_123 = arith.constant 0 : index
    %133 = vector.load %arg6[%c2688, %c0_123] : memref<3456x128xbf16, #tpu.memory_space<vmem>>, vector<128x128xbf16>
    %cst_124 = arith.constant dense<0.000000e+00> : vector<78x128xf32>
    %134 = tpu.matmul %132, %133, %cst_124 {dimension_numbers = #tpu.dot_dimension_numbers<[1], [0], [0], [1], [0, 0, 1, 1], [], []>} : vector<78x128xbf16>, vector<128x128xbf16>, vector<78x128xf32> -> vector<78x128xf32>
    %135 = arith.addf %129, %134 : vector<78x128xf32>
    %c0_125 = arith.constant 0 : index
    %c0_126 = arith.constant 0 : index
    %c11_127 = arith.constant 11 : index
    %c0_128 = arith.constant 0 : index
    %136 = vector.load %arg5[%c0_125, %c0_126, %c11_127, %c0_128] : memref<1x1x100x128xf32, #tpu.memory_space<vmem>>, vector<1x1x78x128xf32>
    %137 = vector.shape_cast %136 : vector<1x1x78x128xf32> to vector<78x128xf32>
    %138 = arith.truncf %137 : vector<78x128xf32> to vector<78x128xbf16>
    %c2816 = arith.constant 2816 : index
    %c0_129 = arith.constant 0 : index
    %139 = vector.load %arg6[%c2816, %c0_129] : memref<3456x128xbf16, #tpu.memory_space<vmem>>, vector<128x128xbf16>
    %cst_130 = arith.constant dense<0.000000e+00> : vector<78x128xf32>
    %140 = tpu.matmul %138, %139, %cst_130 {dimension_numbers = #tpu.dot_dimension_numbers<[1], [0], [0], [1], [0, 0, 1, 1], [], []>} : vector<78x128xbf16>, vector<128x128xbf16>, vector<78x128xf32> -> vector<78x128xf32>
    %141 = arith.addf %135, %140 : vector<78x128xf32>
    %c0_131 = arith.constant 0 : index
    %c0_132 = arith.constant 0 : index
    %c12_133 = arith.constant 12 : index
    %c0_134 = arith.constant 0 : index
    %142 = vector.load %arg5[%c0_131, %c0_132, %c12_133, %c0_134] : memref<1x1x100x128xf32, #tpu.memory_space<vmem>>, vector<1x1x78x128xf32>
    %143 = vector.shape_cast %142 : vector<1x1x78x128xf32> to vector<78x128xf32>
    %144 = arith.truncf %143 : vector<78x128xf32> to vector<78x128xbf16>
    %c2944 = arith.constant 2944 : index
    %c0_135 = arith.constant 0 : index
    %145 = vector.load %arg6[%c2944, %c0_135] : memref<3456x128xbf16, #tpu.memory_space<vmem>>, vector<128x128xbf16>
    %cst_136 = arith.constant dense<0.000000e+00> : vector<78x128xf32>
    %146 = tpu.matmul %144, %145, %cst_136 {dimension_numbers = #tpu.dot_dimension_numbers<[1], [0], [0], [1], [0, 0, 1, 1], [], []>} : vector<78x128xbf16>, vector<128x128xbf16>, vector<78x128xf32> -> vector<78x128xf32>
    %147 = arith.addf %141, %146 : vector<78x128xf32>
    %c0_137 = arith.constant 0 : index
    %c0_138 = arith.constant 0 : index
    %c20_139 = arith.constant 20 : index
    %c0_140 = arith.constant 0 : index
    %148 = vector.load %arg5[%c0_137, %c0_138, %c20_139, %c0_140] : memref<1x1x100x128xf32, #tpu.memory_space<vmem>>, vector<1x1x78x128xf32>
    %149 = vector.shape_cast %148 : vector<1x1x78x128xf32> to vector<78x128xf32>
    %150 = arith.truncf %149 : vector<78x128xf32> to vector<78x128xbf16>
    %c3072 = arith.constant 3072 : index
    %c0_141 = arith.constant 0 : index
    %151 = vector.load %arg6[%c3072, %c0_141] : memref<3456x128xbf16, #tpu.memory_space<vmem>>, vector<128x128xbf16>
    %cst_142 = arith.constant dense<0.000000e+00> : vector<78x128xf32>
    %152 = tpu.matmul %150, %151, %cst_142 {dimension_numbers = #tpu.dot_dimension_numbers<[1], [0], [0], [1], [0, 0, 1, 1], [], []>} : vector<78x128xbf16>, vector<128x128xbf16>, vector<78x128xf32> -> vector<78x128xf32>
    %153 = arith.addf %147, %152 : vector<78x128xf32>
    %c0_143 = arith.constant 0 : index
    %c0_144 = arith.constant 0 : index
    %c21_145 = arith.constant 21 : index
    %c0_146 = arith.constant 0 : index
    %154 = vector.load %arg5[%c0_143, %c0_144, %c21_145, %c0_146] : memref<1x1x100x128xf32, #tpu.memory_space<vmem>>, vector<1x1x78x128xf32>
    %155 = vector.shape_cast %154 : vector<1x1x78x128xf32> to vector<78x128xf32>
    %156 = arith.truncf %155 : vector<78x128xf32> to vector<78x128xbf16>
    %c3200 = arith.constant 3200 : index
    %c0_147 = arith.constant 0 : index
    %157 = vector.load %arg6[%c3200, %c0_147] : memref<3456x128xbf16, #tpu.memory_space<vmem>>, vector<128x128xbf16>
    %cst_148 = arith.constant dense<0.000000e+00> : vector<78x128xf32>
    %158 = tpu.matmul %156, %157, %cst_148 {dimension_numbers = #tpu.dot_dimension_numbers<[1], [0], [0], [1], [0, 0, 1, 1], [], []>} : vector<78x128xbf16>, vector<128x128xbf16>, vector<78x128xf32> -> vector<78x128xf32>
    %159 = arith.addf %153, %158 : vector<78x128xf32>
    %c0_149 = arith.constant 0 : index
    %c0_150 = arith.constant 0 : index
    %c22_151 = arith.constant 22 : index
    %c0_152 = arith.constant 0 : index
    %160 = vector.load %arg5[%c0_149, %c0_150, %c22_151, %c0_152] : memref<1x1x100x128xf32, #tpu.memory_space<vmem>>, vector<1x1x78x128xf32>
    %161 = vector.shape_cast %160 : vector<1x1x78x128xf32> to vector<78x128xf32>
    %162 = arith.truncf %161 : vector<78x128xf32> to vector<78x128xbf16>
    %c3328 = arith.constant 3328 : index
    %c0_153 = arith.constant 0 : index
    %163 = vector.load %arg6[%c3328, %c0_153] : memref<3456x128xbf16, #tpu.memory_space<vmem>>, vector<128x128xbf16>
    %cst_154 = arith.constant dense<0.000000e+00> : vector<78x128xf32>
    %164 = tpu.matmul %162, %163, %cst_154 {dimension_numbers = #tpu.dot_dimension_numbers<[1], [0], [0], [1], [0, 0, 1, 1], [], []>} : vector<78x128xbf16>, vector<128x128xbf16>, vector<78x128xf32> -> vector<78x128xf32>
    %165 = arith.addf %159, %164 : vector<78x128xf32>
    %c0_155 = arith.constant 0 : index
    %c0_156 = arith.constant 0 : index
    %166 = vector.load %arg7[%c0_155, %c0_156] : memref<1x128xf32, #tpu.memory_space<vmem>>, vector<1x128xf32>
    %167 = vector.broadcast %166 : vector<1x128xf32> to vector<78x128xf32>
    %168 = arith.addf %165, %167 : vector<78x128xf32>
    %cst_157 = arith.constant 0.000000e+00 : f32
    %169 = vector.broadcast %cst_157 : f32 to vector<78x128xf32>
    %170 = arith.maximumf %168, %169 : vector<78x128xf32>
    %171 = arith.truncf %170 : vector<78x128xf32> to vector<78x128xbf16>
    %c0_158 = arith.constant 0 : index
    %c0_159 = arith.constant 0 : index
    %172 = vector.load %arg8[%c0_158, %c0_159] : memref<128x128xbf16, #tpu.memory_space<vmem>>, vector<128x128xbf16>
    %cst_160 = arith.constant dense<0.000000e+00> : vector<78x128xf32>
    %173 = tpu.matmul %171, %172, %cst_160 {dimension_numbers = #tpu.dot_dimension_numbers<[1], [0], [0], [1], [0, 0, 1, 1], [], []>} : vector<78x128xbf16>, vector<128x128xbf16>, vector<78x128xf32> -> vector<78x128xf32>
    %c0_161 = arith.constant 0 : index
    %c0_162 = arith.constant 0 : index
    %174 = vector.load %arg9[%c0_161, %c0_162] : memref<1x128xf32, #tpu.memory_space<vmem>>, vector<1x128xf32>
    %175 = vector.broadcast %174 : vector<1x128xf32> to vector<78x128xf32>
    %176 = arith.addf %173, %175 : vector<78x128xf32>
    %177 = arith.truncf %176 : vector<78x128xf32> to vector<78x128xbf16>
    %c0_163 = arith.constant 0 : index
    %c0_164 = arith.constant 0 : index
    %c0_165 = arith.constant 0 : index
    %c0_166 = arith.constant 0 : index
    %178 = vector.load %arg10[%c0_163, %c0_164, %c0_165, %c0_166] : memref<1x1x78x128xbf16, #tpu.memory_space<vmem>>, vector<1x1x78x128xbf16>
    %179 = vector.shape_cast %178 : vector<1x1x78x128xbf16> to vector<78x128xbf16>
    %180 = vector.shape_cast %177 : vector<78x128xbf16> to vector<1x1x78x128xbf16>
    tpu.vector_store %arg10[%c0_163, %c0_164, %c0_165, %c0_166], %180 {strides = array<i32>} : memref<1x1x78x128xbf16, #tpu.memory_space<vmem>>, vector<1x1x78x128xbf16>,
    %c0_167 = arith.constant 0 : index
    %c0_168 = arith.constant 0 : index
    %c0_169 = arith.constant 0 : index
    %181 = vector.load %arg11[%c0_167, %c0_168, %c0_169] : memref<1x1x128xf32, #tpu.memory_space<vmem>>, vector<1x1x128xf32>
    %182 = vector.shape_cast %181 : vector<1x1x128xf32> to vector<1x128xf32>
    %c0_170 = arith.constant 0 : index
    %c0_171 = arith.constant 0 : index
    %183 = vector.load %arg2[%c0_170, %c0_171] : memref<78x1xf32, #tpu.memory_space<vmem>>, vector<78x1xf32>
    %184 = vector.broadcast %183 : vector<78x1xf32> to vector<78x128xf32>
    %185 = arith.mulf %176, %184 : vector<78x128xf32>
    %cst_172 = arith.constant dense<0.000000e+00> : vector<128xf32>
    %186 = vector.multi_reduction <add>, %185, %cst_172 [0] : vector<78x128xf32> to vector<128xf32>
    %187 = vector.shape_cast %186 : vector<128xf32> to vector<1x128xf32>
    %188 = arith.addf %182, %187 : vector<1x128xf32>
    %c0_173 = arith.constant 0 : index
    %c0_174 = arith.constant 0 : index
    %c0_175 = arith.constant 0 : index
    %189 = vector.load %arg11[%c0_173, %c0_174, %c0_175] : memref<1x1x128xf32, #tpu.memory_space<vmem>>, vector<1x1x128xf32>
    %190 = vector.shape_cast %189 : vector<1x1x128xf32> to vector<1x128xf32>
    %191 = vector.shape_cast %188 : vector<1x128xf32> to vector<1x1x128xf32>
    tpu.vector_store %arg11[%c0_173, %c0_174, %c0_175], %191 {strides = array<i32>} : memref<1x1x128xf32, #tpu.memory_space<vmem>>, vector<1x1x128xf32>,
    return
  }
  func.func @transform_0(%arg0: i32, %arg1: i32) -> (i32, i32) {
    %c0_i32 = arith.constant 0 : i32
    %c0_i32_0 = arith.constant 0 : i32
    %c0_i32_1 = arith.constant 0 : i32
    return %c0_i32, %c0_i32_0 : i32, i32
  }
  func.func @transform_1(%arg0: i32, %arg1: i32) -> (i32, i32, i32, i32) {
    %c0_i32 = arith.constant 0 : i32
    %c0_i32_0 = arith.constant 0 : i32
    %c0_i32_1 = arith.constant 0 : i32
    return %arg0, %arg1, %c0_i32, %c0_i32_0 : i32, i32, i32, i32
  }
  func.func @transform_2(%arg0: i32, %arg1: i32) -> (i32, i32, i32, i32) {
    %c1_i32 = arith.constant 1 : i32
    %0 = arith.addi %arg1, %c1_i32 : i32
    %c0_i32 = arith.constant 0 : i32
    %c0_i32_0 = arith.constant 0 : i32
    %c0_i32_1 = arith.constant 0 : i32
    return %arg0, %0, %c0_i32, %c0_i32_0 : i32, i32, i32, i32
  }
  func.func @transform_3(%arg0: i32, %arg1: i32) -> (i32, i32, i32, i32) {
    %c2_i32 = arith.constant 2 : i32
    %0 = arith.addi %arg1, %c2_i32 : i32
    %c0_i32 = arith.constant 0 : i32
    %c0_i32_0 = arith.constant 0 : i32
    %c0_i32_1 = arith.constant 0 : i32
    return %arg0, %0, %c0_i32, %c0_i32_0 : i32, i32, i32, i32
  }
  func.func @transform_4(%arg0: i32, %arg1: i32) -> (i32, i32) {
    %c0_i32 = arith.constant 0 : i32
    %c0_i32_0 = arith.constant 0 : i32
    %c0_i32_1 = arith.constant 0 : i32
    return %c0_i32, %c0_i32_0 : i32, i32
  }
  func.func @transform_5(%arg0: i32, %arg1: i32) -> (i32, i32) {
    %c0_i32 = arith.constant 0 : i32
    %c0_i32_0 = arith.constant 0 : i32
    %c0_i32_1 = arith.constant 0 : i32
    return %c0_i32, %c0_i32_0 : i32, i32
  }
  func.func @transform_6(%arg0: i32, %arg1: i32) -> (i32, i32) {
    %c0_i32 = arith.constant 0 : i32
    %c0_i32_0 = arith.constant 0 : i32
    %c0_i32_1 = arith.constant 0 : i32
    return %c0_i32, %c0_i32_0 : i32, i32
  }
  func.func @transform_7(%arg0: i32, %arg1: i32) -> (i32, i32) {
    %c0_i32 = arith.constant 0 : i32
    %c0_i32_0 = arith.constant 0 : i32
    %c0_i32_1 = arith.constant 0 : i32
    return %c0_i32, %c0_i32_0 : i32, i32
  }
  func.func @transform_8(%arg0: i32, %arg1: i32) -> (i32, i32, i32, i32) {
    %c0_i32 = arith.constant 0 : i32
    %c0_i32_0 = arith.constant 0 : i32
    %c0_i32_1 = arith.constant 0 : i32
    return %arg0, %arg1, %c0_i32, %c0_i32_0 : i32, i32, i32, i32
  }
  func.func @transform_9(%arg0: i32, %arg1: i32) -> (i32, i32, i32) {
    %c0_i32 = arith.constant 0 : i32
    %c0_i32_0 = arith.constant 0 : i32
    %c0_i32_1 = arith.constant 0 : i32
    return %arg0, %c0_i32, %c0_i32_0 : i32, i32, i32
  }
}

module attributes {stable_mosaic.version = 11 : i64} {
  func.func @_se_apply_kernel(%arg0: i32, %arg1: i32, %arg2: memref<1x1x78x128xbf16, #tpu.memory_space<vmem>>, %arg3: memref<1x1x78x128xf32, #tpu.memory_space<vmem>>, %arg4: memref<1x1x128xf32, #tpu.memory_space<vmem>>, %arg5: memref<1x1x78x128xf32, #tpu.memory_space<vmem>>) attributes {dimension_semantics = [#tpu.dimension_semantics<parallel>, #tpu.dimension_semantics<parallel>], iteration_bounds = array<i64: 2, 8>, scalar_prefetch = 0 : i64, scratch_operands = 0 : i64, tpu.core_type = #tpu.core_type<tc>, window_params = [{transform_indices = @transform_0, window_bounds = array<i64: 1, 1, 78, 128>}, {transform_indices = @transform_1, window_bounds = array<i64: 1, 1, 78, 128>}, {transform_indices = @transform_2, window_bounds = array<i64: 1, 1, 128>}, {transform_indices = @transform_3, window_bounds = array<i64: 1, 1, 78, 128>}]} {
    %c0 = arith.constant 0 : index
    %c0_0 = arith.constant 0 : index
    %c0_1 = arith.constant 0 : index
    %c0_2 = arith.constant 0 : index
    %0 = vector.load %arg2[%c0, %c0_0, %c0_1, %c0_2] : memref<1x1x78x128xbf16, #tpu.memory_space<vmem>>, vector<1x1x78x128xbf16>
    %1 = vector.shape_cast %0 : vector<1x1x78x128xbf16> to vector<78x128xbf16>
    %2 = arith.extf %1 : vector<78x128xbf16> to vector<78x128xf32>
    %c0_3 = arith.constant 0 : index
    %c0_4 = arith.constant 0 : index
    %c0_5 = arith.constant 0 : index
    %3 = vector.load %arg4[%c0_3, %c0_4, %c0_5] : memref<1x1x128xf32, #tpu.memory_space<vmem>>, vector<1x1x128xf32>
    %4 = vector.shape_cast %3 : vector<1x1x128xf32> to vector<1x128xf32>
    %5 = vector.broadcast %4 : vector<1x128xf32> to vector<78x128xf32>
    %6 = arith.mulf %2, %5 : vector<78x128xf32>
    %c0_6 = arith.constant 0 : index
    %c0_7 = arith.constant 0 : index
    %c0_8 = arith.constant 0 : index
    %c0_9 = arith.constant 0 : index
    %7 = vector.load %arg3[%c0_6, %c0_7, %c0_8, %c0_9] : memref<1x1x78x128xf32, #tpu.memory_space<vmem>>, vector<1x1x78x128xf32>
    %8 = vector.shape_cast %7 : vector<1x1x78x128xf32> to vector<78x128xf32>
    %9 = arith.addf %6, %8 : vector<78x128xf32>
    %cst = arith.constant 0.000000e+00 : f32
    %10 = vector.broadcast %cst : f32 to vector<78x128xf32>
    %11 = arith.maximumf %9, %10 : vector<78x128xf32>
    %c0_10 = arith.constant 0 : index
    %c0_11 = arith.constant 0 : index
    %c0_12 = arith.constant 0 : index
    %c0_13 = arith.constant 0 : index
    %12 = vector.load %arg5[%c0_10, %c0_11, %c0_12, %c0_13] : memref<1x1x78x128xf32, #tpu.memory_space<vmem>>, vector<1x1x78x128xf32>
    %13 = vector.shape_cast %12 : vector<1x1x78x128xf32> to vector<78x128xf32>
    %14 = vector.shape_cast %11 : vector<78x128xf32> to vector<1x1x78x128xf32>
    tpu.vector_store %arg5[%c0_10, %c0_11, %c0_12, %c0_13], %14 {strides = array<i32>} : memref<1x1x78x128xf32, #tpu.memory_space<vmem>>, vector<1x1x78x128xf32>,
    return
  }
  func.func @transform_0(%arg0: i32, %arg1: i32) -> (i32, i32, i32, i32) {
    %c0_i32 = arith.constant 0 : i32
    %c0_i32_0 = arith.constant 0 : i32
    %c0_i32_1 = arith.constant 0 : i32
    return %arg0, %arg1, %c0_i32, %c0_i32_0 : i32, i32, i32, i32
  }
  func.func @transform_1(%arg0: i32, %arg1: i32) -> (i32, i32, i32, i32) {
    %c0_i32 = arith.constant 0 : i32
    %c0_i32_0 = arith.constant 0 : i32
    %c0_i32_1 = arith.constant 0 : i32
    return %arg0, %arg1, %c0_i32, %c0_i32_0 : i32, i32, i32, i32
  }
  func.func @transform_2(%arg0: i32, %arg1: i32) -> (i32, i32, i32) {
    %c0_i32 = arith.constant 0 : i32
    %c0_i32_0 = arith.constant 0 : i32
    %c0_i32_1 = arith.constant 0 : i32
    return %arg0, %c0_i32, %c0_i32_0 : i32, i32, i32
  }
  func.func @transform_3(%arg0: i32, %arg1: i32) -> (i32, i32, i32, i32) {
    %c0_i32 = arith.constant 0 : i32
    %c0_i32_0 = arith.constant 0 : i32
    %c0_i32_1 = arith.constant 0 : i32
    return %arg0, %arg1, %c0_i32, %c0_i32_0 : i32, i32, i32, i32
  }
}

</mosaic_0001>

<bundles_post_ra>
// kernel: bottleneck2_forward.3
= control target key start
LH: loop header
LB: loop body
LE: loop exit
PB: predicated region body
PF: predicated region fallthrough
CT: control target
= control target key end

     0   :  { %s913_s15 = smov 0   ;;  %s915_s16 = smov 0   ;;  %s1132_s0 = inlined_call_operand.vmem [shape: f32[100,1], index: 0, kind: input, shape index: {}]   ;;  %s1133_s1 = inlined_call_operand.vmem [shape: bf16[2,10,100,128], index: 1, kind: input, shape index: {}]   ;;  %s1134_s2 = inlined_call_operand.vmem [shape: bf16[128,128], index: 2, kind: input, shape index: {}]   ;;  %s1135_s3 = inlined_call_operand.vmem [shape: f32[1,128], index: 3, kind: input, shape index: {}]   ;;  %s1136_s4 = inlined_call_operand.vmem [shape: f32[2,10,100,128], index: 4, kind: output, shape index: {}]  }
   0x1   :  { %s917_s17 = smov 0   ;;  %s919_s18 = smov 0  }
   0x2   :  { %s921_s19 = smov 0  }
   0x3 LB: > { %s23_s20 = sadd.s32 1, %s874_s17  ;;  %s26_s21 = sadd.s32 1, %s878_s18  ;;  %s882_s19 = sphi %s921_s19, %s14_s19   ;;  %s878_s18 = sphi %s919_s18, %s1141_s18   ;;  %s874_s17 = sphi %s917_s17, %s1140_s17   ;;  %s870_s16 = sphi %s915_s16, %s1139_s16   ;;  %s866_s15 = sphi %s913_s15, %s1138_s15  }
   0x4   : > { %p24_p0 = scmp.ge.s32.totalorder %s23_s20, 10  ;;  %p685_p1 = scmp.ge.s32.totalorder %s882_s19, 1 }
   0x5   : > { %p182_p2 = scmp.lt.s32.totalorder %s882_s19, 21 }
   0x6   : > { %s1143_s20 = smov (%p24_p0, %s23_s20), 0  ;;  %s1145_s21 = smov (!%p24_p0, %s26_s21), %s878_s18 }
   0x7   : > { %p183_p3 = pnand %p685_p1, %p182_p2  ;;  %p28_p4 = scmp.ge.s32.totalorder %s1145_s21, 2 }
   0x8   : > { %p216_p5 = scmp.lt.s32.totalorder (!%p183_p3), %s870_s16, 1  ;;  %p218_p6 = scmp.lt.s32.totalorder (!%p183_p3), %s866_s15, 9 }
   0x9   : > { %s1147_s21 = smov (%p28_p4, %s1145_s21), 0  ;;  %186 = sbr.rel (%p183_p3) target bundleno = 303 (0x12f), region = 36 }
   0xa   : > { %p235_p7 = scmp.ge.s32.totalorder (!%p183_p3), %s866_s15, 1  ;;  %p236_p8 = scmp.le.s32.totalorder (!%p183_p3), %s866_s15, 8 }
   0xc   : > { %p943_p9 = pnand (!%p183_p3), %p236_p8, %p235_p7 }
  0x10   : > { %s1149_s16 = smov (!%p216_p5, %s870_s16), 1  ;;  %s1151_s15 = smov (!%p218_p6, %s866_s15), 9 }
  0x11   : > { %s782_s22 = smul.u32 130, %s1149_s16  ;;  %v829_v0 = vld [vmem:[%s1134_s2] sm:$0xff] (!%p943_p9)   ;;  %v884_v1 = vmov (!%p943_p9), 0.0   ;;  %v830_v2 = vld [vmem:[%s1134_s2 + $0x8] sm:$0xff] (!%p943_p9)   ;;  %vm885_vm0 = vmmov (!%p943_p9), 0   ;;  %v886_v3 = vmov (!%p943_p9), 0  }
  0x12   : > { %s781_s24 = smul.u32 13, %s1151_s15  ;;  %721 = vmatprep.subr.bf16.mxu0 (!%p943_p9), %v884_v1  ;;  %765 = vmatprep.subr.bf16.mxu1 (!%p943_p9), %v884_v1  ;;  %v831_v4 = vld [vmem:[%s1134_s2 + $0x10] sm:$0xff] (!%p943_p9)   ;;  %v832_v5 = vld [vmem:[%s1134_s2 + $0x18] sm:$0xff] (!%p943_p9)   ;;  %v833_v6 = vld [vmem:[%s1134_s2 + $0x20] sm:$0xff] (!%p943_p9)  }
  0x13   : > { %240 = sbr.rel (%p943_p9) target bundleno = 295 (0x127), region = 40  ;;  %722 = vmatpush3.bf16.msra.mxu0 (!%p943_p9), %v829_v0  ;;  %773 = vmatpush3.bf16.msra.mxu1 (!%p943_p9), %v829_v0  ;;  %v466_v7 = vld [vmem:[%s1132_s0] sm:$0xff] (!%p943_p9)  ;;  %v468_v8 = vld [vmem:[%s1132_s0 + $0x10] sm:$0xff] (!%p943_p9)  ;;  %v467_v9 = vld [vmem:[%s1132_s0 + $0x8] sm:$0xff] (!%p943_p9) }
  0x14   : > { %s222_s25 = sadd.s32 %s782_s22, %s781_s24  ;;  %723 = vmatprep.subr.bf16.mxu0 (!%p943_p9), %v884_v1  ;;  %766 = vmatprep.subr.bf16.mxu1 (!%p943_p9), %v884_v1  ;;  %v469_v10 = vld [vmem:[%s1132_s0 + $0x18] sm:$0xff] (!%p943_p9)  ;;  %v834_v11 = vld [vmem:[%s1134_s2 + $0x28] sm:$0xff] (!%p943_p9)   ;;  %v470_v12 = vld [vmem:[%s1132_s0 + $0x20] sm:$0xff] (!%p943_p9) }
  0x15   : > { %s686_s26 = sshll.u32 %s222_s25, 2  ;;  %s687_s27 = sshll.u32 %s222_s25, 3  ;;  %737 = vmatprep.mubr.msk.bf16.mxu0 (!%p943_p9), %vm885_vm0, %v884_v1  ;;  %753 = vmatprep.mubr.msk.bf16.mxu1 (!%p943_p9), %vm885_vm0, %v884_v1  ;;  %v471_v13 = vld [vmem:[%s1132_s0 + $0x28] sm:$0xff] (!%p943_p9)  ;;  %v835_v14 = vld [vmem:[%s1134_s2 + $0x30] sm:$0xff] (!%p943_p9)   ;;  %v473_v16 = vld [vmem:[%s1132_s0 + $0x38] sm:$0xff] (!%p943_p9) }
  0x16   : > { %s950_s30 = scalar_lea.vmem %s1133_s1, %s686_s26  ;;  %s955_s7 = scalar_lea.vmem %s1136_s4, %s687_s27  ;;  %827 = vset.pattern.permute.xlu0 (!%p943_p9), %v886_v3  ;;  %828 = vset.pattern.permute.xlu1 (!%p943_p9), %v886_v3  ;;  %v472_v15 = vld [vmem:[%s1132_s0 + $0x30] sm:$0xff] (!%p943_p9)  ;;  %v836_v17 = vld [vmem:[%s1134_s2 + $0x38] sm:$0xff] (!%p943_p9)   ;;  %v474_v20 = vld [vmem:[%s1132_s0 + $0x40] sm:$0xff] (!%p943_p9) }
  0x17   : > { %724 = vmatpush3.bf16.msra.mxu0 (!%p943_p9), %v830_v2  ;;  %774 = vmatpush3.bf16.msra.mxu1 (!%p943_p9), %v830_v2  ;;  %v837_v18 = vld [vmem:[%s950_s30] sm:$0xff] (!%p943_p9)   ;;  %v475_v21 = vld [vmem:[%s1132_s0 + $0x48] sm:$0xff] (!%p943_p9)  ;;  %v476_v22 = vld [vmem:[%s1132_s0 + $0x50] sm:$0xff] (!%p943_p9) }
  0x18   : > { %725 = vmatprep.subr.bf16.mxu0 (!%p943_p9), %v884_v1  ;;  %767 = vmatprep.subr.bf16.mxu1 (!%p943_p9), %v884_v1  ;;  %v838_v19 = vld [vmem:[%s950_s30 + $0x20] sm:$0xff] (!%p943_p9)   ;;  %v477_v23 = vld [vmem:[%s1132_s0 + $0x58] sm:$0xff] (!%p943_p9)  ;;  %v839_v24 = vld [vmem:[%s950_s30 + $0x8] sm:$0xff] (!%p943_p9)  }
  0x19   : > { %481 = vperm.xlu0 (!%p943_p9), %827, %v466_v7   ;;  %491 = vperm.xlu1 (!%p943_p9), %828, %v468_v8   ;;  %v840_v25 = vld [vmem:[%s950_s30 + $0x28] sm:$0xff] (!%p943_p9)   ;;  %v478_v26 = vld [vmem:[%s1132_s0 + $0x60] sm:$0xf] (!%p943_p9)  ;;  %v841_v27 = vld [vmem:[%s950_s30 + $0x10] sm:$0xff] (!%p943_p9)  }
  0x1a   : > { %v842_v28 = vld [vmem:[%s950_s30 + $0x30] ss:$0 sps:$4 sm:$0x33]   ;;  %v843_v29 = vld [vmem:[%s950_s30 + $0x18] sm:$0xff]   ;;  %v1068_v37 = vld [vmem:[%s1135_s3] ss:$0 sm:$0xff] }
  0x1b   : > { %726 = vmatpush3.bf16.msra.mxu0 %v831_v4  ;;  %775 = vmatpush3.bf16.msra.mxu1 %v831_v4 }
  0x1c   : > { %727 = vmatprep.subr.bf16.mxu0 %v884_v1  ;;  %768 = vmatprep.subr.bf16.mxu1 %v884_v1 }
  0x1d   : > { %486 = vperm.xlu0 %827, %v467_v9   ;;  %496 = vperm.xlu1 %828, %v469_v10  }
  0x1f   : > { %728 = vmatpush3.bf16.msra.mxu0 %v832_v5  ;;  %776 = vmatpush3.bf16.msra.mxu1 %v832_v5 }
  0x20   : > { %729 = vmatprep.subr.bf16.mxu0 %v884_v1  ;;  %769 = vmatprep.subr.bf16.mxu1 %v884_v1 }
  0x21   : > { %501 = vperm.xlu0 %827, %v470_v12   ;;  %506 = vperm.xlu1 %828, %v471_v13  }
  0x23   : > { %730 = vmatpush3.bf16.msra.mxu0 %v833_v6  ;;  %777 = vmatpush3.bf16.msra.mxu1 %v833_v6 }
  0x24   : > { %731 = vmatprep.subr.bf16.mxu0 %v884_v1  ;;  %770 = vmatprep.subr.bf16.mxu1 %v884_v1 }
  0x25   : > { %511 = vperm.xlu0 %827, %v472_v15   ;;  %516 = vperm.xlu1 %828, %v473_v16  }
  0x27   : > { %732 = vmatpush3.bf16.msra.mxu0 %v834_v11  ;;  %778 = vmatpush3.bf16.msra.mxu1 %v834_v11 }
  0x28   : > { %733 = vmatprep.subr.bf16.mxu0 %v884_v1  ;;  %771 = vmatprep.subr.bf16.mxu1 %v884_v1 }
  0x29   : > { %521 = vperm.xlu0 %827, %v474_v20   ;;  %526 = vperm.xlu1 %828, %v475_v21  }
  0x2b   : > { %734 = vmatpush3.bf16.msra.mxu0 %v835_v14  ;;  %779 = vmatpush3.bf16.msra.mxu1 %v835_v14 }
  0x2c   : > { %735 = vmatprep.subr.bf16.mxu0 %v884_v1  ;;  %772 = vmatprep.subr.bf16.mxu1 %v884_v1 }
  0x2d   : > { %531 = vperm.xlu0 %827, %v476_v22   ;;  %536 = vperm.xlu1 %828, %v477_v23  }
  0x2f   : > { %736 = vmatpush3.bf16.msra.mxu0 %v836_v17  ;;  %780 = vmatpush3.bf16.msra.mxu1 %v836_v17 }
  0x31   : > { %541 = vperm.xlu0 %827, %v478_v26  }
  0x32   : > { %738 = vmatmul.mubr.bf16.vlgmr.msra.gmra.mrb[0].mxu0 %v837_v18  ;;  %754 = vmatmul.mubr.bf16.vlgmr.msra.gmra.mrb[0].mxu1 %v838_v19 }
  0x33   : > { %741 = vmatprep.mubr.msk.bf16.mxu0 %vm885_vm0, %v884_v1  ;;  %757 = vmatprep.mubr.msk.bf16.mxu1 %vm885_vm0, %v884_v1 }
  0x3a   : > { %742 = vmatmul.mubr.bf16.gmra.mrb[4].mxu0 %v839_v24  ;;  %758 = vmatmul.mubr.bf16.gmra.mrb[4].mxu1 %v840_v25 }
  0x3b   : > { %745 = vmatprep.mubr.msk.bf16.mxu0 %vm885_vm0, %v884_v1  ;;  %761 = vmatprep.mubr.msk.bf16.mxu1 %vm885_vm0, %v884_v1 }
  0x42   : > { %746 = vmatmul.mubr.bf16.gmra.mrb[8].mxu0 %v841_v27  ;;  %762 = vmatmul.mubr.bf16.gmra.mrb[8].mxu1 %v842_v28 }
  0x43   : > { %749 = vmatprep.mubr.msk.bf16.mxu0 %vm885_vm0, %v884_v1 }
  0x4a   : > { %750 = vmatmul.mubr.bf16.gmra.mrb[12].mxu0 %v843_v29 }
  0x98   : > { %v482_v30 = vpop.permute.xlu0 %481  ;;  %v492_v31 = vpop.permute.xlu1 %491 }
  0x9c   : > { %v487_v32 = vpop.permute.xlu0 %486  ;;  %v497_v33 = vpop.permute.xlu1 %496 }
  0xa0   : > { %v1059_v34 = vpop.permute.xlu0 %501  ;;  %v1061_v35 = vpop.permute.xlu1 %506 }
  0xa4   : > { %v1063_v36 = vpop.permute.xlu0 %511  ;;  %v1070_v38 = vpop.permute.xlu1 %516 }
  0xa8   : > { %v522_v53 = vpop.permute.xlu0 %521  ;;  %v527_v58 = vpop.permute.xlu1 %526 }
  0xac   : > { %v532_v11 = vpop.permute.xlu0 %531  ;;  %v537_v16 = vpop.permute.xlu1 %536 }
 0x105   : > { %v399_v39 = vpop.f32.mrb[0].mxu0  ;;  %v431_v40 = vpop.f32.mrb[0].mxu1 }
 0x106   : > { %v400_v41 = vadd.f32 %v1068_v37, %v399_v39  ;;  %v739_v42 = vpop.f32.mrb[1].mxu0  ;;  %v432_v43 = vadd.f32 %v1068_v37, %v431_v40  ;;  %v755_v44 = vpop.f32.mrb[1].mxu1 }
 0x107   : > { %v402_v45 = vpop.f32.mrb[2].mxu0  ;;  %v434_v46 = vpop.f32.mrb[2].mxu1 }
 0x108   : > { %v453_v47 = vmax.f32 %v400_v41, 0.0  ;;  %v403_v48 = vadd.f32 %v1068_v37, %v402_v45  ;;  %v461_v49 = vmax.f32 %v432_v43, 0.0  ;;  %v740_v50 = vpop.f32.mrb[3].mxu0  ;;  %v435_v51 = vadd.f32 %v1068_v37, %v434_v46  ;;  %v756_v52 = vpop.f32.mrb[3].mxu1 }
 0x10a   : > { %v544_v54 = vmul.f32 %v482_v30, %v453_v47  ;;  %v454_v55 = vmax.f32 %v403_v48, 0.0  ;;  %v552_v56 = vmul.f32 %v522_v53, %v461_v49  ;;  %v462_v57 = vmax.f32 %v435_v51, 0.0 }
 0x10c   : > { %557 = vst [vmem:[%s955_s7] sm:$0xff] %v544_v54  ;;  %v545_v59 = vmul.f32 %v487_v32, %v454_v55  ;;  %565 = vst [vmem:[%s955_s7 + $0x40] sm:$0xff] %v552_v56  ;;  %v553_v60 = vmul.f32 %v527_v58, %v462_v57  ;;  %v542_v32 = vpop.permute.xlu0 %541 }
 0x10d   : > { %v407_v61 = vpop.f32.mrb[4].mxu0  ;;  %v439_v62 = vpop.f32.mrb[4].mxu1 }
 0x10e   : > { %558 = vst [vmem:[%s955_s7 + $0x8] sm:$0xff] %v545_v59  ;;  %566 = vst [vmem:[%s955_s7 + $0x48] sm:$0xff] %v553_v60  ;;  %v408_v63 = vadd.f32 %v1068_v37, %v407_v61  ;;  %v440_v0 = vadd.f32 %v1068_v37, %v439_v62  ;;  %v743_v1 = vpop.f32.mrb[5].mxu0  ;;  %v759_v2 = vpop.f32.mrb[5].mxu1 }
 0x10f   : > { %v410_v3 = vpop.f32.mrb[6].mxu0  ;;  %v442_v4 = vpop.f32.mrb[6].mxu1 }
 0x110   : > { %v455_v5 = vmax.f32 %v408_v63, 0.0  ;;  %v463_v6 = vmax.f32 %v440_v0, 0.0  ;;  %v411_v7 = vadd.f32 %v1068_v37, %v410_v3  ;;  %v443_v8 = vadd.f32 %v1068_v37, %v442_v4  ;;  %v744_v9 = vpop.f32.mrb[7].mxu0  ;;  %v760_v10 = vpop.f32.mrb[7].mxu1 }
 0x112   : > { %v546_v12 = vmul.f32 %v492_v31, %v455_v5  ;;  %v554_v13 = vmul.f32 %v532_v11, %v463_v6  ;;  %v456_v14 = vmax.f32 %v411_v7, 0.0  ;;  %v464_v15 = vmax.f32 %v443_v8, 0.0 }
 0x114   : > { %559 = vst [vmem:[%s955_s7 + $0x10] sm:$0xff] %v546_v12  ;;  %567 = vst [vmem:[%s955_s7 + $0x50] sm:$0xff] %v554_v13  ;;  %v547_v17 = vmul.f32 %v497_v33, %v456_v14  ;;  %v555_v18 = vmul.f32 %v537_v16, %v464_v15 }
 0x115   : > { %v415_v19 = vpop.f32.mrb[8].mxu0  ;;  %v447_v20 = vpop.f32.mrb[8].mxu1 }
 0x116   : > { %560 = vst [vmem:[%s955_s7 + $0x18] sm:$0xff] %v547_v17  ;;  %568 = vst [vmem:[%s955_s7 + $0x58] sm:$0xff] %v555_v18  ;;  %v416_v21 = vadd.f32 %v1068_v37, %v415_v19  ;;  %v448_v22 = vadd.f32 %v1068_v37, %v447_v20  ;;  %v747_v23 = vpop.f32.mrb[9].mxu0  ;;  %v763_v24 = vpop.f32.mrb[9].mxu1 }
 0x117   : > { %v418_v25 = vpop.f32.mrb[10].mxu0  ;;  %v450_v26 = vpop.f32.mrb[10].mxu1 }
 0x118   : > { %v457_v27 = vmax.f32 %v416_v21, 0.0  ;;  %v465_v28 = vmax.f32 %v448_v22, 0.0  ;;  %v419_v29 = vadd.f32 %v1068_v37, %v418_v25  ;;  %v748_v30 = vpop.f32.mrb[11].mxu0  ;;  %v764_v31 = vpop.f32.mrb[11].mxu1 }
 0x11a   : > { %v548_v33 = vmul.f32 %v1059_v34, %v457_v27  ;;  %v556_v39 = vmul.f32 %v542_v32, %v465_v28  ;;  %v458_v40 = vmax.f32 %v419_v29, 0.0 }
 0x11c   : > { %561 = vst [vmem:[%s955_s7 + $0x20] sm:$0xff] %v548_v33  ;;  %569 = vst [vmem:[%s955_s7 + $0x60] sm:$0xf] %v556_v39  ;;  %v549_v41 = vmul.f32 %v1061_v35, %v458_v40 }
 0x11d   : > { %v423_v42 = vpop.f32.mrb[12].mxu0 }
 0x11e   : > { %562 = vst [vmem:[%s955_s7 + $0x28] sm:$0xff] %v549_v41  ;;  %v424_v43 = vadd.f32 %v1068_v37, %v423_v42  ;;  %v751_v44 = vpop.f32.mrb[13].mxu0 }
 0x11f   : > { %v426_v45 = vpop.f32.mrb[14].mxu0 }
 0x120   : > { %v459_v46 = vmax.f32 %v424_v43, 0.0  ;;  %v427_v47 = vadd.f32 %v1068_v37, %v426_v45  ;;  %v752_v48 = vpop.f32.mrb[15].mxu0 }
 0x122   : > { %v550_v34 = vmul.f32 %v1063_v36, %v459_v46  ;;  %v460_v49 = vmax.f32 %v427_v47, 0.0 }
 0x124   : > { %563 = vst [vmem:[%s955_s7 + $0x30] sm:$0xff] %v550_v34  ;;  %v551_v50 = vmul.f32 %v1070_v38, %v460_v49 }
 0x126   : > { %564 = vst [vmem:[%s955_s7 + $0x38] sm:$0xff] %v551_v50 }
 0x127 PF: > { %572 = sbr.rel (!%p943_p9) target bundleno = 303 (0x12f), region = 44  ;;  %v887_v35 = vmov (%p943_p9), 0.0  }
 0x128   : > { %573 = vst [vmem:[%s955_s7] sm:$0xff] (%p943_p9), %v887_v35  ;;  %574 = vst [vmem:[%s955_s7 + $0x8] sm:$0xff] (%p943_p9), %v887_v35 }
 0x129   : > { %575 = vst [vmem:[%s955_s7 + $0x10] sm:$0xff] (%p943_p9), %v887_v35  ;;  %576 = vst [vmem:[%s955_s7 + $0x18] sm:$0xff] (%p943_p9), %v887_v35 }
 0x12a   : > { %577 = vst [vmem:[%s955_s7 + $0x20] sm:$0xff] (%p943_p9), %v887_v35  ;;  %578 = vst [vmem:[%s955_s7 + $0x28] sm:$0xff] (%p943_p9), %v887_v35 }
 0x12b   : > { %579 = vst [vmem:[%s955_s7 + $0x30] sm:$0xff] (%p943_p9), %v887_v35  ;;  %580 = vst [vmem:[%s955_s7 + $0x38] sm:$0xff] (%p943_p9), %v887_v35 }
 0x12c   : > { %581 = vst [vmem:[%s955_s7 + $0x40] sm:$0xff] (%p943_p9), %v887_v35  ;;  %582 = vst [vmem:[%s955_s7 + $0x48] sm:$0xff] (%p943_p9), %v887_v35 }
 0x12d   : > { %583 = vst [vmem:[%s955_s7 + $0x50] sm:$0xff] (%p943_p9), %v887_v35  ;;  %584 = vst [vmem:[%s955_s7 + $0x58] sm:$0xff] (%p943_p9), %v887_v35 }
 0x12e   : > { %585 = vst [vmem:[%s955_s7 + $0x60] sm:$0xf] %v887_v35 }
 0x12f PF: > { %s14_s19 = sadd.s32 1, %s882_s19   ;;  %s1138_s15 = smov %s874_s17 }
 0x130   : > { %p11_p10 = scmp.ge.s32.totalorder %s14_s19, 22   ;;  %s1139_s16 = smov %s878_s18 }
 0x131   : > { %s1140_s17 = smov %s1143_s20  ;;  %s1141_s18 = smov %s1147_s21 }
 0x132   :  { %13 = sbr.rel (!%p11_p10) target bundleno = 3 (0x3), region = 74 }

// kernel: bottleneck2_forward.5
= control target key start
LH: loop header
LB: loop body
LE: loop exit
PB: predicated region body
PF: predicated region fallthrough
CT: control target
= control target key end

     0   :  { %s589_s12 = smov 0   ;;  %s591_s13 = smov 0   ;;  %s686_s0 = inlined_call_operand.vmem [shape: bf16[2,8,78,128], index: 0, kind: input, shape index: {}]   ;;  %s687_s1 = inlined_call_operand.vmem [shape: f32[2,8,78,128], index: 1, kind: input, shape index: {}]   ;;  %s688_s2 = inlined_call_operand.vmem [shape: f32[2,1,128], index: 2, kind: input, shape index: {}]   ;;  %s689_s3 = inlined_call_operand.vmem [shape: f32[2,8,78,128], index: 3, kind: output, shape index: {}]  }
   0x1   :  { %s593_s14 = smov 0   ;;  %s595_s15 = smov 0  }
   0x2   :  { %s597_s16 = smov 0  }
   0x3 LB: > { %s22_s17 = sadd.s32 1, %s559_s14  ;;  %s25_s18 = sadd.s32 1, %s563_s15  ;;  %s567_s16 = sphi %s597_s16, %s13_s16   ;;  %s563_s15 = sphi %s595_s15, %s693_s15   ;;  %s559_s14 = sphi %s593_s14, %s692_s14   ;;  %s555_s13 = sphi %s591_s13, %s691_s13   ;;  %s551_s12 = sphi %s589_s12, %s690_s12  }
   0x4   : > { %p23_p0 = scmp.ge.s32.totalorder %s22_s17, 8  ;;  %p461_p1 = scmp.ge.s32.totalorder %s567_s16, 1 }
   0x5   : > { %p181_p2 = scmp.lt.s32.totalorder %s567_s16, 17 }
   0x6   : > { %s695_s17 = smov (%p23_p0, %s22_s17), 0  ;;  %s697_s18 = smov (!%p23_p0, %s25_s18), %s563_s15 }
   0x7   : > { %p182_p3 = pnand %p461_p1, %p181_p2  ;;  %p27_p4 = scmp.ge.s32.totalorder %s697_s18, 2 }
   0x8   : > { %p225_p5 = scmp.lt.s32.totalorder (!%p182_p3), %s555_s13, 1  ;;  %p227_p6 = scmp.lt.s32.totalorder (!%p182_p3), %s551_s12, 7 }
   0x9   : > { %s699_s18 = smov (%p27_p4, %s697_s18), 0  ;;  %185 = sbr.rel (%p182_p3) target bundleno = 41 (0x29), region = 32 }
  0x10   : > { %s701_s13 = smov (!%p225_p5, %s555_s13), 1  ;;  %s703_s12 = smov (!%p227_p6, %s551_s12), 7 }
  0x11   : > { %s488_s19 = smul.u32 80, %s701_s13  ;;  %s245_s24 = scalar_lea.vmem %s688_s2, %s701_s13 }
  0x12   : > { %s487_s20 = smul.u32 10, %s703_s12  ;;  %v465_v1 = vld [vmem:[%s245_s24] ss:$0 sm:$0xff] }
  0x14   : > { %s619_s21 = sadd.s32 %s488_s19, %s487_s20 }
  0x15   : > { %s462_s25 = sshll.u32 %s619_s21, 2  ;;  %s463_s26 = sshll.u32 %s619_s21, 3 }
  0x16   : > { %s629_s29 = scalar_lea.vmem %s686_s0, %s462_s25  ;;  %s636_s5 = scalar_lea.vmem %s687_s1, %s463_s26 }
  0x17   : > { %v469_v0 = vld [vmem:[%s629_s29] sm:$0xff]   ;;  %v484_v4 = vld [vmem:[%s629_s29 + $0x8] sm:$0xff]   ;;  %v485_v9 = vld [vmem:[%s629_s29 + $0x10] sm:$0xff]   ;;  %s655_s8 = scalar_lea.vmem %s689_s3, %s463_s26 }
  0x18   : > { %v470_v2 = vunpack.c.l.bf16 %v469_v0  ;;  %v471_v3 = vunpack.c.h.bf16 %v469_v0  ;;  %v292_v5 = vld [vmem:[%s636_s5] sm:$0xff]  ;;  %v293_v6 = vld [vmem:[%s636_s5 + $0x8] sm:$0xff]  ;;  %v474_v7 = vunpack.c.l.bf16 %v484_v4  ;;  %v475_v8 = vunpack.c.h.bf16 %v484_v4  ;;  %v294_v12 = vld [vmem:[%s636_s5 + $0x10] sm:$0xff] }
  0x19   : > { %v295_v13 = vld [vmem:[%s636_s5 + $0x18] sm:$0xff]  ;;  %v478_v14 = vunpack.c.l.bf16 %v485_v9  ;;  %v479_v15 = vunpack.c.h.bf16 %v485_v9  ;;  %v296_v19 = vld [vmem:[%s636_s5 + $0x20] sm:$0xff]  ;;  %v297_v20 = vld [vmem:[%s636_s5 + $0x28] sm:$0xff] }
  0x1a   : > { %v282_v10 = vmul.f32 %v470_v2, %v465_v1  ;;  %v283_v11 = vmul.f32 %v471_v3, %v465_v1  ;;  %v486_v16 = vld [vmem:[%s629_s29 + $0x18] sm:$0xff]   ;;  %v284_v17 = vmul.f32 %v474_v7, %v465_v1  ;;  %v285_v18 = vmul.f32 %v475_v8, %v465_v1  ;;  %v298_v27 = vld [vmem:[%s636_s5 + $0x30] sm:$0xff]  ;;  %v263_v33 = vld [vmem:[%s629_s29 + $0x20] sm:$0xf] }
  0x1b   : > { %v482_v21 = vunpack.c.l.bf16 %v486_v16  ;;  %v483_v22 = vunpack.c.h.bf16 %v486_v16  ;;  %v286_v25 = vmul.f32 %v478_v14, %v465_v1  ;;  %v287_v26 = vmul.f32 %v479_v15, %v465_v1  ;;  %v299_v28 = vld [vmem:[%s636_s5 + $0x38] sm:$0xff]  ;;  %v264_v34 = vld [vmem:[%s629_s29 + $0x24] sm:$0x7]  ;;  %v301_v50 = vld [vmem:[%s636_s5 + $0x48] sm:$0x3f] }
  0x1c   : > { %v302_v23 = vadd.f32 %v292_v5, %v282_v10  ;;  %v303_v24 = vadd.f32 %v293_v6, %v283_v11  ;;  %v304_v29 = vadd.f32 %v294_v12, %v284_v17  ;;  %v305_v30 = vadd.f32 %v295_v13, %v285_v18  ;;  %v300_v49 = vld [vmem:[%s636_s5 + $0x40] sm:$0xff] }
  0x1d   : > { %v288_v31 = vmul.f32 %v482_v21, %v465_v1  ;;  %v289_v32 = vmul.f32 %v483_v22, %v465_v1  ;;  %v306_v37 = vadd.f32 %v296_v19, %v286_v25  ;;  %v307_v38 = vadd.f32 %v297_v20, %v287_v26 }
  0x1e   : > { %v312_v35 = vmax.f32 %v302_v23, 0.0  ;;  %v313_v36 = vmax.f32 %v303_v24, 0.0  ;;  %v314_v39 = vmax.f32 %v304_v29, 0.0  ;;  %v315_v40 = vmax.f32 %v305_v30, 0.0 }
  0x1f   : > { %v308_v41 = vadd.f32 %v298_v27, %v288_v31  ;;  %v309_v42 = vadd.f32 %v299_v28, %v289_v32  ;;  %v316_v43 = vmax.f32 %v306_v37, 0.0  ;;  %v317_v44 = vmax.f32 %v307_v38, 0.0 }
  0x20   : > { %322 = vst [vmem:[%s655_s8] sm:$0xff] %v312_v35  ;;  %323 = vst [vmem:[%s655_s8 + $0x8] sm:$0xff] %v313_v36  ;;  %v273_v45 = vunpack.c.l.bf16 %v263_v33  ;;  %v274_v46 = vunpack.c.l.bf16 %v264_v34 }
  0x21   : > { %324 = vst [vmem:[%s655_s8 + $0x10] sm:$0xff] %v314_v39  ;;  %325 = vst [vmem:[%s655_s8 + $0x18] sm:$0xff] %v315_v40  ;;  %v318_v47 = vmax.f32 %v308_v41, 0.0  ;;  %v319_v48 = vmax.f32 %v309_v42, 0.0 }
  0x22   : > { %326 = vst [vmem:[%s655_s8 + $0x20] sm:$0xff] %v316_v43  ;;  %327 = vst [vmem:[%s655_s8 + $0x28] sm:$0xff] %v317_v44  ;;  %v290_v51 = vmul.f32 %v465_v1, %v273_v45  ;;  %v291_v52 = vmul.f32 %v465_v1, %v274_v46 }
  0x23   : > { %328 = vst [vmem:[%s655_s8 + $0x30] sm:$0xff] %v318_v47  ;;  %329 = vst [vmem:[%s655_s8 + $0x38] sm:$0xff] %v319_v48 }
  0x24   : > { %v310_v53 = vadd.f32 %v300_v49, %v290_v51  ;;  %v311_v54 = vadd.f32 %v301_v50, %v291_v52 }
  0x26   : > { %v320_v55 = vmax.f32 %v310_v53, 0.0  ;;  %v321_v56 = vmax.f32 %v311_v54, 0.0 }
  0x28   : > { %330 = vst [vmem:[%s655_s8 + $0x40] sm:$0xff] %v320_v55  ;;  %331 = vst [vmem:[%s655_s8 + $0x48] sm:$0x3f] %v321_v56 }
  0x29 PF: > { %s13_s16 = sadd.s32 1, %s567_s16   ;;  %s690_s12 = smov %s559_s14 }
  0x2a   : > { %p10_p7 = scmp.ge.s32.totalorder %s13_s16, 18   ;;  %s691_s13 = smov %s563_s15 }
  0x2b   : > { %s692_s14 = smov %s695_s17  ;;  %s693_s15 = smov %s699_s18 }
  0x2c   :  { %12 = sbr.rel (!%p10_p7) target bundleno = 3 (0x3), region = 68 }

// kernel: bottleneck2_forward.4
= control target key start
LH: loop header
LB: loop body
LE: loop exit
PB: predicated region body
PF: predicated region fallthrough
CT: control target
= control target key end

     0   :  { %s7321_s30 = smov 0   ;;  %s7323_s10 = smov 0   ;;  %s9269_s0 = inlined_call_operand.vmem [shape: f32[78,1], index: 0, kind: input, shape index: {}]   ;;  %s9270_s1 = inlined_call_operand.vmem [shape: f32[2,10,100,128], index: 1, kind: input, shape index: {}, may-alias: {1,2,3}]   ;;  %s9271_s2 = inlined_call_operand.vmem [shape: f32[2,10,100,128], index: 2, kind: input, shape index: {}, may-alias: {1,2,3}]   ;;  %s9272_s3 = inlined_call_operand.vmem [shape: f32[2,10,100,128], index: 3, kind: input, shape index: {}, may-alias: {1,2,3}]   ;;  %s9273_s4 = inlined_call_operand.vmem [shape: bf16[3456,128], index: 4, kind: input, shape index: {}]   ;;  %s9274_s5 = inlined_call_operand.vmem [shape: f32[1,128], index: 5, kind: input, shape index: {}]   ;;  %s9275_s6 = inlined_call_operand.vmem [shape: bf16[128,128], index: 6, kind: input, shape index: {}]   ;;  %s9276_s7 = inlined_call_operand.vmem [shape: f32[1,128], index: 7, kind: input, shape index: {}]   ;;  %s9277_s8 = inlined_call_operand.vmem [shape: bf16[2,8,78,128], index: 8, kind: output, shape index: {0}]   ;;  %s9278_s9 = inlined_call_operand.vmem [shape: f32[2,1,128], index: 9, kind: output, shape index: {1}]  }
   0x1   :  { %9282 = sst [smem:[#allocation7_spill]] %s9270_s1  ;;  %s7325_s11 = smov 0  }
   0x2   :  { %9283 = sst [smem:[#allocation8_spill]] %s9278_s9  ;;  %s7327_s12 = smov 0  }
   0x3   :  { %s7329_s13 = smov 0  }
   0x4 LB: > { %9284 = sst [smem:[#allocation2_spill]] %s7257_s11  ;;  %s29_s14 = sadd.s32 1, %s7257_s11  ;;  %s7265_s13 = sphi %s7329_s13, %s20_s13   ;;  %s7261_s12 = sphi %s7327_s12, %s9295_s12   ;;  %s7257_s11 = sphi %s7325_s11, %s9294_s11   ;;  %s7253_s10 = sphi %s7323_s10, %s9293_s10   ;;  %s7249_s30 = sphi %s7321_s30, %s9292_s30  }
   0x5   : > { %9285 = sst [smem:[#allocation3_spill]] %s7261_s12  ;;  %s32_s15 = sadd.s32 1, %s7261_s12 }
   0x6   : > { %9286 = sst [smem:[#allocation4_spill]] %s7265_s13  ;;  %p30_p0 = scmp.ge.s32.totalorder %s29_s14, 8 }
   0x7   : > { %p5302_p1 = scmp.ge.s32.totalorder %s7265_s13, 1  ;;  %p350_p2 = scmp.lt.s32.totalorder %s7265_s13, 17 }
   0x8   : > { %s9297_s14 = smov (%p30_p0, %s29_s14), 0  ;;  %s9299_s15 = smov (!%p30_p0, %s32_s15), %s7261_s12 }
   0x9   : > { %9287 = sst [smem:[#allocation5_spill]] %s9297_s14  ;;  %p351_p3 = pnand %p5302_p1, %p350_p2 }
   0xa   : > { %p34_p4 = scmp.ge.s32.totalorder %s9299_s15, 2  ;;  %p417_p5 = scmp.lt.s32.totalorder (!%p351_p3), %s7253_s10, 1 }
   0xb   : > { %354 = sbr.rel (%p351_p3) target bundleno = 1078 (0x436), region = 52  ;;  %p419_p6 = scmp.lt.s32.totalorder (!%p351_p3), %s7249_s30, 9 }
   0xc   : > { %s9301_s15 = smov (%p34_p4, %s9299_s15), 0  ;;  %s426_s16 = sadd.s32 (!%p351_p3), 1, %s7249_s30 }
   0xd   : > { %9288 = sst [smem:[#allocation6_spill]] %s9301_s15  ;;  %s437_s17 = sadd.s32 (!%p351_p3), 2, %s7249_s30 }
   0xe   : > { %p429_p7 = scmp.lt.s32.totalorder (!%p351_p3), %s426_s16, 9  ;;  %p440_p8 = scmp.lt.s32.totalorder (!%p351_p3), %s437_s17, 9 }
   0xf   : > { %s9289_s1 = sld [smem:[#allocation7_spill]] (!%p351_p3)  ;;  %p450_p9 = scmp.lt.s32.totalorder (!%p351_p3), %s7249_s30, 7 }
  0x10   : > { %s9290_s9 = sld [smem:[#allocation8_spill]] (!%p351_p3)  ;;  %p5307_p10 = scmp.ne.s32.totalorder (!%p351_p3), %s7249_s30, 0 }
  0x12   : > { %s9303_s10 = smov (!%p417_p5, %s7253_s10), 1  ;;  %s9305_s16 = smov (!%p429_p7, %s426_s16), 9 }
  0x13   : > { %s420_s18 = scalar_select %p419_p6, %s7249_s30, 9 }
  0x14   : > { %s6952_s19 = smul.u32 130, %s9303_s10  ;;  %s9307_s17 = smov (!%p440_p8, %s437_s17), 9  ;;  %v7267_v0 = vmov (!%p5307_p10), 0.0  }
  0x15   : > { %s6951_s20 = smul.u32 13, %s420_s18 }
  0x16   : > { %s6953_s23 = smul.u32 13, %s9305_s16  ;;  %s7366_s15 = scalar_lea.vmem %s9290_s9, %s9303_s10 }
  0x17   : > { %s423_s21 = sadd.s32 %s6952_s19, %s6951_s20  ;;  %s6954_s11 = smul.u32 13, %s9307_s17  ;;  %465 = vst [vmem:[%s7366_s15] sm:$0x1] (!%p5307_p10), %v7267_v0 }
  0x18   : > { %s5303_s22 = sshll.u32 %s423_s21, 3  ;;  %s433_s27 = sadd.s32 %s6953_s23, %s6952_s19 }
  0x19   : > { %s7360_s26 = scalar_lea.vmem %s9289_s1, %s5303_s22  ;;  %s5304_s14 = sshll.u32 %s433_s27, 3 }
  0x1a   : > { %s7371_s20 = scalar_lea.vmem %s9271_s2, %s5304_s14  ;;  %s6956_s21 = smul.u32 80, %s9303_s10 }
  0x1b   : > { %s451_s16 = scalar_select %p450_p9, %s7249_s30, 7 }
  0x1c   : > { %s444_s22 = sadd.s32 %s6954_s11, %s6952_s19  ;;  %464 = sbr.rel (%p5307_p10) target bundleno = 35 (0x23), region = 56 }
  0x1d   : > { %s6955_s24 = smul.u32 10, %s451_s16  ;;  %s5305_s25 = sshll.u32 %s444_s22, 3 }
  0x1e   : > { %s7377_s28 = scalar_lea.vmem %s9272_s3, %s5305_s25 }
  0x1f   : > { %s454_s1 = sadd.s32 %s6956_s21, %s6955_s24 }
  0x20   : > { %s5306_s29 = sshll.u32 %s454_s1, 2 }
  0x21   : > { %s7382_s12 = scalar_lea.vmem %s9277_s8, %s5306_s29 }
  0x23 PF: > { %v7003_v1 = vld [vmem:[%s9273_s4 + $0x40] sm:$0xff]   ;;  %v7268_v2 = vmov 0.0   ;;  %v7005_v4 = vld [vmem:[%s9273_s4 + $0x48] sm:$0xff]   ;;  %vm7269_vm0 = vmmov 0   ;;  %v7007_v6 = vld [vmem:[%s9273_s4 + $0x50] sm:$0xff]   ;;  %vm5125_vm1 = vcmask 1045504  }
  0x24   : > { %5943 = vmatprep.subr.bf16.mxu0 %v7268_v2  ;;  %5979 = vmatprep.subr.bf16.mxu1 %v7268_v2  ;;  %v7004_v3 = vld [vmem:[%s9273_s4] sm:$0xff]   ;;  %v7006_v5 = vld [vmem:[%s9273_s4 + $0x8] sm:$0xff]   ;;  %v7008_v7 = vld [vmem:[%s9273_s4 + $0x10] sm:$0xff]  }
  0x25   : > { %5944 = vmatpush3.bf16.msra.mxu0 %v7003_v1  ;;  %5959 = vmatprep.mubr.msk.bf16.mxu0 %vm7269_vm0, %v7268_v2  ;;  %v7009_v8 = vld [vmem:[%s9273_s4 + $0x58] sm:$0xff]   ;;  %v7011_v10 = vld [vmem:[%s9273_s4 + $0x60] sm:$0xff]   ;;  %v7013_v12 = vld [vmem:[%s9273_s4 + $0x68] sm:$0xff]  }
  0x26   : > { %5980 = vmatpush3.bf16.msra.mxu1 %v7004_v3  ;;  %5945 = vmatprep.subr.bf16.mxu0 %v7268_v2  ;;  %v7010_v9 = vld [vmem:[%s9273_s4 + $0x18] sm:$0xff]   ;;  %v7012_v11 = vld [vmem:[%s9273_s4 + $0x20] sm:$0xff]   ;;  %v7014_v13 = vld [vmem:[%s9273_s4 + $0x28] sm:$0xff]  }
  0x27   : > { %5981 = vmatprep.subr.bf16.mxu1 %v7268_v2  ;;  %5995 = vmatprep.mubr.msk.bf16.mxu1 %vm7269_vm0, %v7268_v2  ;;  %v7015_v14 = vld [vmem:[%s9273_s4 + $0x70] sm:$0xff]   ;;  %v7017_v16 = vld [vmem:[%s9273_s4 + $0x78] sm:$0xff]   ;;  %v497_v17 = vld [vmem:[%s7360_s26 + $0x1] sm:$0xff] }
  0x28   : > { %v7016_v15 = vld [vmem:[%s9273_s4 + $0x30] sm:$0xff]   ;;  %v7018_v18 = vld [vmem:[%s9273_s4 + $0x38] sm:$0xff]   ;;  %v466_v20 = vld [vmem:[%s7360_s26] sm:$0xff] }
  0x29   : > { %5946 = vmatpush3.bf16.msra.mxu0 %v7005_v4  ;;  %v498_v19 = vld [vmem:[%s7360_s26 + $0x9] sm:$0xff]  ;;  %v7019_v24 = vld [vmem:[%s9273_s4 + $0x80] sm:$0xff]   ;;  %v499_v27 = vld [vmem:[%s7360_s26 + $0x11] sm:$0xff] }
  0x2a   : > { %5982 = vmatpush3.bf16.msra.mxu1 %v7006_v5  ;;  %5947 = vmatprep.subr.bf16.mxu0 %v7268_v2  ;;  %v467_v21 = vld [vmem:[%s7360_s26 + $0x8] sm:$0xff]  ;;  %v507_v22 = vpack.c.bf16 %v498_v19, %v497_v17  ;;  %v7022_v25 = vld [vmem:[%s9273_s4 + $0xc0] sm:$0xff]   ;;  %v468_v29 = vld [vmem:[%s7360_s26 + $0x10] sm:$0xff] }
  0x2b   : > { %5983 = vmatprep.subr.bf16.mxu1 %v7268_v2  ;;  %v476_v23 = vpack.c.bf16 %v467_v21, %v466_v20  ;;  %v7020_v26 = vld [vmem:[%s9273_s4 + $0x88] sm:$0xff]   ;;  %v500_v28 = vld [vmem:[%s7360_s26 + $0x19] sm:$0xff]  ;;  %v7021_v34 = vld [vmem:[%s9273_s4 + $0x90] sm:$0xff]  }
  0x2c   : > { %v469_v30 = vld [vmem:[%s7360_s26 + $0x18] sm:$0xff]  ;;  %v7023_v31 = vld [vmem:[%s9273_s4 + $0xc8] sm:$0xff]   ;;  %v508_v32 = vpack.c.bf16 %v500_v28, %v499_v27  ;;  %v7025_v36 = vld [vmem:[%s9273_s4 + $0xd0] sm:$0xff]  }
  0x2d   : > { %5948 = vmatpush3.bf16.msra.mxu0 %v7007_v6  ;;  %v477_v33 = vpack.c.bf16 %v469_v30, %v468_v29  ;;  %v501_v35 = vld [vmem:[%s7360_s26 + $0x21] sm:$0xff]  ;;  %v502_v37 = vld [vmem:[%s7360_s26 + $0x29] sm:$0xff]  ;;  %v7024_v39 = vld [vmem:[%s9273_s4 + $0x98] sm:$0xff]  }
  0x2e   : > { %5984 = vmatpush3.bf16.msra.mxu1 %v7008_v7  ;;  %5949 = vmatprep.subr.bf16.mxu0 %v7268_v2  ;;  %v470_v38 = vld [vmem:[%s7360_s26 + $0x20] sm:$0xff]  ;;  %v471_v40 = vld [vmem:[%s7360_s26 + $0x28] sm:$0xff]  ;;  %v7027_v41 = vld [vmem:[%s9273_s4 + $0xd8] sm:$0xff]   ;;  %v509_v42 = vpack.c.bf16 %v502_v37, %v501_v35 }
  0x2f   : > { %5985 = vmatprep.subr.bf16.mxu1 %v7268_v2  ;;  %v478_v43 = vpack.c.bf16 %v471_v40, %v470_v38  ;;  %v7026_v44 = vld [vmem:[%s9273_s4 + $0xa0] sm:$0xff]   ;;  %v503_v45 = vld [vmem:[%s7360_s26 + $0x31] sm:$0xff]  ;;  %v7028_v49 = vld [vmem:[%s9273_s4 + $0xa8] sm:$0xff]  }
  0x30   : > { %v7029_v46 = vld [vmem:[%s9273_s4 + $0xe0] sm:$0xff]   ;;  %v472_v48 = vld [vmem:[%s7360_s26 + $0x30] sm:$0xff]  ;;  %v473_v50 = vld [vmem:[%s7360_s26 + $0x38] sm:$0xff] }
  0x31   : > { %5950 = vmatpush3.bf16.msra.mxu0 %v7009_v8  ;;  %v504_v47 = vld [vmem:[%s7360_s26 + $0x39] sm:$0xff]  ;;  %v7031_v51 = vld [vmem:[%s9273_s4 + $0xe8] sm:$0xff]   ;;  %v479_v53 = vpack.c.bf16 %v473_v50, %v472_v48  ;;  %v7030_v54 = vld [vmem:[%s9273_s4 + $0xb0] sm:$0xff]  }
  0x32   : > { %5986 = vmatpush3.bf16.msra.mxu1 %v7010_v9  ;;  %5951 = vmatprep.subr.bf16.mxu0 %v7268_v2  ;;  %v510_v52 = vpack.c.bf16 %v504_v47, %v503_v45  ;;  %v505_v55 = vld [vmem:[%s7360_s26 + $0x41] sm:$0xff]  ;;  %v7032_v56 = vld [vmem:[%s9273_s4 + $0xf0] sm:$0xff]   ;;  %v506_v57 = vld [vmem:[%s7360_s26 + $0x49] sm:$0x3f] }
  0x33   : > { %5987 = vmatprep.subr.bf16.mxu1 %v7268_v2  ;;  %v474_v58 = vld [vmem:[%s7360_s26 + $0x40] sm:$0xff]  ;;  %v475_v59 = vld [vmem:[%s7360_s26 + $0x48] sm:$0x3f]  ;;  %v7033_v60 = vld [vmem:[%s9273_s4 + $0xb8] sm:$0xff]   ;;  %v511_v62 = vpack.c.bf16 %v506_v57, %v505_v55 }
  0x34   : > { %v7034_v61 = vld [vmem:[%s9273_s4 + $0xf8] sm:$0xff]   ;;  %v480_v63 = vpack.c.bf16 %v475_v59, %v474_v58  ;;  %v770_v0 = vld [vmem:[%s7360_s26 + $0x2] sm:$0xff]  ;;  %v771_v1 = vld [vmem:[%s7360_s26 + $0xa] sm:$0xff] }
  0x35   : > { %5952 = vmatpush3.bf16.msra.mxu0 %v7011_v10  ;;  %v933_v3 = vld [vmem:[%s7360_s26 + $0x12] sm:$0xff]  ;;  %v780_v4 = vpack.c.bf16 %v771_v1, %v770_v0  ;;  %v7035_v5 = vld [vmem:[%s9273_s4 + $0x100] sm:$0xff]   ;;  %v7036_v8 = vld [vmem:[%s9273_s4 + $0x108] sm:$0xff]  }
  0x36   : > { %5988 = vmatpush3.bf16.msra.mxu1 %v7012_v11  ;;  %5953 = vmatprep.subr.bf16.mxu0 %v7268_v2  ;;  %v942_v6 = vpack.c.bf16 %v933_v3, %v771_v1  ;;  %v7038_v7 = vld [vmem:[%s9273_s4 + $0x140] sm:$0xff]   ;;  %v7039_v11 = vld [vmem:[%s9273_s4 + $0x148] sm:$0xff]   ;;  %v7040_v17 = vld [vmem:[%s9273_s4 + $0x118] sm:$0xff]  }
  0x37   : > { %5989 = vmatprep.subr.bf16.mxu1 %v7268_v2  ;;  %v773_v9 = vld [vmem:[%s7360_s26 + $0x1a] sm:$0xff]  ;;  %v935_v10 = vld [vmem:[%s7360_s26 + $0x22] sm:$0xff]  ;;  %v7046_v30 = vld [vmem:[%s9273_s4 + $0x130] sm:$0xff]  }
  0x38   : > { %v7043_v19 = vld [vmem:[%s9273_s4 + $0x158] sm:$0xff]   ;;  %v7047_v27 = vld [vmem:[%s9273_s4 + $0x168] sm:$0xff]   ;;  %v7053_v55 = vld [vmem:[%s9273_s4 + $0x190] sm:$0xff]  }
  0x39   : > { %5954 = vmatpush3.bf16.msra.mxu0 %v7013_v12  ;;  %v781_v12 = vpack.c.bf16 %v773_v9, %v933_v3  ;;  %v7049_v35 = vld [vmem:[%s9273_s4 + $0x138] sm:$0xff]   ;;  %v7052_v47 = vld [vmem:[%s9273_s4 + $0x188] sm:$0xff]   ;;  %v7057_v58 = vld [vmem:[%s9273_s4 + $0x1d0] sm:$0xff]  }
  0x3a   : > { %5990 = vmatpush3.bf16.msra.mxu1 %v7014_v13  ;;  %5955 = vmatprep.subr.bf16.mxu0 %v7268_v2  ;;  %v943_v13 = vpack.c.bf16 %v935_v10, %v773_v9  ;;  %v1095_v40 = vld [vmem:[%s7360_s26 + $0x13] sm:$0xff]  ;;  %v1096_v48 = vld [vmem:[%s7360_s26 + $0x1b] sm:$0xff]  ;;  %v7063_v9 = vld [vmem:[%s9273_s4 + $0x1e8] sm:$0xff]  }
  0x3b   : > { %5991 = vmatprep.subr.bf16.mxu1 %v7268_v2  ;;  %v7678_v50 = vld [vmem:[%s7360_s26 + $0x1c] sm:$0xff]  ;;  %v1099_v57 = vld [vmem:[%s7360_s26 + $0x33] sm:$0xff] }
  0x3c   : > { %v7056_v59 = vld [vmem:[%s9273_s4 + $0x198] sm:$0xff]   ;;  %v7058_v1 = vld [vmem:[%s9273_s4 + $0x1a0] sm:$0xff]  }
  0x3d   : > { %5956 = vmatpush3.bf16.msra.mxu0 %v7015_v14  ;;  %v7037_v14 = vld [vmem:[%s9273_s4 + $0x110] sm:$0xff]   ;;  %v1100_v3 = vld [vmem:[%s7360_s26 + $0x3b] sm:$0xff] }
  0x3e   : > { %5992 = vmatpush3.bf16.msra.mxu1 %v7016_v15  ;;  %5957 = vmatprep.subr.bf16.mxu0 %v7268_v2  ;;  %v7041_v15 = vld [vmem:[%s9273_s4 + $0x150] sm:$0xff]  }
  0x3f   : > { %5993 = vmatprep.subr.bf16.mxu1 %v7268_v2 }
  0x41   : > { %5958 = vmatpush3.bf16.msra.mxu0 %v7017_v16  ;;  %v775_v16 = vld [vmem:[%s7360_s26 + $0x2a] sm:$0xff] }
  0x42   : > { %5994 = vmatpush3.bf16.msra.mxu1 %v7018_v18  ;;  %6015 = vmatprep.subr.bf16.mxu0 %v7268_v2  ;;  %v937_v18 = vld [vmem:[%s7360_s26 + $0x32] sm:$0xff]  ;;  %v782_v20 = vpack.c.bf16 %v775_v16, %v935_v10 }
  0x43   : > { %6051 = vmatprep.subr.bf16.mxu1 %v7268_v2  ;;  %v944_v21 = vpack.c.bf16 %v937_v18, %v775_v16  ;;  %v7761_v16 = vld [vmem:[%s7360_s26 + $0x4c] sm:$0xff] }
  0x44   : > { %5960 = vmatmul.mubr.bf16.vlgmr.msra.gmra.mrb[0].mxu0 %v507_v22  ;;  %v7042_v22 = vld [vmem:[%s9273_s4 + $0x120] sm:$0xff]  }
  0x45   : > { %5996 = vmatmul.mubr.bf16.vlgmr.msra.gmra.mrb[0].mxu1 %v476_v23  ;;  %6016 = vmatpush3.bf16.msra.mxu0 %v7019_v24  ;;  %v7045_v23 = vld [vmem:[%s9273_s4 + $0x160] sm:$0xff]  }
  0x46   : > { %6017 = vmatprep.subr.bf16.mxu0 %v7268_v2  ;;  %5963 = vmatprep.mubr.msk.bf16.mxu0 %vm7269_vm0, %v7268_v2  ;;  %v777_v24 = vld [vmem:[%s7360_s26 + $0x3a] sm:$0xff] }
  0x47   : > { %5999 = vmatprep.mubr.msk.bf16.mxu1 %vm7269_vm0, %v7268_v2  ;;  %6052 = vmatpush3.bf16.msra.mxu1 %v7022_v25  ;;  %v7044_v25 = vld [vmem:[%s9273_s4 + $0x128] sm:$0xff]   ;;  %v783_v28 = vpack.c.bf16 %v777_v24, %v937_v18  ;;  %v7065_v18 = vld [vmem:[%s9273_s4 + $0x1b8] sm:$0xff]  }
  0x48   : > { %6053 = vmatprep.subr.bf16.mxu1 %v7268_v2 }
  0x49   : > { %6018 = vmatpush3.bf16.msra.mxu0 %v7020_v26  ;;  %v939_v26 = vld [vmem:[%s7360_s26 + $0x42] sm:$0xff] }
  0x4a   : > { %6019 = vmatprep.subr.bf16.mxu0 %v7268_v2  ;;  %v945_v29 = vpack.c.bf16 %v939_v26, %v777_v24  ;;  %v7067_v24 = vld [vmem:[%s9273_s4 + $0x200] sm:$0xff]  }
  0x4b   : > { %6054 = vmatpush3.bf16.msra.mxu1 %v7023_v31  ;;  %v7048_v31 = vld [vmem:[%s9273_s4 + $0x170] sm:$0xff]  }
  0x4c   : > { %5964 = vmatmul.mubr.bf16.gmra.mrb[4].mxu0 %v508_v32  ;;  %6055 = vmatprep.subr.bf16.mxu1 %v7268_v2  ;;  %v779_v32 = vld [vmem:[%s7360_s26 + $0x4a] sm:$0x3f] }
  0x4d   : > { %6000 = vmatmul.mubr.bf16.gmra.mrb[4].mxu1 %v477_v33  ;;  %6020 = vmatpush3.bf16.msra.mxu0 %v7021_v34  ;;  %v940_v33 = vld [vmem:[%s7360_s26 + $0x4a] sm:$0xff]  ;;  %v941_v34 = vld [vmem:[%s7360_s26 + $0x52] sm:$0x3f]  ;;  %v784_v37 = vpack.c.bf16 %v779_v32, %v939_v26 }
  0x4e   : > { %5967 = vmatprep.mubr.msk.bf16.mxu0 %vm7269_vm0, %v7268_v2  ;;  %6003 = vmatprep.mubr.msk.bf16.mxu1 %vm7269_vm0, %v7268_v2  ;;  %v946_v38 = vpack.c.bf16 %v941_v34, %v940_v33  ;;  %v7069_v33 = vld [vmem:[%s9273_s4 + $0x210] sm:$0xff]  }
  0x4f   : > { %6021 = vmatprep.subr.bf16.mxu0 %v7268_v2  ;;  %6056 = vmatpush3.bf16.msra.mxu1 %v7025_v36  ;;  %v7050_v36 = vld [vmem:[%s9273_s4 + $0x178] sm:$0xff]  }
  0x50   : > { %6057 = vmatprep.subr.bf16.mxu1 %v7268_v2 }
  0x51   : > { %6022 = vmatpush3.bf16.msra.mxu0 %v7024_v39  ;;  %v1094_v39 = vld [vmem:[%s7360_s26 + $0xb] sm:$0xff] }
  0x52   : > { %6023 = vmatprep.subr.bf16.mxu0 %v7268_v2 }
  0x53   : > { %6058 = vmatpush3.bf16.msra.mxu1 %v7027_v41  ;;  %v1256_v41 = vld [vmem:[%s7360_s26 + $0xc] sm:$0xff] }
  0x54   : > { %5968 = vmatmul.mubr.bf16.gmra.mrb[8].mxu0 %v509_v42  ;;  %6059 = vmatprep.subr.bf16.mxu1 %v7268_v2  ;;  %v7660_v42 = vld [vmem:[%s7360_s26 + $0x14] sm:$0xff] }
  0x55   : > { %6004 = vmatmul.mubr.bf16.gmra.mrb[8].mxu1 %v478_v43  ;;  %6024 = vmatpush3.bf16.msra.mxu0 %v7026_v44  ;;  %v1104_v43 = vpack.c.bf16 %v1095_v40, %v1094_v39  ;;  %v7051_v44 = vld [vmem:[%s9273_s4 + $0x180] sm:$0xff]   ;;  %v1266_v45 = vpack.c.bf16 %v7660_v42, %v1256_v41  ;;  %v7075_v39 = vld [vmem:[%s9273_s4 + $0x258] sm:$0xff]  }
  0x56   : > { %5971 = vmatprep.mubr.msk.bf16.mxu0 %vm7269_vm0, %v7268_v2  ;;  %6007 = vmatprep.mubr.msk.bf16.mxu1 %vm7269_vm0, %v7268_v2  ;;  %v7074_v40 = vld [vmem:[%s9273_s4 + $0x220] sm:$0xff]  }
  0x57   : > { %6025 = vmatprep.subr.bf16.mxu0 %v7268_v2  ;;  %6060 = vmatpush3.bf16.msra.mxu1 %v7029_v46  ;;  %v7054_v46 = vld [vmem:[%s9273_s4 + $0x1c0] sm:$0xff]  }
  0x58   : > { %6061 = vmatprep.subr.bf16.mxu1 %v7268_v2 }
  0x59   : > { %6026 = vmatpush3.bf16.msra.mxu0 %v7028_v49  ;;  %v1097_v49 = vld [vmem:[%s7360_s26 + $0x23] sm:$0xff] }
  0x5a   : > { %6027 = vmatprep.subr.bf16.mxu0 %v7268_v2 }
  0x5b   : > { %6062 = vmatpush3.bf16.msra.mxu1 %v7031_v51  ;;  %v7681_v51 = vld [vmem:[%s7360_s26 + $0x24] sm:$0xff] }
  0x5c   : > { %5972 = vmatmul.mubr.bf16.gmra.mrb[12].mxu0 %v510_v52  ;;  %6063 = vmatprep.subr.bf16.mxu1 %v7268_v2  ;;  %v7055_v52 = vld [vmem:[%s9273_s4 + $0x1c8] sm:$0xff]  }
  0x5d   : > { %6008 = vmatmul.mubr.bf16.gmra.mrb[12].mxu1 %v479_v53  ;;  %5975 = vmatprep.mubr.msk.bf16.mxu0 %vm7269_vm0, %v7268_v2  ;;  %v1105_v53 = vpack.c.bf16 %v1097_v49, %v1096_v48 }
  0x5e   : > { %6011 = vmatprep.mubr.msk.bf16.mxu1 %vm7269_vm0, %v7268_v2  ;;  %6028 = vmatpush3.bf16.msra.mxu0 %v7030_v54  ;;  %v1267_v54 = vpack.c.bf16 %v7681_v51, %v7678_v50 }
  0x5f   : > { %6029 = vmatprep.subr.bf16.mxu0 %v7268_v2  ;;  %6064 = vmatpush3.bf16.msra.mxu1 %v7032_v56  ;;  %v1098_v56 = vld [vmem:[%s7360_s26 + $0x2b] sm:$0xff] }
  0x60   : > { %6065 = vmatprep.subr.bf16.mxu1 %v7268_v2 }
  0x62   : > { %6030 = vmatpush3.bf16.msra.mxu0 %v7033_v60  ;;  %v7705_v60 = vld [vmem:[%s7360_s26 + $0x2c] sm:$0xff] }
  0x63   : > { %6066 = vmatpush3.bf16.msra.mxu1 %v7034_v61  ;;  %6087 = vmatprep.subr.bf16.mxu0 %v7268_v2  ;;  %v7711_v61 = vld [vmem:[%s7360_s26 + $0x34] sm:$0xff]  ;;  %v1429_v32 = vpack.c.bf16 %v7705_v60, %v7681_v51 }
  0x64   : > { %5976 = vmatmul.mubr.bf16.gmra.mrb[16].mxu0 %v511_v62  ;;  %6123 = vmatprep.subr.bf16.mxu1 %v7268_v2  ;;  %v7059_v62 = vld [vmem:[%s9273_s4 + $0x1d8] sm:$0xff]   ;;  %v1268_v0 = vpack.c.bf16 %v7711_v61, %v7705_v60  ;;  %v7080_v51 = vld [vmem:[%s9273_s4 + $0x270] sm:$0xff]  }
  0x65   : > { %6012 = vmatmul.mubr.bf16.gmra.mrb[16].mxu1 %v480_v63  ;;  %6031 = vmatprep.mubr.msk.bf16.mxu0 %vm7269_vm0, %v7268_v2  ;;  %v1106_v63 = vpack.c.bf16 %v1099_v57, %v1098_v56  ;;  %v7081_v56 = vld [vmem:[%s9273_s4 + $0x238] sm:$0xff]  }
  0x66   : > { %6067 = vmatprep.mubr.msk.bf16.mxu1 %vm7269_vm0, %v7268_v2  ;;  %v7082_v57 = vld [vmem:[%s9273_s4 + $0x278] sm:$0xff]  }
  0x67   : > { %v1742_v60 = vld [vmem:[%s7360_s26 + $0x16] sm:$0xff] }
  0x6c   : > { %6032 = vmatmul.mubr.bf16.vlgmr.msra.gmra.mrb[20].mxu0 %v780_v4  ;;  %v7061_v4 = vld [vmem:[%s9273_s4 + $0x1e0] sm:$0xff]  }
  0x6d   : > { %6088 = vmatpush3.bf16.msra.mxu0 %v7035_v5  ;;  %6068 = vmatmul.mubr.bf16.vlgmr.msra.gmra.mrb[20].mxu1 %v942_v6  ;;  %v1101_v5 = vld [vmem:[%s7360_s26 + $0x43] sm:$0xff] }
  0x6e   : > { %6089 = vmatprep.subr.bf16.mxu0 %v7268_v2  ;;  %6035 = vmatprep.mubr.msk.bf16.mxu0 %vm7269_vm0, %v7268_v2  ;;  %v7060_v6 = vld [vmem:[%s9273_s4 + $0x1a8] sm:$0xff]   ;;  %v1107_v10 = vpack.c.bf16 %v1101_v5, %v1100_v3 }
  0x6f   : > { %6071 = vmatprep.mubr.msk.bf16.mxu1 %vm7269_vm0, %v7268_v2  ;;  %6124 = vmatpush3.bf16.msra.mxu1 %v7038_v7  ;;  %v7739_v7 = vld [vmem:[%s7360_s26 + $0x3c] sm:$0xff]  ;;  %v7084_v5 = vld [vmem:[%s9273_s4 + $0x288] sm:$0xff]  }
  0x70   : > { %6125 = vmatprep.subr.bf16.mxu1 %v7268_v2  ;;  %v1430_v41 = vpack.c.bf16 %v7739_v7, %v7711_v61  ;;  %v1743_v61 = vld [vmem:[%s7360_s26 + $0x1e] sm:$0xff] }
  0x71   : > { %6090 = vmatpush3.bf16.msra.mxu0 %v7036_v8  ;;  %v7742_v8 = vld [vmem:[%s7360_s26 + $0x44] sm:$0xff] }
  0x72   : > { %6091 = vmatprep.subr.bf16.mxu0 %v7268_v2  ;;  %v1431_v48 = vpack.c.bf16 %v7761_v16, %v7742_v8 }
  0x73   : > { %6126 = vmatpush3.bf16.msra.mxu1 %v7039_v11  ;;  %v1269_v11 = vpack.c.bf16 %v7742_v8, %v7739_v7  ;;  %v1745_v7 = vld [vmem:[%s7360_s26 + $0x2e] sm:$0xff] }
  0x74   : > { %6036 = vmatmul.mubr.bf16.gmra.mrb[24].mxu0 %v781_v12  ;;  %6127 = vmatprep.subr.bf16.mxu1 %v7268_v2  ;;  %v7062_v12 = vld [vmem:[%s9273_s4 + $0x1b0] sm:$0xff]  }
  0x75   : > { %6072 = vmatmul.mubr.bf16.gmra.mrb[24].mxu1 %v943_v13  ;;  %6092 = vmatpush3.bf16.msra.mxu0 %v7037_v14  ;;  %v7064_v13 = vld [vmem:[%s9273_s4 + $0x1f0] sm:$0xff]  }
  0x76   : > { %6039 = vmatprep.mubr.msk.bf16.mxu0 %vm7269_vm0, %v7268_v2  ;;  %6093 = vmatprep.subr.bf16.mxu0 %v7268_v2  ;;  %v1102_v14 = vld [vmem:[%s7360_s26 + $0x4b] sm:$0xff] }
  0x77   : > { %6075 = vmatprep.mubr.msk.bf16.mxu1 %vm7269_vm0, %v7268_v2  ;;  %6128 = vmatpush3.bf16.msra.mxu1 %v7041_v15  ;;  %v1103_v15 = vld [vmem:[%s7360_s26 + $0x53] sm:$0x3f] }
  0x78   : > { %6129 = vmatprep.subr.bf16.mxu1 %v7268_v2  ;;  %v1906_v8 = vld [vmem:[%s7371_s20 + $0x10] sm:$0xff] }
  0x79   : > { %6094 = vmatpush3.bf16.msra.mxu0 %v7040_v17  ;;  %v1265_v17 = vld [vmem:[%s7360_s26 + $0x54] sm:$0x3f] }
  0x7a   : > { %6095 = vmatprep.subr.bf16.mxu0 %v7268_v2 }
  0x7b   : > { %6130 = vmatpush3.bf16.msra.mxu1 %v7043_v19  ;;  %v7066_v19 = vld [vmem:[%s9273_s4 + $0x1f8] sm:$0xff]  }
  0x7c   : > { %6040 = vmatmul.mubr.bf16.gmra.mrb[28].mxu0 %v782_v20  ;;  %6131 = vmatprep.subr.bf16.mxu1 %v7268_v2  ;;  %v1108_v20 = vpack.c.bf16 %v1103_v15, %v1102_v14  ;;  %v7089_v14 = vld [vmem:[%s9273_s4 + $0x2d0] sm:$0xff]  }
  0x7d   : > { %6076 = vmatmul.mubr.bf16.gmra.mrb[28].mxu1 %v944_v21  ;;  %6096 = vmatpush3.bf16.msra.mxu0 %v7042_v22  ;;  %v1270_v21 = vpack.c.bf16 %v1265_v17, %v7761_v16  ;;  %v1580_v22 = vld [vmem:[%s7360_s26 + $0x15] sm:$0xff]  ;;  %v1747_v16 = vld [vmem:[%s7360_s26 + $0x3e] sm:$0xff] }
  0x7e   : > { %6043 = vmatprep.mubr.msk.bf16.mxu0 %vm7269_vm0, %v7268_v2  ;;  %6079 = vmatprep.mubr.msk.bf16.mxu1 %vm7269_vm0, %v7268_v2  ;;  %v1746_v15 = vld [vmem:[%s7360_s26 + $0x36] sm:$0xff] }
  0x7f   : > { %6097 = vmatprep.subr.bf16.mxu0 %v7268_v2  ;;  %6132 = vmatpush3.bf16.msra.mxu1 %v7045_v23  ;;  %v1581_v23 = vld [vmem:[%s7360_s26 + $0x1d] sm:$0xff] }
  0x80   : > { %6133 = vmatprep.subr.bf16.mxu1 %v7268_v2  ;;  %v1590_v26 = vpack.c.bf16 %v1581_v23, %v1580_v22  ;;  %v7088_v17 = vld [vmem:[%s9273_s4 + $0x298] sm:$0xff]   ;;  %v1754_v22 = vpack.c.bf16 %v1747_v16, %v1746_v15 }
  0x81   : > { %6098 = vmatpush3.bf16.msra.mxu0 %v7044_v25  ;;  %v1428_v25 = vpack.c.bf16 %v7678_v50, %v7660_v42  ;;  %v7078_v50 = vld [vmem:[%s9273_s4 + $0x230] sm:$0xff]  }
  0x82   : > { %6099 = vmatprep.subr.bf16.mxu0 %v7268_v2 }
  0x83   : > { %6134 = vmatpush3.bf16.msra.mxu1 %v7047_v27  ;;  %v7070_v27 = vld [vmem:[%s9273_s4 + $0x240] sm:$0xff]  }
  0x84   : > { %6044 = vmatmul.mubr.bf16.gmra.mrb[32].mxu0 %v783_v28  ;;  %6135 = vmatprep.subr.bf16.mxu1 %v7268_v2  ;;  %v7068_v28 = vld [vmem:[%s9273_s4 + $0x208] sm:$0xff]  }
  0x85   : > { %6080 = vmatmul.mubr.bf16.gmra.mrb[32].mxu1 %v945_v29  ;;  %6047 = vmatprep.mubr.msk.bf16.mxu0 %vm7269_vm0, %v7268_v2  ;;  %v1582_v29 = vld [vmem:[%s7360_s26 + $0x25] sm:$0xff] }
  0x86   : > { %6100 = vmatpush3.bf16.msra.mxu0 %v7046_v30  ;;  %6083 = vmatprep.mubr.msk.bf16.mxu1 %vm7269_vm0, %v7268_v2  ;;  %v1583_v30 = vld [vmem:[%s7360_s26 + $0x2d] sm:$0xff] }
  0x87   : > { %6101 = vmatprep.subr.bf16.mxu0 %v7268_v2  ;;  %6136 = vmatpush3.bf16.msra.mxu1 %v7048_v31  ;;  %v7071_v31 = vld [vmem:[%s9273_s4 + $0x248] sm:$0xff]   ;;  %v1591_v34 = vpack.c.bf16 %v1583_v30, %v1582_v29 }
  0x88   : > { %6137 = vmatprep.subr.bf16.mxu1 %v7268_v2  ;;  %v7092_v29 = vld [vmem:[%s9273_s4 + $0x2a8] sm:$0xff]  }
  0x89   : > { %v7095_v30 = vld [vmem:[%s9273_s4 + $0x2e8] sm:$0xff]  }
  0x8a   : > { %6102 = vmatpush3.bf16.msra.mxu0 %v7049_v35  ;;  %v7073_v35 = vld [vmem:[%s9273_s4 + $0x250] sm:$0xff]  }
  0x8b   : > { %6138 = vmatpush3.bf16.msra.mxu1 %v7050_v36  ;;  %6159 = vmatprep.subr.bf16.mxu0 %v7268_v2  ;;  %v7072_v36 = vld [vmem:[%s9273_s4 + $0x218] sm:$0xff]  }
  0x8c   : > { %6048 = vmatmul.mubr.bf16.gmra.mrb[36].mxu0 %v784_v37  ;;  %6195 = vmatprep.subr.bf16.mxu1 %v7268_v2  ;;  %v1584_v37 = vld [vmem:[%s7360_s26 + $0x35] sm:$0xff] }
  0x8d   : > { %6084 = vmatmul.mubr.bf16.gmra.mrb[36].mxu1 %v946_v38  ;;  %6103 = vmatprep.mubr.msk.bf16.mxu0 %vm7269_vm0, %v7268_v2  ;;  %v1585_v38 = vld [vmem:[%s7360_s26 + $0x3d] sm:$0xff] }
  0x8e   : > { %6139 = vmatprep.mubr.msk.bf16.mxu1 %vm7269_vm0, %v7268_v2  ;;  %v1592_v42 = vpack.c.bf16 %v1585_v38, %v1584_v37  ;;  %v1912_v37 = vld [vmem:[%s7371_s20 + $0x40] sm:$0xff]  ;;  %v1913_v38 = vld [vmem:[%s7371_s20 + $0x48] sm:$0x3f] }
  0x94   : > { %6104 = vmatmul.mubr.bf16.vlgmr.msra.gmra.mrb[40].mxu0 %v1104_v43  ;;  %v7077_v43 = vld [vmem:[%s9273_s4 + $0x260] sm:$0xff]  }
  0x95   : > { %6160 = vmatpush3.bf16.msra.mxu0 %v7051_v44  ;;  %6140 = vmatmul.mubr.bf16.vlgmr.msra.gmra.mrb[40].mxu1 %v1266_v45  ;;  %v1586_v44 = vld [vmem:[%s7360_s26 + $0x45] sm:$0xff]  ;;  %v1587_v45 = vld [vmem:[%s7360_s26 + $0x4d] sm:$0xff] }
  0x96   : > { %6161 = vmatprep.subr.bf16.mxu0 %v7268_v2  ;;  %6107 = vmatprep.mubr.msk.bf16.mxu0 %vm7269_vm0, %v7268_v2  ;;  %v1593_v49 = vpack.c.bf16 %v1587_v45, %v1586_v44  ;;  %v2067_v44 = vld [vmem:[%s7371_s20 + $0x9] sm:$0xff] }
  0x97   : > { %6143 = vmatprep.mubr.msk.bf16.mxu1 %vm7269_vm0, %v7268_v2  ;;  %6196 = vmatpush3.bf16.msra.mxu1 %v7054_v46  ;;  %v7076_v46 = vld [vmem:[%s9273_s4 + $0x228] sm:$0xff]  }
  0x98   : > { %6197 = vmatprep.subr.bf16.mxu1 %v7268_v2  ;;  %v2228_v45 = vld [vmem:[%s7371_s20 + $0x2] sm:$0xff] }
  0x99   : > { %6162 = vmatpush3.bf16.msra.mxu0 %v7052_v47  ;;  %v7079_v47 = vld [vmem:[%s9273_s4 + $0x268] sm:$0xff]  }
  0x9a   : > { %6163 = vmatprep.subr.bf16.mxu0 %v7268_v2 }
  0x9b   : > { %6198 = vmatpush3.bf16.msra.mxu1 %v7055_v52  ;;  %v1426_v52 = vld [vmem:[%s7360_s26 + $0x54] sm:$0xff] }
  0x9c   : > { %6108 = vmatmul.mubr.bf16.gmra.mrb[44].mxu0 %v1105_v53  ;;  %6199 = vmatprep.subr.bf16.mxu1 %v7268_v2  ;;  %v1427_v53 = vld [vmem:[%s7360_s26 + $0x5c] sm:$0x3f] }
  0x9d   : > { %6144 = vmatmul.mubr.bf16.gmra.mrb[44].mxu1 %v1267_v54  ;;  %6164 = vmatpush3.bf16.msra.mxu0 %v7053_v55  ;;  %v1588_v54 = vld [vmem:[%s7360_s26 + $0x55] sm:$0xff]  ;;  %v1589_v55 = vld [vmem:[%s7360_s26 + $0x5d] sm:$0x3f] }
  0x9e   : > { %6111 = vmatprep.mubr.msk.bf16.mxu0 %vm7269_vm0, %v7268_v2  ;;  %6165 = vmatprep.subr.bf16.mxu0 %v7268_v2 }
  0x9f   : > { %6147 = vmatprep.mubr.msk.bf16.mxu1 %vm7269_vm0, %v7268_v2  ;;  %6200 = vmatpush3.bf16.msra.mxu1 %v7057_v58  ;;  %v1432_v58 = vpack.c.bf16 %v1427_v53, %v1426_v52  ;;  %v2068_v52 = vld [vmem:[%s7371_s20 + $0x11] sm:$0xff]  ;;  %v2069_v53 = vld [vmem:[%s7371_s20 + $0x19] sm:$0xff] }
  0xa0   : > { %6201 = vmatprep.subr.bf16.mxu1 %v7268_v2 }
  0xa1   : > { %6166 = vmatpush3.bf16.msra.mxu0 %v7056_v59  ;;  %v1594_v59 = vpack.c.bf16 %v1589_v55, %v1588_v54  ;;  %v8011_v54 = vld [vmem:[%s7371_s20 + $0x12] sm:$0xff]  ;;  %v8014_v55 = vld [vmem:[%s7371_s20 + $0x1a] sm:$0xff] }
  0xa2   : > { %6167 = vmatprep.subr.bf16.mxu0 %v7268_v2 }
  0xa3   : > { %6202 = vmatpush3.bf16.msra.mxu1 %v7059_v62  ;;  %v1904_v62 = vld [vmem:[%s7371_s20] sm:$0xff] }
  0xa4   : > { %6112 = vmatmul.mubr.bf16.gmra.mrb[48].mxu0 %v1106_v63  ;;  %6203 = vmatprep.subr.bf16.mxu1 %v7268_v2  ;;  %v1905_v63 = vld [vmem:[%s7371_s20 + $0x8] sm:$0xff] }
  0xa5   : > { %6148 = vmatmul.mubr.bf16.gmra.mrb[48].mxu1 %v1268_v0  ;;  %6168 = vmatpush3.bf16.msra.mxu0 %v7058_v1  ;;  %v7083_v0 = vld [vmem:[%s9273_s4 + $0x280] sm:$0xff]   ;;  %v1752_v1 = vpack.c.bf16 %v1743_v61, %v1742_v60  ;;  %v1914_v3 = vpack.c.bf16 %v1905_v63, %v1904_v62  ;;  %v7105_v60 = vld [vmem:[%s9273_s4 + $0x350] sm:$0xff]   ;;  %v7104_v63 = vld [vmem:[%s9273_s4 + $0x318] sm:$0xff]  }
  0xa6   : > { %6115 = vmatprep.mubr.msk.bf16.mxu0 %vm7269_vm0, %v7268_v2  ;;  %6151 = vmatprep.mubr.msk.bf16.mxu1 %vm7269_vm0, %v7268_v2  ;;  %v2070_v61 = vld [vmem:[%s7371_s20 + $0x21] sm:$0xff]  ;;  %v2071_v62 = vld [vmem:[%s7371_s20 + $0x29] sm:$0xff] }
  0xa7   : > { %6169 = vmatprep.subr.bf16.mxu0 %v7268_v2  ;;  %6204 = vmatpush3.bf16.msra.mxu1 %v7061_v4  ;;  %v7086_v4 = vld [vmem:[%s9273_s4 + $0x2c0] sm:$0xff]  }
  0xa8   : > { %6205 = vmatprep.subr.bf16.mxu1 %v7268_v2 }
  0xa9   : > { %6170 = vmatpush3.bf16.msra.mxu0 %v7060_v6  ;;  %v1744_v6 = vld [vmem:[%s7360_s26 + $0x26] sm:$0xff] }
  0xaa   : > { %6171 = vmatprep.subr.bf16.mxu0 %v7268_v2 }
  0xab   : > { %6206 = vmatpush3.bf16.msra.mxu1 %v7063_v9  ;;  %v1907_v9 = vld [vmem:[%s7371_s20 + $0x18] sm:$0xff] }
  0xac   : > { %6116 = vmatmul.mubr.bf16.gmra.mrb[52].mxu0 %v1107_v10  ;;  %6207 = vmatprep.subr.bf16.mxu1 %v7268_v2  ;;  %v7087_v10 = vld [vmem:[%s9273_s4 + $0x2c8] sm:$0xff]  }
  0xad   : > { %6152 = vmatmul.mubr.bf16.gmra.mrb[52].mxu1 %v1269_v11  ;;  %6119 = vmatprep.mubr.msk.bf16.mxu0 %vm7269_vm0, %v7268_v2  ;;  %v1753_v11 = vpack.c.bf16 %v1745_v7, %v1744_v6 }
  0xae   : > { %6172 = vmatpush3.bf16.msra.mxu0 %v7062_v12  ;;  %6155 = vmatprep.mubr.msk.bf16.mxu1 %vm7269_vm0, %v7268_v2  ;;  %v7085_v12 = vld [vmem:[%s9273_s4 + $0x290] sm:$0xff]  }
  0xaf   : > { %6173 = vmatprep.subr.bf16.mxu0 %v7268_v2  ;;  %6208 = vmatpush3.bf16.msra.mxu1 %v7064_v13  ;;  %v1915_v13 = vpack.c.bf16 %v1907_v9, %v1906_v8  ;;  %v2078_v8 = vpack.c.bf16 %v2071_v62, %v2070_v61 }
  0xb0   : > { %6209 = vmatprep.subr.bf16.mxu1 %v7268_v2 }
  0xb2   : > { %6174 = vmatpush3.bf16.msra.mxu0 %v7065_v18  ;;  %v1908_v18 = vld [vmem:[%s7371_s20 + $0x20] sm:$0xff] }
  0xb3   : > { %6210 = vmatpush3.bf16.msra.mxu1 %v7066_v19  ;;  %6231 = vmatprep.subr.bf16.mxu0 %v7268_v2  ;;  %v1909_v19 = vld [vmem:[%s7371_s20 + $0x28] sm:$0xff] }
  0xb4   : > { %6120 = vmatmul.mubr.bf16.gmra.mrb[56].mxu0 %v1108_v20  ;;  %6267 = vmatprep.subr.bf16.mxu1 %v7268_v2  ;;  %v7091_v20 = vld [vmem:[%s9273_s4 + $0x2d8] sm:$0xff]   ;;  %v1916_v23 = vpack.c.bf16 %v1909_v19, %v1908_v18 }
  0xb5   : > { %6156 = vmatmul.mubr.bf16.gmra.mrb[56].mxu1 %v1270_v21  ;;  %6175 = vmatprep.mubr.msk.bf16.mxu0 %vm7269_vm0, %v7268_v2  ;;  %v7090_v21 = vld [vmem:[%s9273_s4 + $0x2a0] sm:$0xff]   ;;  %v2072_v18 = vld [vmem:[%s7371_s20 + $0x31] sm:$0xff] }
  0xb6   : > { %6211 = vmatprep.mubr.msk.bf16.mxu1 %vm7269_vm0, %v7268_v2  ;;  %v2073_v19 = vld [vmem:[%s7371_s20 + $0x39] sm:$0xff] }
  0xbc   : > { %6176 = vmatmul.mubr.bf16.vlgmr.msra.gmra.mrb[60].mxu0 %v1428_v25  ;;  %v1748_v25 = vld [vmem:[%s7360_s26 + $0x46] sm:$0xff] }
  0xbd   : > { %6232 = vmatpush3.bf16.msra.mxu0 %v7067_v24  ;;  %6212 = vmatmul.mubr.bf16.vlgmr.msra.gmra.mrb[60].mxu1 %v1590_v26  ;;  %v7093_v24 = vld [vmem:[%s9273_s4 + $0x2e0] sm:$0xff]   ;;  %v1749_v26 = vld [vmem:[%s7360_s26 + $0x4e] sm:$0xff] }
  0xbe   : > { %6233 = vmatprep.subr.bf16.mxu0 %v7268_v2  ;;  %6179 = vmatprep.mubr.msk.bf16.mxu0 %vm7269_vm0, %v7268_v2 }
  0xbf   : > { %6215 = vmatprep.mubr.msk.bf16.mxu1 %vm7269_vm0, %v7268_v2  ;;  %6268 = vmatpush3.bf16.msra.mxu1 %v7070_v27  ;;  %v1910_v27 = vld [vmem:[%s7371_s20 + $0x30] sm:$0xff] }
  0xc0   : > { %6269 = vmatprep.subr.bf16.mxu1 %v7268_v2 }
  0xc1   : > { %6234 = vmatpush3.bf16.msra.mxu0 %v7068_v28  ;;  %v1911_v28 = vld [vmem:[%s7371_s20 + $0x38] sm:$0xff] }
  0xc2   : > { %6235 = vmatprep.subr.bf16.mxu0 %v7268_v2 }
  0xc3   : > { %6270 = vmatpush3.bf16.msra.mxu1 %v7071_v31  ;;  %v1755_v31 = vpack.c.bf16 %v1749_v26, %v1748_v25 }
  0xc4   : > { %6180 = vmatmul.mubr.bf16.gmra.mrb[64].mxu0 %v1429_v32  ;;  %6271 = vmatprep.subr.bf16.mxu1 %v7268_v2  ;;  %v1917_v32 = vpack.c.bf16 %v1911_v28, %v1910_v27  ;;  %v2079_v27 = vpack.c.bf16 %v2073_v19, %v2072_v18  ;;  %v7119_v18 = vld [vmem:[%s9273_s4 + $0x3c8] sm:$0xff]  }
  0xc5   : > { %6216 = vmatmul.mubr.bf16.gmra.mrb[64].mxu1 %v1591_v34  ;;  %6236 = vmatpush3.bf16.msra.mxu0 %v7069_v33  ;;  %v7094_v33 = vld [vmem:[%s9273_s4 + $0x2b0] sm:$0xff]  }
  0xc6   : > { %6183 = vmatprep.mubr.msk.bf16.mxu0 %vm7269_vm0, %v7268_v2  ;;  %6237 = vmatprep.subr.bf16.mxu0 %v7268_v2  ;;  %v7096_v34 = vld [vmem:[%s9273_s4 + $0x2f0] sm:$0xff]  }
  0xc7   : > { %6219 = vmatprep.mubr.msk.bf16.mxu1 %vm7269_vm0, %v7268_v2  ;;  %6272 = vmatpush3.bf16.msra.mxu1 %v7073_v35  ;;  %v1750_v35 = vld [vmem:[%s7360_s26 + $0x56] sm:$0xff] }
  0xc8   : > { %6273 = vmatprep.subr.bf16.mxu1 %v7268_v2 }
  0xc9   : > { %6238 = vmatpush3.bf16.msra.mxu0 %v7072_v36  ;;  %v1751_v36 = vld [vmem:[%s7360_s26 + $0x5e] sm:$0x3f] }
  0xca   : > { %6239 = vmatprep.subr.bf16.mxu0 %v7268_v2 }
  0xcb   : > { %6274 = vmatpush3.bf16.msra.mxu1 %v7075_v39  ;;  %v7097_v39 = vld [vmem:[%s9273_s4 + $0x2b8] sm:$0xff]  }
  0xcc   : > { %6184 = vmatmul.mubr.bf16.gmra.mrb[68].mxu0 %v1430_v41  ;;  %6275 = vmatprep.subr.bf16.mxu1 %v7268_v2  ;;  %v1756_v41 = vpack.c.bf16 %v1751_v36, %v1750_v35  ;;  %v7112_v36 = vld [vmem:[%s9273_s4 + $0x370] sm:$0xff]  }
  0xcd   : > { %6220 = vmatmul.mubr.bf16.gmra.mrb[68].mxu1 %v1592_v42  ;;  %6240 = vmatpush3.bf16.msra.mxu0 %v7074_v40  ;;  %v7098_v40 = vld [vmem:[%s9273_s4 + $0x2f8] sm:$0xff]   ;;  %v1918_v42 = vpack.c.bf16 %v1913_v38, %v1912_v37  ;;  %v2074_v38 = vld [vmem:[%s7371_s20 + $0x41] sm:$0xff] }
  0xce   : > { %6187 = vmatprep.mubr.msk.bf16.mxu0 %vm7269_vm0, %v7268_v2  ;;  %6223 = vmatprep.mubr.msk.bf16.mxu1 %vm7269_vm0, %v7268_v2 }
  0xcf   : > { %6241 = vmatprep.subr.bf16.mxu0 %v7268_v2  ;;  %6276 = vmatpush3.bf16.msra.mxu1 %v7077_v43  ;;  %v2066_v43 = vld [vmem:[%s7371_s20 + $0x1] sm:$0xff] }
  0xd0   : > { %6277 = vmatprep.subr.bf16.mxu1 %v7268_v2 }
  0xd1   : > { %6242 = vmatpush3.bf16.msra.mxu0 %v7076_v46  ;;  %v7991_v46 = vld [vmem:[%s7371_s20 + $0xa] sm:$0xff] }
  0xd2   : > { %6243 = vmatprep.subr.bf16.mxu0 %v7268_v2 }
  0xd3   : > { %6278 = vmatpush3.bf16.msra.mxu1 %v7079_v47  ;;  %v7099_v47 = vld [vmem:[%s9273_s4 + $0x300] sm:$0xff]  }
  0xd4   : > { %6188 = vmatmul.mubr.bf16.gmra.mrb[72].mxu0 %v1431_v48  ;;  %6279 = vmatprep.subr.bf16.mxu1 %v7268_v2  ;;  %v2076_v48 = vpack.c.bf16 %v2067_v44, %v2066_v43  ;;  %v7114_v44 = vld [vmem:[%s9273_s4 + $0x378] sm:$0xff]  }
  0xd5   : > { %6224 = vmatmul.mubr.bf16.gmra.mrb[72].mxu1 %v1593_v49  ;;  %6191 = vmatprep.mubr.msk.bf16.mxu0 %vm7269_vm0, %v7268_v2  ;;  %v2238_v49 = vpack.c.bf16 %v7991_v46, %v2228_v45 }
  0xd6   : > { %6244 = vmatpush3.bf16.msra.mxu0 %v7078_v50  ;;  %6227 = vmatprep.mubr.msk.bf16.mxu1 %vm7269_vm0, %v7268_v2  ;;  %v7102_v50 = vld [vmem:[%s9273_s4 + $0x340] sm:$0xff]  }
  0xd7   : > { %6245 = vmatprep.subr.bf16.mxu0 %v7268_v2  ;;  %6280 = vmatpush3.bf16.msra.mxu1 %v7080_v51  ;;  %v7100_v51 = vld [vmem:[%s9273_s4 + $0x308] sm:$0xff]  }
  0xd8   : > { %6281 = vmatprep.subr.bf16.mxu1 %v7268_v2 }
  0xda   : > { %6246 = vmatpush3.bf16.msra.mxu0 %v7081_v56  ;;  %v7103_v56 = vld [vmem:[%s9273_s4 + $0x348] sm:$0xff]  }
  0xdb   : > { %6282 = vmatpush3.bf16.msra.mxu1 %v7082_v57  ;;  %6303 = vmatprep.subr.bf16.mxu0 %v7268_v2  ;;  %v2077_v57 = vpack.c.bf16 %v2069_v53, %v2068_v52 }
  0xdc   : > { %6192 = vmatmul.mubr.bf16.gmra.mrb[76].mxu0 %v1432_v58  ;;  %6339 = vmatprep.subr.bf16.mxu1 %v7268_v2  ;;  %v7101_v58 = vld [vmem:[%s9273_s4 + $0x310] sm:$0xff]  }
  0xdd   : > { %6228 = vmatmul.mubr.bf16.gmra.mrb[76].mxu1 %v1594_v59  ;;  %6247 = vmatprep.mubr.msk.bf16.mxu0 %vm7269_vm0, %v7268_v2  ;;  %v2239_v59 = vpack.c.bf16 %v8014_v55, %v8011_v54 }
  0xde   : > { %6283 = vmatprep.mubr.msk.bf16.mxu1 %vm7269_vm0, %v7268_v2 }
  0xe4   : > { %6248 = vmatmul.mubr.bf16.vlgmr.msra.gmra.mrb[80].mxu0 %v1752_v1  ;;  %v8047_v1 = vld [vmem:[%s7371_s20 + $0x2a] sm:$0xff] }
  0xe5   : > { %6304 = vmatpush3.bf16.msra.mxu0 %v7083_v0  ;;  %6284 = vmatmul.mubr.bf16.vlgmr.msra.gmra.mrb[80].mxu1 %v1914_v3  ;;  %v8040_v0 = vld [vmem:[%s7371_s20 + $0x22] sm:$0xff] }
  0xe6   : > { %6305 = vmatprep.subr.bf16.mxu0 %v7268_v2  ;;  %6251 = vmatprep.mubr.msk.bf16.mxu0 %vm7269_vm0, %v7268_v2 }
  0xe7   : > { %6287 = vmatprep.mubr.msk.bf16.mxu1 %vm7269_vm0, %v7268_v2  ;;  %6340 = vmatpush3.bf16.msra.mxu1 %v7086_v4  ;;  %v7106_v4 = vld [vmem:[%s9273_s4 + $0x320] sm:$0xff]  }
  0xe8   : > { %6341 = vmatprep.subr.bf16.mxu1 %v7268_v2 }
  0xe9   : > { %6306 = vmatpush3.bf16.msra.mxu0 %v7084_v5  ;;  %v7107_v5 = vld [vmem:[%s9273_s4 + $0x358] sm:$0xff]  }
  0xea   : > { %6307 = vmatprep.subr.bf16.mxu0 %v7268_v2 }
  0xeb   : > { %6342 = vmatpush3.bf16.msra.mxu1 %v7087_v10 }
  0xec   : > { %6252 = vmatmul.mubr.bf16.gmra.mrb[84].mxu0 %v1753_v11  ;;  %6343 = vmatprep.subr.bf16.mxu1 %v7268_v2 }
  0xed   : > { %6288 = vmatmul.mubr.bf16.gmra.mrb[84].mxu1 %v1915_v13  ;;  %6308 = vmatpush3.bf16.msra.mxu0 %v7085_v12  ;;  %v2240_v12 = vpack.c.bf16 %v8047_v1, %v8040_v0 }
  0xee   : > { %6255 = vmatprep.mubr.msk.bf16.mxu0 %vm7269_vm0, %v7268_v2  ;;  %6309 = vmatprep.subr.bf16.mxu0 %v7268_v2 }
  0xef   : > { %6291 = vmatprep.mubr.msk.bf16.mxu1 %vm7269_vm0, %v7268_v2  ;;  %6344 = vmatpush3.bf16.msra.mxu1 %v7089_v14 }
  0xf0   : > { %6345 = vmatprep.subr.bf16.mxu1 %v7268_v2 }
  0xf1   : > { %6310 = vmatpush3.bf16.msra.mxu0 %v7088_v17  ;;  %v7109_v17 = vld [vmem:[%s9273_s4 + $0x360] sm:$0xff]  }
  0xf2   : > { %6311 = vmatprep.subr.bf16.mxu0 %v7268_v2 }
  0xf3   : > { %6346 = vmatpush3.bf16.msra.mxu1 %v7091_v20  ;;  %v7108_v20 = vld [vmem:[%s9273_s4 + $0x328] sm:$0xff]  }
  0xf4   : > { %6256 = vmatmul.mubr.bf16.gmra.mrb[88].mxu0 %v1754_v22  ;;  %6347 = vmatprep.subr.bf16.mxu1 %v7268_v2  ;;  %v8082_v22 = vld [vmem:[%s7371_s20 + $0x3a] sm:$0xff] }
  0xf5   : > { %6292 = vmatmul.mubr.bf16.gmra.mrb[88].mxu1 %v1916_v23  ;;  %6312 = vmatpush3.bf16.msra.mxu0 %v7090_v21  ;;  %v8079_v21 = vld [vmem:[%s7371_s20 + $0x32] sm:$0xff] }
  0xf6   : > { %6259 = vmatprep.mubr.msk.bf16.mxu0 %vm7269_vm0, %v7268_v2  ;;  %6295 = vmatprep.mubr.msk.bf16.mxu1 %vm7269_vm0, %v7268_v2 }
  0xf7   : > { %6313 = vmatprep.subr.bf16.mxu0 %v7268_v2  ;;  %6348 = vmatpush3.bf16.msra.mxu1 %v7093_v24  ;;  %v7111_v24 = vld [vmem:[%s9273_s4 + $0x368] sm:$0xff]  }
  0xf8   : > { %6349 = vmatprep.subr.bf16.mxu1 %v7268_v2 }
  0xf9   : > { %6314 = vmatpush3.bf16.msra.mxu0 %v7092_v29 }
  0xfa   : > { %6315 = vmatprep.subr.bf16.mxu0 %v7268_v2 }
  0xfb   : > { %6350 = vmatpush3.bf16.msra.mxu1 %v7095_v30  ;;  %v2241_v30 = vpack.c.bf16 %v8082_v22, %v8079_v21 }
  0xfc   : > { %6260 = vmatmul.mubr.bf16.gmra.mrb[92].mxu0 %v1755_v31  ;;  %6351 = vmatprep.subr.bf16.mxu1 %v7268_v2 }
  0xfd   : > { %6296 = vmatmul.mubr.bf16.gmra.mrb[92].mxu1 %v1917_v32  ;;  %6263 = vmatprep.mubr.msk.bf16.mxu0 %vm7269_vm0, %v7268_v2 }
  0xfe   : > { %6316 = vmatpush3.bf16.msra.mxu0 %v7094_v33  ;;  %6299 = vmatprep.mubr.msk.bf16.mxu1 %vm7269_vm0, %v7268_v2 }
  0xff   : > { %6317 = vmatprep.subr.bf16.mxu0 %v7268_v2  ;;  %6352 = vmatpush3.bf16.msra.mxu1 %v7096_v34  ;;  %v7110_v34 = vld [vmem:[%s9273_s4 + $0x330] sm:$0xff]  }
 0x100   : > { %6353 = vmatprep.subr.bf16.mxu1 %v7268_v2 }
 0x102   : > { %6318 = vmatpush3.bf16.msra.mxu0 %v7097_v39  ;;  %v2075_v39 = vld [vmem:[%s7371_s20 + $0x49] sm:$0x3f] }
 0x103   : > { %6354 = vmatpush3.bf16.msra.mxu1 %v7098_v40  ;;  %6375 = vmatprep.subr.bf16.mxu0 %v7268_v2  ;;  %v8110_v40 = vld [vmem:[%s7371_s20 + $0x42] sm:$0xff] }
 0x104   : > { %6264 = vmatmul.mubr.bf16.gmra.mrb[96].mxu0 %v1756_v41  ;;  %6411 = vmatprep.subr.bf16.mxu1 %v7268_v2  ;;  %v2237_v41 = vld [vmem:[%s7371_s20 + $0x4a] sm:$0x3f] }
 0x105   : > { %6300 = vmatmul.mubr.bf16.gmra.mrb[96].mxu1 %v1918_v42  ;;  %6319 = vmatprep.mubr.msk.bf16.mxu0 %vm7269_vm0, %v7268_v2  ;;  %v7113_v42 = vld [vmem:[%s9273_s4 + $0x338] sm:$0xff]  }
 0x106   : > { %6355 = vmatprep.mubr.msk.bf16.mxu1 %vm7269_vm0, %v7268_v2 }
 0x10c   : > { %6320 = vmatmul.mubr.bf16.vlgmr.msra.gmra.mrb[100].mxu0 %v2076_v48  ;;  %v2080_v48 = vpack.c.bf16 %v2075_v39, %v2074_v38  ;;  %v7123_v38 = vld [vmem:[%s9273_s4 + $0x3d8] sm:$0xff]  }
 0x10d   : > { %6376 = vmatpush3.bf16.msra.mxu0 %v7099_v47  ;;  %6356 = vmatmul.mubr.bf16.vlgmr.msra.gmra.mrb[100].mxu1 %v2238_v49 }
 0x10e   : > { %6377 = vmatprep.subr.bf16.mxu0 %v7268_v2  ;;  %6323 = vmatprep.mubr.msk.bf16.mxu0 %vm7269_vm0, %v7268_v2 }
 0x10f   : > { %6359 = vmatprep.mubr.msk.bf16.mxu1 %vm7269_vm0, %v7268_v2  ;;  %6412 = vmatpush3.bf16.msra.mxu1 %v7102_v50 }
 0x110   : > { %6413 = vmatprep.subr.bf16.mxu1 %v7268_v2 }
 0x111   : > { %6378 = vmatpush3.bf16.msra.mxu0 %v7100_v51  ;;  %v2242_v51 = vpack.c.bf16 %v2237_v41, %v8110_v40 }
 0x112   : > { %6379 = vmatprep.subr.bf16.mxu0 %v7268_v2 }
 0x113   : > { %6414 = vmatpush3.bf16.msra.mxu1 %v7103_v56 }
 0x114   : > { %6324 = vmatmul.mubr.bf16.gmra.mrb[104].mxu0 %v2077_v57  ;;  %6415 = vmatprep.subr.bf16.mxu1 %v7268_v2 }
 0x115   : > { %6360 = vmatmul.mubr.bf16.gmra.mrb[104].mxu1 %v2239_v59  ;;  %6380 = vmatpush3.bf16.msra.mxu0 %v7101_v58  ;;  %v2552_v59 = vld [vmem:[%s7371_s20 + $0xb] sm:$0xff] }
 0x116   : > { %6327 = vmatprep.mubr.msk.bf16.mxu0 %vm7269_vm0, %v7268_v2  ;;  %6381 = vmatprep.subr.bf16.mxu0 %v7268_v2 }
 0x117   : > { %v610_v3 = vpop.f32.mrb[0].mxu0  ;;  %6363 = vmatprep.mubr.msk.bf16.mxu1 %vm7269_vm0, %v7268_v2  ;;  %6416 = vmatpush3.bf16.msra.mxu1 %v7105_v60  ;;  %v2553_v60 = vld [vmem:[%s7371_s20 + $0x13] sm:$0xff] }
 0x118   : > { %v731_v6 = vpop.f32.mrb[0].mxu1  ;;  %v5961_v7 = vpop.f32.mrb[1].mxu0  ;;  %6417 = vmatprep.subr.bf16.mxu1 %v7268_v2 }
 0x119   : > { %v8058_v9 = vadd.f32 %v731_v6, %v610_v3  ;;  %v5997_v10 = vpop.f32.mrb[1].mxu1  ;;  %v613_v11 = vpop.f32.mrb[2].mxu0  ;;  %6382 = vmatpush3.bf16.msra.mxu0 %v7104_v63  ;;  %v2400_v3 = vpack.c.bf16 %v8011_v54, %v7991_v46  ;;  %v7115_v6 = vld [vmem:[%s9273_s4 + $0x380] sm:$0xff]   ;;  %v2562_v7 = vpack.c.bf16 %v2553_v60, %v2552_v59  ;;  %v7116_v46 = vld [vmem:[%s9273_s4 + $0x388] sm:$0xff]  }
 0x11a   : > { %v734_v13 = vpop.f32.mrb[2].mxu1  ;;  %v5962_v14 = vpop.f32.mrb[3].mxu0  ;;  %6383 = vmatprep.subr.bf16.mxu0 %v7268_v2  ;;  %v2554_v54 = vld [vmem:[%s7371_s20 + $0x1b] sm:$0xff]  ;;  %v7127_v60 = vld [vmem:[%s9273_s4 + $0x3e8] sm:$0xff]  }
 0x11b   : > { %v8063_v15 = vadd.f32 %v734_v13, %v613_v11  ;;  %v5998_v16 = vpop.f32.mrb[3].mxu1  ;;  %6418 = vmatpush3.bf16.msra.mxu1 %v7107_v5  ;;  %v7118_v13 = vld [vmem:[%s9273_s4 + $0x3c0] sm:$0xff]  }
 0x11c   : > { %6328 = vmatmul.mubr.bf16.gmra.mrb[108].mxu0 %v2078_v8  ;;  %6419 = vmatprep.subr.bf16.mxu1 %v7268_v2  ;;  %v2555_v16 = vld [vmem:[%s7371_s20 + $0x23] sm:$0xff] }
 0x11d   : > { %6364 = vmatmul.mubr.bf16.gmra.mrb[108].mxu1 %v2240_v12  ;;  %6384 = vmatpush3.bf16.msra.mxu0 %v7106_v4 }
 0x11e   : > { %6331 = vmatprep.mubr.msk.bf16.mxu0 %vm7269_vm0, %v7268_v2  ;;  %6367 = vmatprep.mubr.msk.bf16.mxu1 %vm7269_vm0, %v7268_v2 }
 0x11f   : > { %v618_v23 = vpop.f32.mrb[4].mxu0  ;;  %6385 = vmatprep.subr.bf16.mxu0 %v7268_v2  ;;  %6420 = vmatpush3.bf16.msra.mxu1 %v7109_v17 }
 0x120   : > { %v739_v25 = vpop.f32.mrb[4].mxu1  ;;  %v5965_v26 = vpop.f32.mrb[5].mxu0  ;;  %6421 = vmatprep.subr.bf16.mxu1 %v7268_v2 }
 0x121   : > { %v6001_v28 = vpop.f32.mrb[5].mxu1  ;;  %v621_v29 = vpop.f32.mrb[6].mxu0  ;;  %6386 = vmatpush3.bf16.msra.mxu0 %v7108_v20  ;;  %v8091_v31 = vadd.f32 %v739_v25, %v618_v23  ;;  %v2401_v23 = vpack.c.bf16 %v8040_v0, %v8014_v55  ;;  %v2563_v26 = vpack.c.bf16 %v2555_v16, %v2554_v54  ;;  %v7121_v55 = vld [vmem:[%s9273_s4 + $0x3d0] sm:$0xff]  }
 0x122   : > { %v742_v32 = vpop.f32.mrb[6].mxu1  ;;  %v5966_v33 = vpop.f32.mrb[7].mxu0  ;;  %6387 = vmatprep.subr.bf16.mxu0 %v7268_v2  ;;  %v2560_v54 = vld [vmem:[%s7371_s20 + $0x4b] sm:$0xff]  ;;  %v2561_v16 = vld [vmem:[%s7371_s20 + $0x53] sm:$0x3f] }
 0x123   : > { %v6002_v35 = vpop.f32.mrb[7].mxu1  ;;  %6422 = vmatpush3.bf16.msra.mxu1 %v7111_v24  ;;  %v8100_v37 = vadd.f32 %v742_v32, %v621_v29  ;;  %v7120_v33 = vld [vmem:[%s9273_s4 + $0x398] sm:$0xff]  }
 0x124   : > { %6332 = vmatmul.mubr.bf16.gmra.mrb[112].mxu0 %v2079_v27  ;;  %6423 = vmatprep.subr.bf16.mxu1 %v7268_v2  ;;  %v7117_v27 = vld [vmem:[%s9273_s4 + $0x390] sm:$0xff]  }
 0x125   : > { %6368 = vmatmul.mubr.bf16.gmra.mrb[112].mxu1 %v2241_v30  ;;  %6335 = vmatprep.mubr.msk.bf16.mxu0 %vm7269_vm0, %v7268_v2  ;;  %v2557_v35 = vld [vmem:[%s7371_s20 + $0x33] sm:$0xff] }
 0x126   : > { %6388 = vmatpush3.bf16.msra.mxu0 %v7110_v34  ;;  %6371 = vmatprep.mubr.msk.bf16.mxu1 %vm7269_vm0, %v7268_v2  ;;  %v2556_v34 = vld [vmem:[%s7371_s20 + $0x2b] sm:$0xff] }
 0x127   : > { %v626_v43 = vpop.f32.mrb[8].mxu0  ;;  %6389 = vmatprep.subr.bf16.mxu0 %v7268_v2  ;;  %6424 = vmatpush3.bf16.msra.mxu1 %v7112_v36 }
 0x128   : > { %v747_v45 = vpop.f32.mrb[8].mxu1  ;;  %v5969_v47 = vpop.f32.mrb[9].mxu0  ;;  %6425 = vmatprep.subr.bf16.mxu1 %v7268_v2 }
 0x129   : > { %v6005_v49 = vpop.f32.mrb[9].mxu1  ;;  %v629_v50 = vpop.f32.mrb[10].mxu0  ;;  %v8122_v52 = vadd.f32 %v747_v45, %v626_v43  ;;  %v2402_v43 = vpack.c.bf16 %v8079_v21, %v8047_v1  ;;  %v2564_v47 = vpack.c.bf16 %v2557_v35, %v2556_v34  ;;  %v7125_v21 = vld [vmem:[%s9273_s4 + $0x3e0] sm:$0xff]   ;;  %v2715_v35 = vld [vmem:[%s7371_s20 + $0x14] sm:$0xff] }
 0x12a   : > { %v750_v53 = vpop.f32.mrb[10].mxu1  ;;  %v5970_v56 = vpop.f32.mrb[11].mxu0  ;;  %6390 = vmatpush3.bf16.msra.mxu0 %v7113_v42 }
 0x12b   : > { %v6006_v57 = vpop.f32.mrb[11].mxu1  ;;  %6426 = vmatpush3.bf16.msra.mxu1 %v7114_v44  ;;  %6447 = vmatprep.subr.bf16.mxu0 %v7268_v2  ;;  %v8125_v58 = vadd.f32 %v750_v53, %v629_v50  ;;  %v2558_v56 = vld [vmem:[%s7371_s20 + $0x3b] sm:$0xff] }
 0x12c   : > { %6336 = vmatmul.mubr.bf16.gmra.mrb[116].mxu0 %v2080_v48  ;;  %6483 = vmatprep.subr.bf16.mxu1 %v7268_v2  ;;  %v7122_v48 = vld [vmem:[%s9273_s4 + $0x3a0] sm:$0xff]  }
 0x12d   : > { %6372 = vmatmul.mubr.bf16.gmra.mrb[116].mxu1 %v2242_v51  ;;  %6391 = vmatprep.mubr.msk.bf16.mxu0 %vm7269_vm0, %v7268_v2  ;;  %v2559_v57 = vld [vmem:[%s7371_s20 + $0x43] sm:$0xff] }
 0x12e   : > { %6427 = vmatprep.mubr.msk.bf16.mxu1 %vm7269_vm0, %v7268_v2 }
 0x12f   : > { %v634_v61 = vpop.f32.mrb[12].mxu0 }
 0x130   : > { %v755_v62 = vpop.f32.mrb[12].mxu1  ;;  %v5973_v63 = vpop.f32.mrb[13].mxu0 }
 0x131   : > { %v6009_v4 = vpop.f32.mrb[13].mxu1  ;;  %v637_v5 = vpop.f32.mrb[14].mxu0  ;;  %v8139_v8 = vadd.f32 %v755_v62, %v634_v61 }
 0x132   : > { %v758_v10 = vpop.f32.mrb[14].mxu1  ;;  %v5974_v11 = vpop.f32.mrb[15].mxu0 }
 0x133   : > { %v6010_v12 = vpop.f32.mrb[15].mxu1  ;;  %v8144_v14 = vadd.f32 %v758_v10, %v637_v5 }
 0x134   : > { %6392 = vmatmul.mubr.bf16.vlgmr.msra.gmra.mrb[120].mxu0 %v2400_v3  ;;  %v2403_v3 = vpack.c.bf16 %v8110_v40, %v8082_v22  ;;  %v7126_v22 = vld [vmem:[%s9273_s4 + $0x3b0] sm:$0xff]  }
 0x135   : > { %6448 = vmatpush3.bf16.msra.mxu0 %v7115_v6  ;;  %6428 = vmatmul.mubr.bf16.vlgmr.msra.gmra.mrb[120].mxu1 %v2562_v7  ;;  %v2565_v6 = vpack.c.bf16 %v2559_v57, %v2558_v56  ;;  %v7128_v12 = vld [vmem:[%s9273_s4 + $0x3f0] sm:$0xff]   ;;  %v7132_v56 = vld [vmem:[%s9273_s4 + $0x408] sm:$0xff]  }
 0x136   : > { %6449 = vmatprep.subr.bf16.mxu0 %v7268_v2  ;;  %6395 = vmatprep.mubr.msk.bf16.mxu0 %vm7269_vm0, %v7268_v2  ;;  %v2717_v57 = vld [vmem:[%s7371_s20 + $0x24] sm:$0xff] }
 0x137   : > { %v642_v17 = vpop.f32.mrb[16].mxu0  ;;  %6431 = vmatprep.mubr.msk.bf16.mxu1 %vm7269_vm0, %v7268_v2  ;;  %6484 = vmatpush3.bf16.msra.mxu1 %v7118_v13 }
 0x138   : > { %v763_v19 = vpop.f32.mrb[16].mxu1  ;;  %v5977_v20 = vpop.f32.mrb[17].mxu0  ;;  %6485 = vmatprep.subr.bf16.mxu1 %v7268_v2 }
 0x139   : > { %v6013_v24 = vpop.f32.mrb[17].mxu1  ;;  %v645_v25 = vpop.f32.mrb[18].mxu0  ;;  %6450 = vmatpush3.bf16.msra.mxu0 %v7116_v46  ;;  %v8165_v28 = vadd.f32 %v763_v19, %v642_v17  ;;  %v2399_v46 = vld [vmem:[%s7371_s20 + $0x52] sm:$0x3f]  ;;  %v7129_v17 = vld [vmem:[%s9273_s4 + $0x3b8] sm:$0xff]  }
 0x13a   : > { %v766_v29 = vpop.f32.mrb[18].mxu1  ;;  %v5978_v30 = vpop.f32.mrb[19].mxu0  ;;  %6451 = vmatprep.subr.bf16.mxu0 %v7268_v2  ;;  %v7130_v19 = vld [vmem:[%s9273_s4 + $0x3f8] sm:$0xff]  }
 0x13b   : > { %v6014_v32 = vpop.f32.mrb[19].mxu1  ;;  %6486 = vmatpush3.bf16.msra.mxu1 %v7119_v18  ;;  %v8171_v0 = vadd.f32 %v766_v29, %v645_v25  ;;  %v2566_v29 = vpack.c.bf16 %v2561_v16, %v2560_v54  ;;  %v2881_v54 = vld [vmem:[%s7371_s20 + $0x3c] sm:$0xff] }
 0x13c   : > { %6396 = vmatmul.mubr.bf16.gmra.mrb[124].mxu0 %v2401_v23  ;;  %6487 = vmatprep.subr.bf16.mxu1 %v7268_v2 }
 0x13d   : > { %6432 = vmatmul.mubr.bf16.gmra.mrb[124].mxu1 %v2563_v26  ;;  %6452 = vmatpush3.bf16.msra.mxu0 %v7117_v27 }
 0x13e   : > { %6399 = vmatprep.mubr.msk.bf16.mxu0 %vm7269_vm0, %v7268_v2  ;;  %6453 = vmatprep.subr.bf16.mxu0 %v7268_v2 }
 0x13f   : > { %v883_v36 = vpop.f32.mrb[20].mxu0  ;;  %6435 = vmatprep.mubr.msk.bf16.mxu1 %vm7269_vm0, %v7268_v2  ;;  %6488 = vmatpush3.bf16.msra.mxu1 %v7121_v55 }
 0x140   : > { %v922_v39 = vadd.f32 %v883_v36, %v8058_v9  ;;  %v6033_v41 = vpop.f32.mrb[21].mxu0  ;;  %v1045_v42 = vpop.f32.mrb[20].mxu1  ;;  %6489 = vmatprep.subr.bf16.mxu1 %v7268_v2  ;;  %v2877_v36 = vld [vmem:[%s7371_s20 + $0x1c] sm:$0xff] }
 0x141   : > { %v886_v44 = vpop.f32.mrb[22].mxu0  ;;  %v6069_v45 = vpop.f32.mrb[21].mxu1  ;;  %6454 = vmatpush3.bf16.msra.mxu0 %v7120_v33 }
 0x142   : > { %v923_v49 = vadd.f32 %v886_v44, %v8063_v15  ;;  %v6034_v50 = vpop.f32.mrb[23].mxu0  ;;  %v1048_v9 = vpop.f32.mrb[22].mxu1  ;;  %6455 = vmatprep.subr.bf16.mxu0 %v7268_v2  ;;  %v8196_v51 = vadd.f32 %v1045_v42, %v922_v39  ;;  %v7124_v15 = vld [vmem:[%s9273_s4 + $0x3a8] sm:$0xff]  }
 0x143   : > { %v6070_v1 = vpop.f32.mrb[23].mxu1  ;;  %6490 = vmatpush3.bf16.msra.mxu1 %v7123_v38 }
 0x144   : > { %6400 = vmatmul.mubr.bf16.gmra.mrb[128].mxu0 %v2402_v43  ;;  %6491 = vmatprep.subr.bf16.mxu1 %v7268_v2  ;;  %v8202_v53 = vadd.f32 %v1048_v9, %v923_v49 }
 0x145   : > { %6436 = vmatmul.mubr.bf16.gmra.mrb[128].mxu1 %v2564_v47  ;;  %6456 = vmatpush3.bf16.msra.mxu0 %v7122_v48  ;;  %v7131_v47 = vld [vmem:[%s9273_s4 + $0x400] sm:$0xff]   ;;  %v2886_v48 = vpack.c.bf16 %v2877_v36, %v2715_v35 }
 0x146   : > { %6403 = vmatprep.mubr.msk.bf16.mxu0 %vm7269_vm0, %v7268_v2  ;;  %6439 = vmatprep.mubr.msk.bf16.mxu1 %vm7269_vm0, %v7268_v2 }
 0x147   : > { %v891_v59 = vpop.f32.mrb[24].mxu0  ;;  %6457 = vmatprep.subr.bf16.mxu0 %v7268_v2  ;;  %6492 = vmatpush3.bf16.msra.mxu1 %v7125_v21 }
 0x148   : > { %v924_v61 = vadd.f32 %v891_v59, %v8091_v31  ;;  %v6037_v62 = vpop.f32.mrb[25].mxu0  ;;  %v1053_v63 = vpop.f32.mrb[24].mxu1  ;;  %6493 = vmatprep.subr.bf16.mxu1 %v7268_v2 }
 0x149   : > { %v894_v4 = vpop.f32.mrb[26].mxu0  ;;  %v6073_v5 = vpop.f32.mrb[25].mxu1  ;;  %6458 = vmatpush3.bf16.msra.mxu0 %v7124_v15 }
 0x14a   : > { %v925_v7 = vadd.f32 %v894_v4, %v8100_v37  ;;  %v8222_v10 = vadd.f32 %v1053_v63, %v924_v61  ;;  %v6038_v11 = vpop.f32.mrb[27].mxu0  ;;  %v1056_v31 = vpop.f32.mrb[26].mxu1  ;;  %6459 = vmatprep.subr.bf16.mxu0 %v7268_v2  ;;  %v2398_v37 = vld [vmem:[%s7371_s20 + $0x4a] sm:$0xff] }
 0x14b   : > { %v6074_v40 = vpop.f32.mrb[27].mxu1  ;;  %6494 = vmatpush3.bf16.msra.mxu1 %v7127_v60  ;;  %v2404_v25 = vpack.c.bf16 %v2399_v46, %v2398_v37  ;;  %v7135_v60 = vld [vmem:[%s9273_s4 + $0x448] sm:$0xff]   ;;  %v7136_v46 = vld [vmem:[%s9273_s4 + $0x418] sm:$0xff]  }
 0x14c   : > { %v8231_v13 = vadd.f32 %v1056_v31, %v925_v7  ;;  %6404 = vmatmul.mubr.bf16.gmra.mrb[132].mxu0 %v2403_v3  ;;  %6495 = vmatprep.subr.bf16.mxu1 %v7268_v2  ;;  %v2725_v3 = vpack.c.bf16 %v2717_v57, %v2877_v36  ;;  %v7133_v7 = vld [vmem:[%s9273_s4 + $0x410] sm:$0xff]  }
 0x14d   : > { %6440 = vmatmul.mubr.bf16.gmra.mrb[132].mxu1 %v2565_v6  ;;  %6407 = vmatprep.mubr.msk.bf16.mxu0 %vm7269_vm0, %v7268_v2  ;;  %v2883_v36 = vld [vmem:[%s7371_s20 + $0x4c] sm:$0xff] }
 0x14e   : > { %6460 = vmatpush3.bf16.msra.mxu0 %v7126_v22  ;;  %6443 = vmatprep.mubr.msk.bf16.mxu1 %vm7269_vm0, %v7268_v2 }
 0x14f   : > { %v899_v18 = vpop.f32.mrb[28].mxu0  ;;  %6461 = vmatprep.subr.bf16.mxu0 %v7268_v2  ;;  %6496 = vmatpush3.bf16.msra.mxu1 %v7128_v12  ;;  %v7137_v12 = vld [vmem:[%s9273_s4 + $0x450] sm:$0xff]  }
 0x150   : > { %v926_v20 = vadd.f32 %v899_v18, %v8122_v52  ;;  %v6041_v23 = vpop.f32.mrb[29].mxu0  ;;  %v1061_v24 = vpop.f32.mrb[28].mxu1  ;;  %6497 = vmatprep.subr.bf16.mxu1 %v7268_v2 }
 0x151   : > { %v902_v26 = vpop.f32.mrb[30].mxu0  ;;  %v6077_v27 = vpop.f32.mrb[29].mxu1 }
 0x152   : > { %v927_v30 = vadd.f32 %v902_v26, %v8125_v58  ;;  %v8252_v32 = vadd.f32 %v1061_v24, %v926_v20  ;;  %v6042_v55 = vpop.f32.mrb[31].mxu0  ;;  %v1064_v33 = vpop.f32.mrb[30].mxu1  ;;  %6462 = vmatpush3.bf16.msra.mxu0 %v7129_v17  ;;  %v2714_v58 = vld [vmem:[%s7371_s20 + $0xc] sm:$0xff]  ;;  %v7139_v17 = vld [vmem:[%s9273_s4 + $0x458] sm:$0xff]   ;;  %v7138_v27 = vld [vmem:[%s9273_s4 + $0x420] sm:$0xff]  }
 0x153   : > { %v6078_v34 = vpop.f32.mrb[31].mxu1  ;;  %6498 = vmatpush3.bf16.msra.mxu1 %v7130_v19  ;;  %6519 = vmatprep.subr.bf16.mxu0 %v7268_v2  ;;  %v2724_v43 = vpack.c.bf16 %v2715_v35, %v2714_v58  ;;  %v7140_v35 = vld [vmem:[%s9273_s4 + $0x428] sm:$0xff]  }
 0x154   : > { %v8255_v52 = vadd.f32 %v1064_v33, %v927_v30  ;;  %6408 = vmatmul.mubr.bf16.gmra.mrb[136].mxu0 %v2404_v25  ;;  %6555 = vmatprep.subr.bf16.mxu1 %v7268_v2  ;;  %v7141_v34 = vld [vmem:[%s9273_s4 + $0x460] sm:$0xff]  }
 0x155   : > { %6444 = vmatmul.mubr.bf16.gmra.mrb[136].mxu1 %v2566_v29  ;;  %6463 = vmatprep.mubr.msk.bf16.mxu0 %vm7269_vm0, %v7268_v2 }
 0x156   : > { %6499 = vmatprep.mubr.msk.bf16.mxu1 %vm7269_vm0, %v7268_v2 }
 0x157   : > { %v907_v38 = vpop.f32.mrb[32].mxu0 }
 0x158   : > { %v928_v39 = vadd.f32 %v907_v38, %v8139_v8  ;;  %v6045_v41 = vpop.f32.mrb[33].mxu0  ;;  %v1069_v42 = vpop.f32.mrb[32].mxu1  ;;  %v7134_v8 = vld [vmem:[%s9273_s4 + $0x440] sm:$0xff]  }
 0x159   : > { %v910_v44 = vpop.f32.mrb[34].mxu0  ;;  %v6081_v45 = vpop.f32.mrb[33].mxu1 }
 0x15a   : > { %v929_v49 = vadd.f32 %v910_v44, %v8144_v14  ;;  %v8270_v50 = vadd.f32 %v1069_v42, %v928_v39  ;;  %v6046_v9 = vpop.f32.mrb[35].mxu0  ;;  %v1072_v1 = vpop.f32.mrb[34].mxu1  ;;  %v2879_v14 = vld [vmem:[%s7371_s20 + $0x2c] sm:$0xff] }
 0x15b   : > { %v6082_v21 = vpop.f32.mrb[35].mxu1  ;;  %v2887_v6 = vpack.c.bf16 %v2879_v14, %v2717_v57  ;;  %v7143_v39 = vld [vmem:[%s9273_s4 + $0x468] sm:$0xff]  }
 0x15c   : > { %v8275_v15 = vadd.f32 %v1072_v1, %v929_v49  ;;  %6464 = vmatmul.mubr.bf16.vlgmr.msra.gmra.mrb[140].mxu0 %v2724_v43 }
 0x15d   : > { %6520 = vmatpush3.bf16.msra.mxu0 %v7131_v47  ;;  %6500 = vmatmul.mubr.bf16.vlgmr.msra.gmra.mrb[140].mxu1 %v2886_v48 }
 0x15e   : > { %6521 = vmatprep.subr.bf16.mxu0 %v7268_v2  ;;  %6467 = vmatprep.mubr.msk.bf16.mxu0 %vm7269_vm0, %v7268_v2 }
 0x15f   : > { %v915_v59 = vpop.f32.mrb[36].mxu0  ;;  %6503 = vmatprep.mubr.msk.bf16.mxu1 %vm7269_vm0, %v7268_v2  ;;  %6556 = vmatpush3.bf16.msra.mxu1 %v7134_v8 }
 0x160   : > { %v930_v61 = vadd.f32 %v915_v59, %v8165_v28  ;;  %v6049_v62 = vpop.f32.mrb[37].mxu0  ;;  %v1077_v63 = vpop.f32.mrb[36].mxu1  ;;  %6557 = vmatprep.subr.bf16.mxu1 %v7268_v2  ;;  %v2885_v59 = vld [vmem:[%s7371_s20 + $0x5c] sm:$0x3f] }
 0x161   : > { %v918_v4 = vpop.f32.mrb[38].mxu0  ;;  %v6085_v5 = vpop.f32.mrb[37].mxu1  ;;  %6522 = vmatpush3.bf16.msra.mxu0 %v7132_v56  ;;  %v7144_v56 = vld [vmem:[%s9273_s4 + $0x470] sm:$0xff]   ;;  %v7146_v62 = vld [vmem:[%s9273_s4 + $0x478] sm:$0xff]  }
 0x162   : > { %v931_v11 = vadd.f32 %v918_v4, %v8171_v0  ;;  %v8296_v31 = vadd.f32 %v1077_v63, %v930_v61  ;;  %v6050_v28 = vpop.f32.mrb[39].mxu0  ;;  %v1080_v22 = vpop.f32.mrb[38].mxu1  ;;  %6523 = vmatprep.subr.bf16.mxu0 %v7268_v2  ;;  %v2719_v0 = vld [vmem:[%s7371_s20 + $0x34] sm:$0xff] }
 0x163   : > { %v6086_v40 = vpop.f32.mrb[39].mxu1  ;;  %6558 = vmatpush3.bf16.msra.mxu1 %v7135_v60  ;;  %v2726_v23 = vpack.c.bf16 %v2719_v0, %v2879_v14  ;;  %v2888_v26 = vpack.c.bf16 %v2881_v54, %v2719_v0  ;;  %v2884_v14 = vld [vmem:[%s7371_s20 + $0x54] sm:$0xff] }
 0x164   : > { %v8302_v37 = vadd.f32 %v1080_v22, %v931_v11  ;;  %6468 = vmatmul.mubr.bf16.gmra.mrb[144].mxu0 %v2725_v3  ;;  %6559 = vmatprep.subr.bf16.mxu1 %v7268_v2  ;;  %v7145_v60 = vld [vmem:[%s9273_s4 + $0x438] sm:$0xff]   ;;  %v2890_v11 = vpack.c.bf16 %v2885_v59, %v2884_v14  ;;  %v7153_v14 = vld [vmem:[%s9273_s4 + $0x4d0] sm:$0xff]  }
 0x165   : > { %6504 = vmatmul.mubr.bf16.gmra.mrb[144].mxu1 %v2887_v6  ;;  %6524 = vmatpush3.bf16.msra.mxu0 %v7133_v7 }
 0x166   : > { %6471 = vmatprep.mubr.msk.bf16.mxu0 %vm7269_vm0, %v7268_v2  ;;  %6525 = vmatprep.subr.bf16.mxu0 %v7268_v2 }
 0x167   : > { %v1207_v16 = vpop.f32.mrb[40].mxu0  ;;  %6507 = vmatprep.mubr.msk.bf16.mxu1 %vm7269_vm0, %v7268_v2  ;;  %6560 = vmatpush3.bf16.msra.mxu1 %v7137_v12 }
 0x168   : > { %v1246_v18 = vadd.f32 %v1207_v16, %v8196_v51  ;;  %v6105_v19 = vpop.f32.mrb[41].mxu0  ;;  %v1369_v20 = vpop.f32.mrb[40].mxu1  ;;  %6561 = vmatprep.subr.bf16.mxu1 %v7268_v2  ;;  %v3201_v16 = vld [vmem:[%s7371_s20 + $0x1e] sm:$0xff] }
 0x169   : > { %v1210_v24 = vpop.f32.mrb[42].mxu0  ;;  %v6141_v25 = vpop.f32.mrb[41].mxu1  ;;  %6526 = vmatpush3.bf16.msra.mxu0 %v7136_v46  ;;  %v3039_v46 = vld [vmem:[%s7371_s20 + $0x1d] sm:$0xff] }
 0x16a   : > { %v1247_v29 = vadd.f32 %v1210_v24, %v8202_v53  ;;  %v8324_v30 = vadd.f32 %v1369_v20, %v1246_v18  ;;  %v6106_v51 = vpop.f32.mrb[43].mxu0  ;;  %v1372_v55 = vpop.f32.mrb[42].mxu1  ;;  %6527 = vmatprep.subr.bf16.mxu0 %v7268_v2  ;;  %v2721_v53 = vld [vmem:[%s7371_s20 + $0x44] sm:$0xff] }
 0x16b   : > { %v6142_v33 = vpop.f32.mrb[43].mxu1  ;;  %6562 = vmatpush3.bf16.msra.mxu1 %v7139_v17  ;;  %v2727_v44 = vpack.c.bf16 %v2721_v53, %v2881_v54  ;;  %v2889_v48 = vpack.c.bf16 %v2883_v36, %v2721_v53  ;;  %v3200_v54 = vld [vmem:[%s7371_s20 + $0x16] sm:$0xff] }
 0x16c   : > { %v8330_v58 = vadd.f32 %v1372_v55, %v1247_v29  ;;  %6472 = vmatmul.mubr.bf16.gmra.mrb[148].mxu0 %v2726_v23  ;;  %6563 = vmatprep.subr.bf16.mxu1 %v7268_v2 }
 0x16d   : > { %6508 = vmatmul.mubr.bf16.gmra.mrb[148].mxu1 %v2888_v26  ;;  %6528 = vmatpush3.bf16.msra.mxu0 %v7138_v27  ;;  %v7147_v26 = vld [vmem:[%s9273_s4 + $0x480] sm:$0xff]   ;;  %v3210_v27 = vpack.c.bf16 %v3201_v16, %v3200_v54 }
 0x16e   : > { %6475 = vmatprep.mubr.msk.bf16.mxu0 %vm7269_vm0, %v7268_v2  ;;  %6511 = vmatprep.mubr.msk.bf16.mxu1 %vm7269_vm0, %v7268_v2 }
 0x16f   : > { %v1215_v38 = vpop.f32.mrb[44].mxu0  ;;  %6529 = vmatprep.subr.bf16.mxu0 %v7268_v2  ;;  %6564 = vmatpush3.bf16.msra.mxu1 %v7141_v34  ;;  %v7150_v34 = vld [vmem:[%s9273_s4 + $0x4c0] sm:$0xff]  }
 0x170   : > { %v1248_v41 = vadd.f32 %v1215_v38, %v8222_v10  ;;  %v6109_v42 = vpop.f32.mrb[45].mxu0  ;;  %v1377_v43 = vpop.f32.mrb[44].mxu1  ;;  %6565 = vmatprep.subr.bf16.mxu1 %v7268_v2  ;;  %v7142_v10 = vld [vmem:[%s9273_s4 + $0x430] sm:$0xff]   ;;  %v3202_v38 = vld [vmem:[%s7371_s20 + $0x26] sm:$0xff] }
 0x171   : > { %v1218_v45 = vpop.f32.mrb[46].mxu0  ;;  %v6145_v47 = vpop.f32.mrb[45].mxu1  ;;  %6530 = vmatpush3.bf16.msra.mxu0 %v7140_v35  ;;  %v7148_v35 = vld [vmem:[%s9273_s4 + $0x488] sm:$0xff]  }
 0x172   : > { %v1249_v49 = vadd.f32 %v1218_v45, %v8231_v13  ;;  %v8349_v9 = vadd.f32 %v1377_v43, %v1248_v41  ;;  %v6110_v1 = vpop.f32.mrb[47].mxu0  ;;  %v1380_v21 = vpop.f32.mrb[46].mxu1  ;;  %6531 = vmatprep.subr.bf16.mxu0 %v7268_v2  ;;  %v2723_v13 = vld [vmem:[%s7371_s20 + $0x54] sm:$0x3f]  ;;  %v7151_v42 = vld [vmem:[%s9273_s4 + $0x4c8] sm:$0xff]  }
 0x173   : > { %v6146_v8 = vpop.f32.mrb[47].mxu1  ;;  %6566 = vmatpush3.bf16.msra.mxu1 %v7143_v39  ;;  %v2728_v5 = vpack.c.bf16 %v2723_v13, %v2883_v36  ;;  %v3041_v36 = vld [vmem:[%s7371_s20 + $0x2d] sm:$0xff] }
 0x174   : > { %v8358_v57 = vadd.f32 %v1380_v21, %v1249_v49  ;;  %6476 = vmatmul.mubr.bf16.gmra.mrb[152].mxu0 %v2727_v44  ;;  %6567 = vmatprep.subr.bf16.mxu1 %v7268_v2  ;;  %v3203_v39 = vld [vmem:[%s7371_s20 + $0x2e] sm:$0xff] }
 0x175   : > { %6512 = vmatmul.mubr.bf16.gmra.mrb[152].mxu1 %v2889_v48  ;;  %6479 = vmatprep.mubr.msk.bf16.mxu0 %vm7269_vm0, %v7268_v2  ;;  %v3211_v1 = vpack.c.bf16 %v3203_v39, %v3202_v38  ;;  %v7149_v21 = vld [vmem:[%s9273_s4 + $0x490] sm:$0xff]  }
 0x176   : > { %6532 = vmatpush3.bf16.msra.mxu0 %v7142_v10  ;;  %6515 = vmatprep.mubr.msk.bf16.mxu1 %vm7269_vm0, %v7268_v2 }
 0x177   : > { %v1223_v61 = vpop.f32.mrb[48].mxu0  ;;  %6533 = vmatprep.subr.bf16.mxu0 %v7268_v2  ;;  %6568 = vmatpush3.bf16.msra.mxu1 %v7144_v56 }
 0x178   : > { %v1250_v63 = vadd.f32 %v1223_v61, %v8252_v32  ;;  %v6113_v3 = vpop.f32.mrb[49].mxu0  ;;  %v1385_v4 = vpop.f32.mrb[48].mxu1  ;;  %6569 = vmatprep.subr.bf16.mxu1 %v7268_v2  ;;  %v7152_v61 = vld [vmem:[%s9273_s4 + $0x498] sm:$0xff]  }
 0x179   : > { %v1226_v6 = vpop.f32.mrb[50].mxu0  ;;  %v6149_v7 = vpop.f32.mrb[49].mxu1 }
 0x17a   : > { %v1251_v28 = vadd.f32 %v1226_v6, %v8255_v52  ;;  %v8378_v22 = vadd.f32 %v1385_v4, %v1250_v63  ;;  %v6114_v40 = vpop.f32.mrb[51].mxu0  ;;  %v1388_v12 = vpop.f32.mrb[50].mxu1  ;;  %6534 = vmatpush3.bf16.msra.mxu0 %v7145_v60  ;;  %v3038_v52 = vld [vmem:[%s7371_s20 + $0x15] sm:$0xff]  ;;  %v3043_v60 = vld [vmem:[%s7371_s20 + $0x3d] sm:$0xff] }
 0x17b   : > { %v6150_v32 = vpop.f32.mrb[51].mxu1  ;;  %6570 = vmatpush3.bf16.msra.mxu1 %v7146_v62  ;;  %6591 = vmatprep.subr.bf16.mxu0 %v7268_v2  ;;  %v3048_v23 = vpack.c.bf16 %v3039_v46, %v3038_v52  ;;  %v3204_v62 = vld [vmem:[%s7371_s20 + $0x36] sm:$0xff]  ;;  %v3205_v63 = vld [vmem:[%s7371_s20 + $0x3e] sm:$0xff] }
 0x17c   : > { %v8381_v0 = vadd.f32 %v1388_v12, %v1251_v28  ;;  %6480 = vmatmul.mubr.bf16.gmra.mrb[156].mxu0 %v2728_v5  ;;  %6627 = vmatprep.subr.bf16.mxu1 %v7268_v2  ;;  %v7155_v4 = vld [vmem:[%s9273_s4 + $0x4d8] sm:$0xff]   ;;  %v3212_v12 = vpack.c.bf16 %v3205_v63, %v3204_v62  ;;  %v7154_v32 = vld [vmem:[%s9273_s4 + $0x4a0] sm:$0xff]  }
 0x17d   : > { %6516 = vmatmul.mubr.bf16.gmra.mrb[156].mxu1 %v2890_v11  ;;  %6535 = vmatprep.mubr.msk.bf16.mxu0 %vm7269_vm0, %v7268_v2 }
 0x17e   : > { %6571 = vmatprep.mubr.msk.bf16.mxu1 %vm7269_vm0, %v7268_v2 }
 0x17f   : > { %v1231_v17 = vpop.f32.mrb[52].mxu0 }
 0x180   : > { %v1252_v18 = vadd.f32 %v1231_v17, %v8270_v50  ;;  %v6117_v19 = vpop.f32.mrb[53].mxu0  ;;  %v1393_v20 = vpop.f32.mrb[52].mxu1  ;;  %v7157_v17 = vld [vmem:[%s9273_s4 + $0x4e0] sm:$0xff]  }
 0x181   : > { %v1234_v24 = vpop.f32.mrb[54].mxu0  ;;  %v6153_v25 = vpop.f32.mrb[53].mxu1  ;;  %v3045_v19 = vld [vmem:[%s7371_s20 + $0x4d] sm:$0xff] }
 0x182   : > { %v1253_v29 = vadd.f32 %v1234_v24, %v8275_v15  ;;  %v8397_v51 = vadd.f32 %v1393_v20, %v1252_v18  ;;  %v6118_v55 = vpop.f32.mrb[55].mxu0  ;;  %v1396_v50 = vpop.f32.mrb[54].mxu1  ;;  %v3040_v15 = vld [vmem:[%s7371_s20 + $0x25] sm:$0xff]  ;;  %v3207_v24 = vld [vmem:[%s7371_s20 + $0x4e] sm:$0xff] }
 0x183   : > { %v6154_v33 = vpop.f32.mrb[55].mxu1  ;;  %v3049_v47 = vpack.c.bf16 %v3041_v36, %v3040_v15  ;;  %v7156_v20 = vld [vmem:[%s9273_s4 + $0x4a8] sm:$0xff]  }
 0x184   : > { %v8402_v53 = vadd.f32 %v1396_v50, %v1253_v29  ;;  %6536 = vmatmul.mubr.bf16.vlgmr.msra.gmra.mrb[160].mxu0 %v3048_v23  ;;  %v3206_v23 = vld [vmem:[%s7371_s20 + $0x46] sm:$0xff] }
 0x185   : > { %6592 = vmatpush3.bf16.msra.mxu0 %v7147_v26  ;;  %6572 = vmatmul.mubr.bf16.vlgmr.msra.gmra.mrb[160].mxu1 %v3210_v27  ;;  %v7159_v26 = vld [vmem:[%s9273_s4 + $0x4e8] sm:$0xff]  }
 0x186   : > { %6593 = vmatprep.subr.bf16.mxu0 %v7268_v2  ;;  %6539 = vmatprep.mubr.msk.bf16.mxu0 %vm7269_vm0, %v7268_v2 }
 0x187   : > { %v1239_v41 = vpop.f32.mrb[56].mxu0  ;;  %6575 = vmatprep.mubr.msk.bf16.mxu1 %vm7269_vm0, %v7268_v2  ;;  %6628 = vmatpush3.bf16.msra.mxu1 %v7150_v34 }
 0x188   : > { %v1254_v43 = vadd.f32 %v1239_v41, %v8296_v31  ;;  %v6121_v44 = vpop.f32.mrb[57].mxu0  ;;  %v1401_v45 = vpop.f32.mrb[56].mxu1  ;;  %6629 = vmatprep.subr.bf16.mxu1 %v7268_v2 }
 0x189   : > { %v1242_v48 = vpop.f32.mrb[58].mxu0  ;;  %v6157_v49 = vpop.f32.mrb[57].mxu1  ;;  %6594 = vmatpush3.bf16.msra.mxu0 %v7148_v35  ;;  %v3213_v35 = vpack.c.bf16 %v3207_v24, %v3206_v23  ;;  %v3047_v44 = vld [vmem:[%s7371_s20 + $0x5d] sm:$0x3f]  ;;  %v7164_v24 = vld [vmem:[%s9273_s4 + $0x508] sm:$0xff]  }
 0x18a   : > { %v1255_v10 = vadd.f32 %v1242_v48, %v8302_v37  ;;  %v8425_v8 = vadd.f32 %v1401_v45, %v1254_v43  ;;  %v6122_v31 = vpop.f32.mrb[59].mxu0  ;;  %v1404_v56 = vpop.f32.mrb[58].mxu1  ;;  %6595 = vmatprep.subr.bf16.mxu0 %v7268_v2  ;;  %v3042_v37 = vld [vmem:[%s7371_s20 + $0x35] sm:$0xff] }
 0x18b   : > { %v6158_v13 = vpop.f32.mrb[59].mxu1  ;;  %6630 = vmatpush3.bf16.msra.mxu1 %v7151_v42  ;;  %v3050_v11 = vpack.c.bf16 %v3043_v60, %v3042_v37  ;;  %v7160_v42 = vld [vmem:[%s9273_s4 + $0x4f0] sm:$0xff]   ;;  %v7161_v48 = vld [vmem:[%s9273_s4 + $0x4b8] sm:$0xff]  }
 0x18c   : > { %v8431_v59 = vadd.f32 %v1404_v56, %v1255_v10  ;;  %6540 = vmatmul.mubr.bf16.gmra.mrb[164].mxu0 %v3049_v47  ;;  %6631 = vmatprep.subr.bf16.mxu1 %v7268_v2  ;;  %v3208_v45 = vld [vmem:[%s7371_s20 + $0x56] sm:$0xff]  ;;  %v3209_v47 = vld [vmem:[%s7371_s20 + $0x5e] sm:$0x3f] }
 0x18d   : > { %6576 = vmatmul.mubr.bf16.gmra.mrb[164].mxu1 %v3211_v1  ;;  %6596 = vmatpush3.bf16.msra.mxu0 %v7149_v21  ;;  %v7162_v1 = vld [vmem:[%s9273_s4 + $0x4f8] sm:$0xff]   ;;  %v3214_v37 = vpack.c.bf16 %v3209_v47, %v3208_v45  ;;  %v7169_v45 = vld [vmem:[%s9273_s4 + $0x550] sm:$0xff]  }
 0x18e   : > { %6543 = vmatprep.mubr.msk.bf16.mxu0 %vm7269_vm0, %v7268_v2  ;;  %6597 = vmatprep.subr.bf16.mxu0 %v7268_v2 }
 0x18f   : > { %v1531_v3 = vpop.f32.mrb[60].mxu0  ;;  %6579 = vmatprep.mubr.msk.bf16.mxu1 %vm7269_vm0, %v7268_v2  ;;  %6632 = vmatpush3.bf16.msra.mxu1 %v7153_v14 }
 0x190   : > { %v1570_v5 = vadd.f32 %v1531_v3, %v8324_v30  ;;  %v6177_v6 = vpop.f32.mrb[61].mxu0  ;;  %v1693_v7 = vpop.f32.mrb[60].mxu1  ;;  %6633 = vmatprep.subr.bf16.mxu1 %v7268_v2 }
 0x191   : > { %v1534_v28 = vpop.f32.mrb[62].mxu0  ;;  %v6213_v40 = vpop.f32.mrb[61].mxu1  ;;  %6598 = vmatpush3.bf16.msra.mxu0 %v7152_v61  ;;  %v3525_v6 = vld [vmem:[%s7377_s28 + $0x9] sm:$0xff] }
 0x192   : > { %v1571_v52 = vadd.f32 %v1534_v28, %v8330_v58  ;;  %v8455_v46 = vadd.f32 %v1693_v7, %v1570_v5  ;;  %v6178_v30 = vpop.f32.mrb[63].mxu0  ;;  %v1696_v54 = vpop.f32.mrb[62].mxu1  ;;  %6599 = vmatprep.subr.bf16.mxu0 %v7268_v2  ;;  %v3044_v58 = vld [vmem:[%s7371_s20 + $0x45] sm:$0xff] }
 0x193   : > { %v6214_v16 = vpop.f32.mrb[63].mxu1  ;;  %6634 = vmatpush3.bf16.msra.mxu1 %v7155_v4  ;;  %v3051_v50 = vpack.c.bf16 %v3045_v19, %v3044_v58  ;;  %v3363_v4 = vld [vmem:[%s7377_s28 + $0x8] sm:$0xff]  ;;  %v7163_v30 = vld [vmem:[%s9273_s4 + $0x500] sm:$0xff]  }
 0x194   : > { %v8461_v18 = vadd.f32 %v1696_v54, %v1571_v52  ;;  %6544 = vmatmul.mubr.bf16.gmra.mrb[168].mxu0 %v3050_v11  ;;  %6635 = vmatprep.subr.bf16.mxu1 %v7268_v2  ;;  %v3524_v5 = vld [vmem:[%s7377_s28 + $0x1] sm:$0xff] }
 0x195   : > { %6580 = vmatmul.mubr.bf16.gmra.mrb[168].mxu1 %v3212_v12  ;;  %6600 = vmatpush3.bf16.msra.mxu0 %v7154_v32  ;;  %v3534_v54 = vpack.c.bf16 %v3525_v6, %v3524_v5 }
 0x196   : > { %6547 = vmatprep.mubr.msk.bf16.mxu0 %vm7269_vm0, %v7268_v2  ;;  %6583 = vmatprep.mubr.msk.bf16.mxu1 %vm7269_vm0, %v7268_v2 }
 0x197   : > { %v1539_v25 = vpop.f32.mrb[64].mxu0  ;;  %6601 = vmatprep.subr.bf16.mxu0 %v7268_v2  ;;  %6636 = vmatpush3.bf16.msra.mxu1 %v7157_v17 }
 0x198   : > { %v1572_v27 = vadd.f32 %v1539_v25, %v8349_v9  ;;  %v6181_v29 = vpop.f32.mrb[65].mxu0  ;;  %v1701_v55 = vpop.f32.mrb[64].mxu1  ;;  %6637 = vmatprep.subr.bf16.mxu1 %v7268_v2  ;;  %v7158_v9 = vld [vmem:[%s9273_s4 + $0x4b0] sm:$0xff]   ;;  %v3365_v25 = vld [vmem:[%s7377_s28 + $0x18] sm:$0xff] }
 0x199   : > { %v1542_v33 = vpop.f32.mrb[66].mxu0  ;;  %v6217_v34 = vpop.f32.mrb[65].mxu1  ;;  %6602 = vmatpush3.bf16.msra.mxu0 %v7156_v20  ;;  %v7166_v20 = vld [vmem:[%s9273_s4 + $0x540] sm:$0xff]  }
 0x19a   : > { %v1573_v15 = vadd.f32 %v1542_v33, %v8358_v57  ;;  %v8482_v36 = vadd.f32 %v1701_v55, %v1572_v27  ;;  %v6182_v38 = vpop.f32.mrb[67].mxu0  ;;  %v1704_v39 = vpop.f32.mrb[66].mxu1  ;;  %6603 = vmatprep.subr.bf16.mxu0 %v7268_v2  ;;  %v3046_v57 = vld [vmem:[%s7371_s20 + $0x55] sm:$0xff]  ;;  %v7167_v55 = vld [vmem:[%s9273_s4 + $0x548] sm:$0xff]  }
 0x19b   : > { %v6218_v41 = vpop.f32.mrb[67].mxu1  ;;  %6638 = vmatpush3.bf16.msra.mxu1 %v7159_v26  ;;  %v3052_v56 = vpack.c.bf16 %v3047_v44, %v3046_v57  ;;  %v3526_v26 = vld [vmem:[%s7377_s28 + $0x11] sm:$0xff]  ;;  %v3527_v27 = vld [vmem:[%s7377_s28 + $0x19] sm:$0xff] }
 0x19c   : > { %v8491_v43 = vadd.f32 %v1704_v39, %v1573_v15  ;;  %6548 = vmatmul.mubr.bf16.gmra.mrb[172].mxu0 %v3051_v50  ;;  %6639 = vmatprep.subr.bf16.mxu1 %v7268_v2  ;;  %v3535_v39 = vpack.c.bf16 %v3527_v27, %v3526_v26 }
 0x19d   : > { %6584 = vmatmul.mubr.bf16.gmra.mrb[172].mxu1 %v3213_v35  ;;  %6551 = vmatprep.mubr.msk.bf16.mxu0 %vm7269_vm0, %v7268_v2 }
 0x19e   : > { %6604 = vmatpush3.bf16.msra.mxu0 %v7158_v9  ;;  %6587 = vmatprep.mubr.msk.bf16.mxu1 %vm7269_vm0, %v7268_v2  ;;  %v7165_v9 = vld [vmem:[%s9273_s4 + $0x510] sm:$0xff]  }
 0x19f   : > { %v1547_v49 = vpop.f32.mrb[68].mxu0  ;;  %6605 = vmatprep.subr.bf16.mxu0 %v7268_v2  ;;  %6640 = vmatpush3.bf16.msra.mxu1 %v7160_v42 }
 0x1a0   : > { %v1574_v21 = vadd.f32 %v1547_v49, %v8378_v22  ;;  %v6185_v10 = vpop.f32.mrb[69].mxu0  ;;  %v1709_v31 = vpop.f32.mrb[68].mxu1  ;;  %6641 = vmatprep.subr.bf16.mxu1 %v7268_v2  ;;  %v7168_v49 = vld [vmem:[%s9273_s4 + $0x518] sm:$0xff]  }
 0x1a1   : > { %v1550_v13 = vpop.f32.mrb[70].mxu0  ;;  %v6221_v14 = vpop.f32.mrb[69].mxu1 }
 0x1a2   : > { %v1575_v60 = vadd.f32 %v1550_v13, %v8381_v0  ;;  %v8512_v61 = vadd.f32 %v1709_v31, %v1574_v21  ;;  %v6186_v62 = vpop.f32.mrb[71].mxu0  ;;  %v1712_v63 = vpop.f32.mrb[70].mxu1  ;;  %6606 = vmatpush3.bf16.msra.mxu0 %v7161_v48  ;;  %v3362_v0 = vld [vmem:[%s7377_s28] sm:$0xff]  ;;  %v3367_v48 = vld [vmem:[%s7377_s28 + $0x28] sm:$0xff]  ;;  %v7171_v31 = vld [vmem:[%s9273_s4 + $0x558] sm:$0xff]  }
 0x1a3   : > { %v6222_v22 = vpop.f32.mrb[71].mxu1  ;;  %6642 = vmatpush3.bf16.msra.mxu1 %v7162_v1  ;;  %6663 = vmatprep.subr.bf16.mxu0 %v7268_v2  ;;  %v3372_v12 = vpack.c.bf16 %v3363_v4, %v3362_v0  ;;  %v3528_v1 = vld [vmem:[%s7377_s28 + $0x21] sm:$0xff]  ;;  %v3529_v21 = vld [vmem:[%s7377_s28 + $0x29] sm:$0xff] }
 0x1a4   : > { %v8515_v3 = vadd.f32 %v1712_v63, %v1575_v60  ;;  %6552 = vmatmul.mubr.bf16.gmra.mrb[176].mxu0 %v3052_v56  ;;  %6699 = vmatprep.subr.bf16.mxu1 %v7268_v2  ;;  %v3536_v63 = vpack.c.bf16 %v3529_v21, %v3528_v1  ;;  %v7170_v22 = vld [vmem:[%s9273_s4 + $0x520] sm:$0xff]  }
 0x1a5   : > { %6588 = vmatmul.mubr.bf16.gmra.mrb[176].mxu1 %v3214_v37  ;;  %6607 = vmatprep.mubr.msk.bf16.mxu0 %vm7269_vm0, %v7268_v2 }
 0x1a6   : > { %6643 = vmatprep.mubr.msk.bf16.mxu1 %vm7269_vm0, %v7268_v2 }
 0x1a7   : > { %v1555_v7 = vpop.f32.mrb[72].mxu0 }
 0x1a8   : > { %v1576_v11 = vadd.f32 %v1555_v7, %v8397_v51  ;;  %v6189_v28 = vpop.f32.mrb[73].mxu0  ;;  %v1717_v40 = vpop.f32.mrb[72].mxu1  ;;  %v7173_v7 = vld [vmem:[%s9273_s4 + $0x560] sm:$0xff]  }
 0x1a9   : > { %v1558_v32 = vpop.f32.mrb[74].mxu0  ;;  %v6225_v52 = vpop.f32.mrb[73].mxu1  ;;  %v3369_v28 = vld [vmem:[%s7377_s28 + $0x38] sm:$0xff] }
 0x1aa   : > { %v1577_v16 = vadd.f32 %v1558_v32, %v8402_v53  ;;  %v8531_v17 = vadd.f32 %v1717_v40, %v1576_v11  ;;  %v6190_v58 = vpop.f32.mrb[75].mxu0  ;;  %v1720_v51 = vpop.f32.mrb[74].mxu1  ;;  %v3364_v53 = vld [vmem:[%s7377_s28 + $0x10] sm:$0xff]  ;;  %v7172_v40 = vld [vmem:[%s9273_s4 + $0x528] sm:$0xff]   ;;  %v3531_v32 = vld [vmem:[%s7377_s28 + $0x39] sm:$0xff] }
 0x1ab   : > { %v6226_v19 = vpop.f32.mrb[75].mxu1  ;;  %v3373_v35 = vpack.c.bf16 %v3365_v25, %v3364_v53 }
 0x1ac   : > { %v8536_v23 = vadd.f32 %v1720_v51, %v1577_v16  ;;  %6608 = vmatmul.mubr.bf16.vlgmr.msra.gmra.mrb[180].mxu0 %v3372_v12  ;;  %v3530_v12 = vld [vmem:[%s7377_s28 + $0x31] sm:$0xff] }
 0x1ad   : > { %6664 = vmatpush3.bf16.msra.mxu0 %v7163_v30  ;;  %6644 = vmatmul.mubr.bf16.vlgmr.msra.gmra.mrb[180].mxu1 %v3534_v54  ;;  %v7175_v30 = vld [vmem:[%s9273_s4 + $0x568] sm:$0xff]  }
 0x1ae   : > { %6665 = vmatprep.subr.bf16.mxu0 %v7268_v2  ;;  %6611 = vmatprep.mubr.msk.bf16.mxu0 %vm7269_vm0, %v7268_v2 }
 0x1af   : > { %v1563_v29 = vpop.f32.mrb[76].mxu0  ;;  %6647 = vmatprep.mubr.msk.bf16.mxu1 %vm7269_vm0, %v7268_v2  ;;  %6700 = vmatpush3.bf16.msra.mxu1 %v7166_v20 }
 0x1b0   : > { %v1578_v50 = vadd.f32 %v1563_v29, %v8425_v8  ;;  %v6193_v33 = vpop.f32.mrb[77].mxu0  ;;  %v1725_v34 = vpop.f32.mrb[76].mxu1  ;;  %6701 = vmatprep.subr.bf16.mxu1 %v7268_v2 }
 0x1b1   : > { %v1566_v15 = vpop.f32.mrb[78].mxu0  ;;  %v6229_v38 = vpop.f32.mrb[77].mxu1  ;;  %6666 = vmatpush3.bf16.msra.mxu0 %v7164_v24  ;;  %v3537_v24 = vpack.c.bf16 %v3531_v32, %v3530_v12  ;;  %v3371_v33 = vld [vmem:[%s7377_s28 + $0x48] sm:$0x3f]  ;;  %v3689_v32 = vld [vmem:[%s7377_s28 + $0x1a] sm:$0xff] }
 0x1b2   : > { %v1579_v41 = vadd.f32 %v1566_v15, %v8431_v59  ;;  %v8559_v42 = vadd.f32 %v1725_v34, %v1578_v50  ;;  %v6194_v8 = vpop.f32.mrb[79].mxu0  ;;  %v1728_v57 = vpop.f32.mrb[78].mxu1  ;;  %6667 = vmatprep.subr.bf16.mxu0 %v7268_v2  ;;  %v3366_v59 = vld [vmem:[%s7377_s28 + $0x20] sm:$0xff]  ;;  %v7177_v15 = vld [vmem:[%s9273_s4 + $0x538] sm:$0xff]   ;;  %v7180_v12 = vld [vmem:[%s9273_s4 + $0x588] sm:$0xff]  }
 0x1b3   : > { %v6230_v44 = vpop.f32.mrb[79].mxu1  ;;  %6702 = vmatpush3.bf16.msra.mxu1 %v7167_v55  ;;  %v3374_v37 = vpack.c.bf16 %v3367_v48, %v3366_v59  ;;  %v7176_v55 = vld [vmem:[%s9273_s4 + $0x570] sm:$0xff]   ;;  %v3532_v34 = vld [vmem:[%s7377_s28 + $0x41] sm:$0xff] }
 0x1b4   : > { %v8565_v47 = vadd.f32 %v1728_v57, %v1579_v41  ;;  %6612 = vmatmul.mubr.bf16.gmra.mrb[184].mxu0 %v3373_v35  ;;  %6703 = vmatprep.subr.bf16.mxu1 %v7268_v2  ;;  %v3533_v35 = vld [vmem:[%s7377_s28 + $0x49] sm:$0x3f] }
 0x1b5   : > { %6648 = vmatmul.mubr.bf16.gmra.mrb[184].mxu1 %v3535_v39  ;;  %6668 = vmatpush3.bf16.msra.mxu0 %v7165_v9  ;;  %v7178_v39 = vld [vmem:[%s9273_s4 + $0x578] sm:$0xff]   ;;  %v3538_v59 = vpack.c.bf16 %v3533_v35, %v3532_v34 }
 0x1b6   : > { %6615 = vmatprep.mubr.msk.bf16.mxu0 %vm7269_vm0, %v7268_v2  ;;  %6669 = vmatprep.subr.bf16.mxu0 %v7268_v2  ;;  %v3853_v34 = vld [vmem:[%s7377_s28 + $0x32] sm:$0xff] }
 0x1b7   : > { %v1855_v10 = vpop.f32.mrb[80].mxu0  ;;  %6651 = vmatprep.mubr.msk.bf16.mxu1 %vm7269_vm0, %v7268_v2  ;;  %6704 = vmatpush3.bf16.msra.mxu1 %v7169_v45 }
 0x1b8   : > { %v1894_v56 = vadd.f32 %v1855_v10, %v8455_v46  ;;  %v6249_v13 = vpop.f32.mrb[81].mxu0  ;;  %v2017_v14 = vpop.f32.mrb[80].mxu1  ;;  %6705 = vmatprep.subr.bf16.mxu1 %v7268_v2 }
 0x1b9   : > { %v1858_v60 = vpop.f32.mrb[82].mxu0  ;;  %v6285_v62 = vpop.f32.mrb[81].mxu1  ;;  %6670 = vmatpush3.bf16.msra.mxu0 %v7168_v49 }
 0x1ba   : > { %v1895_v0 = vadd.f32 %v1858_v60, %v8461_v18  ;;  %v8589_v4 = vadd.f32 %v2017_v14, %v1894_v56  ;;  %v6250_v46 = vpop.f32.mrb[83].mxu0  ;;  %v2020_v5 = vpop.f32.mrb[82].mxu1  ;;  %6671 = vmatprep.subr.bf16.mxu0 %v7268_v2  ;;  %v3368_v18 = vld [vmem:[%s7377_s28 + $0x30] sm:$0xff] }
 0x1bb   : > { %v6286_v6 = vpop.f32.mrb[83].mxu1  ;;  %6706 = vmatpush3.bf16.msra.mxu1 %v7171_v31  ;;  %v3375_v51 = vpack.c.bf16 %v3369_v28, %v3368_v18  ;;  %v3687_v31 = vld [vmem:[%s7377_s28 + $0xa] sm:$0xff]  ;;  %v3849_v56 = vld [vmem:[%s7377_s28 + $0x12] sm:$0xff] }
 0x1bc   : > { %v8595_v11 = vadd.f32 %v2020_v5, %v1895_v0  ;;  %6616 = vmatmul.mubr.bf16.gmra.mrb[188].mxu0 %v3374_v37  ;;  %6707 = vmatprep.subr.bf16.mxu1 %v7268_v2  ;;  %v7179_v0 = vld [vmem:[%s9273_s4 + $0x580] sm:$0xff]   ;;  %v3858_v46 = vpack.c.bf16 %v3849_v56, %v3687_v31 }
 0x1bd   : > { %6652 = vmatmul.mubr.bf16.gmra.mrb[188].mxu1 %v3536_v63  ;;  %6672 = vmatpush3.bf16.msra.mxu0 %v7170_v22 }
 0x1be   : > { %6619 = vmatprep.mubr.msk.bf16.mxu0 %vm7269_vm0, %v7268_v2  ;;  %6655 = vmatprep.mubr.msk.bf16.mxu1 %vm7269_vm0, %v7268_v2 }
 0x1bf   : > { %v1863_v52 = vpop.f32.mrb[84].mxu0  ;;  %6673 = vmatprep.subr.bf16.mxu0 %v7268_v2  ;;  %6708 = vmatpush3.bf16.msra.mxu1 %v7173_v7 }
 0x1c0   : > { %v1896_v54 = vadd.f32 %v1863_v52, %v8482_v36  ;;  %v6253_v16 = vpop.f32.mrb[85].mxu0  ;;  %v2025_v58 = vpop.f32.mrb[84].mxu1  ;;  %6709 = vmatprep.subr.bf16.mxu1 %v7268_v2  ;;  %v7174_v36 = vld [vmem:[%s9273_s4 + $0x530] sm:$0xff]  }
 0x1c1   : > { %v1866_v19 = vpop.f32.mrb[86].mxu0  ;;  %v6289_v20 = vpop.f32.mrb[85].mxu1  ;;  %6674 = vmatpush3.bf16.msra.mxu0 %v7172_v40 }
 0x1c2   : > { %v1897_v53 = vadd.f32 %v1866_v19, %v8491_v43  ;;  %v8616_v25 = vadd.f32 %v2025_v58, %v1896_v54  ;;  %v6254_v26 = vpop.f32.mrb[87].mxu0  ;;  %v2028_v27 = vpop.f32.mrb[86].mxu1  ;;  %6675 = vmatprep.subr.bf16.mxu0 %v7268_v2  ;;  %v3370_v43 = vld [vmem:[%s7377_s28 + $0x40] sm:$0xff] }
 0x1c3   : > { %v6290_v29 = vpop.f32.mrb[87].mxu1  ;;  %6710 = vmatpush3.bf16.msra.mxu1 %v7175_v30  ;;  %v3376_v57 = vpack.c.bf16 %v3371_v33, %v3370_v43  ;;  %v7183_v30 = vld [vmem:[%s9273_s4 + $0x5c8] sm:$0xff]   ;;  %v7184_v33 = vld [vmem:[%s9273_s4 + $0x598] sm:$0xff]  }
 0x1c4   : > { %v8625_v50 = vadd.f32 %v2028_v27, %v1897_v53  ;;  %6620 = vmatmul.mubr.bf16.gmra.mrb[192].mxu0 %v3375_v51  ;;  %6711 = vmatprep.subr.bf16.mxu1 %v7268_v2  ;;  %v3697_v51 = vpack.c.bf16 %v3689_v32, %v3849_v56  ;;  %v7181_v53 = vld [vmem:[%s9273_s4 + $0x590] sm:$0xff]   ;;  %v3855_v56 = vld [vmem:[%s7377_s28 + $0x42] sm:$0xff] }
 0x1c5   : > { %6656 = vmatmul.mubr.bf16.gmra.mrb[192].mxu1 %v3537_v24  ;;  %6623 = vmatprep.mubr.msk.bf16.mxu0 %vm7269_vm0, %v7268_v2 }
 0x1c6   : > { %6676 = vmatpush3.bf16.msra.mxu0 %v7174_v36  ;;  %6659 = vmatprep.mubr.msk.bf16.mxu1 %vm7269_vm0, %v7268_v2 }
 0x1c7   : > { %v1871_v38 = vpop.f32.mrb[88].mxu0  ;;  %6677 = vmatprep.subr.bf16.mxu0 %v7268_v2  ;;  %6712 = vmatpush3.bf16.msra.mxu1 %v7176_v55  ;;  %v7185_v55 = vld [vmem:[%s9273_s4 + $0x5d0] sm:$0xff]  }
 0x1c8   : > { %v1898_v9 = vadd.f32 %v1871_v38, %v8512_v61  ;;  %v6257_v41 = vpop.f32.mrb[89].mxu0  ;;  %v2033_v8 = vpop.f32.mrb[88].mxu1  ;;  %6713 = vmatprep.subr.bf16.mxu1 %v7268_v2 }
 0x1c9   : > { %v1874_v44 = vpop.f32.mrb[90].mxu0  ;;  %v6293_v45 = vpop.f32.mrb[89].mxu1 }
 0x1ca   : > { %v1899_v48 = vadd.f32 %v1874_v44, %v8515_v3  ;;  %v8646_v49 = vadd.f32 %v2033_v8, %v1898_v9  ;;  %v6258_v1 = vpop.f32.mrb[91].mxu0  ;;  %v2036_v21 = vpop.f32.mrb[90].mxu1  ;;  %6678 = vmatpush3.bf16.msra.mxu0 %v7177_v15  ;;  %v3686_v3 = vld [vmem:[%s7377_s28 + $0x2] sm:$0xff]  ;;  %v7187_v15 = vld [vmem:[%s9273_s4 + $0x5d8] sm:$0xff]  }
 0x1cb   : > { %v6294_v10 = vpop.f32.mrb[91].mxu1  ;;  %6714 = vmatpush3.bf16.msra.mxu1 %v7178_v39  ;;  %6735 = vmatprep.subr.bf16.mxu0 %v7268_v2  ;;  %v3696_v62 = vpack.c.bf16 %v3687_v31, %v3686_v3  ;;  %v7186_v45 = vld [vmem:[%s9273_s4 + $0x5a0] sm:$0xff]   ;;  %v7188_v31 = vld [vmem:[%s9273_s4 + $0x5a8] sm:$0xff]  }
 0x1cc   : > { %v8649_v61 = vadd.f32 %v2036_v21, %v1899_v48  ;;  %6624 = vmatmul.mubr.bf16.gmra.mrb[196].mxu0 %v3376_v57  ;;  %6771 = vmatprep.subr.bf16.mxu1 %v7268_v2  ;;  %v7189_v10 = vld [vmem:[%s9273_s4 + $0x5e0] sm:$0xff]  }
 0x1cd   : > { %6660 = vmatmul.mubr.bf16.gmra.mrb[196].mxu1 %v3538_v59  ;;  %6679 = vmatprep.mubr.msk.bf16.mxu0 %vm7269_vm0, %v7268_v2 }
 0x1ce   : > { %6715 = vmatprep.mubr.msk.bf16.mxu1 %vm7269_vm0, %v7268_v2 }
 0x1cf   : > { %v1879_v13 = vpop.f32.mrb[92].mxu0 }
 0x1d0   : > { %v1900_v14 = vadd.f32 %v1879_v13, %v8531_v17  ;;  %v6261_v37 = vpop.f32.mrb[93].mxu0  ;;  %v2041_v60 = vpop.f32.mrb[92].mxu1  ;;  %v7182_v17 = vld [vmem:[%s9273_s4 + $0x5c0] sm:$0xff]  }
 0x1d1   : > { %v1882_v63 = vpop.f32.mrb[94].mxu0  ;;  %v6297_v22 = vpop.f32.mrb[93].mxu1 }
 0x1d2   : > { %v1901_v5 = vadd.f32 %v1882_v63, %v8536_v23  ;;  %v8664_v6 = vadd.f32 %v2041_v60, %v1900_v14  ;;  %v6262_v7 = vpop.f32.mrb[95].mxu0  ;;  %v2044_v18 = vpop.f32.mrb[94].mxu1  ;;  %v3851_v23 = vld [vmem:[%s7377_s28 + $0x22] sm:$0xff] }
 0x1d3   : > { %v6298_v28 = vpop.f32.mrb[95].mxu1  ;;  %v3859_v24 = vpack.c.bf16 %v3851_v23, %v3689_v32  ;;  %v7191_v14 = vld [vmem:[%s9273_s4 + $0x5e8] sm:$0xff]  }
 0x1d4   : > { %v8669_v40 = vadd.f32 %v2044_v18, %v1901_v5  ;;  %6680 = vmatmul.mubr.bf16.vlgmr.msra.gmra.mrb[200].mxu0 %v3696_v62 }
 0x1d5   : > { %6736 = vmatpush3.bf16.msra.mxu0 %v7179_v0  ;;  %6716 = vmatmul.mubr.bf16.vlgmr.msra.gmra.mrb[200].mxu1 %v3858_v46 }
 0x1d6   : > { %6737 = vmatprep.subr.bf16.mxu0 %v7268_v2  ;;  %6683 = vmatprep.mubr.msk.bf16.mxu0 %vm7269_vm0, %v7268_v2 }
 0x1d7   : > { %v1887_v52 = vpop.f32.mrb[96].mxu0  ;;  %6719 = vmatprep.mubr.msk.bf16.mxu1 %vm7269_vm0, %v7268_v2  ;;  %6772 = vmatpush3.bf16.msra.mxu1 %v7182_v17 }
 0x1d8   : > { %v1902_v54 = vadd.f32 %v1887_v52, %v8559_v42  ;;  %v6265_v16 = vpop.f32.mrb[97].mxu0  ;;  %v2049_v58 = vpop.f32.mrb[96].mxu1  ;;  %6773 = vmatprep.subr.bf16.mxu1 %v7268_v2  ;;  %v3857_v52 = vld [vmem:[%s7377_s28 + $0x52] sm:$0x3f] }
 0x1d9   : > { %v1890_v19 = vpop.f32.mrb[98].mxu0  ;;  %v6301_v20 = vpop.f32.mrb[97].mxu1  ;;  %6738 = vmatpush3.bf16.msra.mxu0 %v7180_v12  ;;  %v7192_v12 = vld [vmem:[%s9273_s4 + $0x5f0] sm:$0xff]   ;;  %v7194_v16 = vld [vmem:[%s9273_s4 + $0x5f8] sm:$0xff]  }
 0x1da   : > { %v1903_v26 = vadd.f32 %v1890_v19, %v8565_v47  ;;  %v8690_v27 = vadd.f32 %v2049_v58, %v1902_v54  ;;  %v6266_v42 = vpop.f32.mrb[99].mxu0  ;;  %v2052_v36 = vpop.f32.mrb[98].mxu1  ;;  %6739 = vmatprep.subr.bf16.mxu0 %v7268_v2  ;;  %v3691_v47 = vld [vmem:[%s7377_s28 + $0x2a] sm:$0xff] }
 0x1db   : > { %v6302_v29 = vpop.f32.mrb[99].mxu1  ;;  %6774 = vmatpush3.bf16.msra.mxu1 %v7183_v30  ;;  %v3698_v41 = vpack.c.bf16 %v3691_v47, %v3851_v23  ;;  %v3860_v44 = vpack.c.bf16 %v3853_v34, %v3691_v47  ;;  %v3856_v23 = vld [vmem:[%s7377_s28 + $0x4a] sm:$0xff]  ;;  %v7193_v30 = vld [vmem:[%s9273_s4 + $0x5b8] sm:$0xff]  }
 0x1dc   : > { %v8696_v43 = vadd.f32 %v2052_v36, %v1903_v26  ;;  %6684 = vmatmul.mubr.bf16.gmra.mrb[204].mxu0 %v3697_v51  ;;  %6775 = vmatprep.subr.bf16.mxu1 %v7268_v2  ;;  %v3862_v26 = vpack.c.bf16 %v3857_v52, %v3856_v23  ;;  %v7201_v23 = vld [vmem:[%s9273_s4 + $0x650] sm:$0xff]  }
 0x1dd   : > { %6720 = vmatmul.mubr.bf16.gmra.mrb[204].mxu1 %v3859_v24  ;;  %6740 = vmatpush3.bf16.msra.mxu0 %v7181_v53 }
 0x1de   : > { %6687 = vmatprep.mubr.msk.bf16.mxu0 %vm7269_vm0, %v7268_v2  ;;  %6741 = vmatprep.subr.bf16.mxu0 %v7268_v2 }
 0x1df   : > { %v2179_v35 = vpop.f32.mrb[100].mxu0  ;;  %6723 = vmatprep.mubr.msk.bf16.mxu1 %vm7269_vm0, %v7268_v2  ;;  %6776 = vmatpush3.bf16.msra.mxu1 %v7185_v55 }
 0x1e0   : > { %v2218_v38 = vadd.f32 %v2179_v35, %v8589_v4  ;;  %v6321_v39 = vpop.f32.mrb[101].mxu0  ;;  %v2341_v9 = vpop.f32.mrb[100].mxu1  ;;  %6777 = vmatprep.subr.bf16.mxu1 %v7268_v2  ;;  %v8786_v35 = vld [vmem:[%s7377_s28 + $0x14] sm:$0xff] }
 0x1e1   : > { %v2182_v8 = vpop.f32.mrb[102].mxu0  ;;  %v6357_v57 = vpop.f32.mrb[101].mxu1  ;;  %6742 = vmatpush3.bf16.msra.mxu0 %v7184_v33  ;;  %v4011_v33 = vld [vmem:[%s7377_s28 + $0x13] sm:$0xff] }
 0x1e2   : > { %v2219_v59 = vadd.f32 %v2182_v8, %v8595_v11  ;;  %v8718_v48 = vadd.f32 %v2341_v9, %v2218_v38  ;;  %v6322_v4 = vpop.f32.mrb[103].mxu0  ;;  %v2344_v1 = vpop.f32.mrb[102].mxu1  ;;  %6743 = vmatprep.subr.bf16.mxu0 %v7268_v2  ;;  %v3693_v11 = vld [vmem:[%s7377_s28 + $0x3a] sm:$0xff] }
 0x1e3   : > { %v6358_v21 = vpop.f32.mrb[103].mxu1  ;;  %6778 = vmatpush3.bf16.msra.mxu1 %v7187_v15  ;;  %v3699_v63 = vpack.c.bf16 %v3693_v11, %v3853_v34  ;;  %v3861_v46 = vpack.c.bf16 %v3855_v56, %v3693_v11  ;;  %v4172_v34 = vld [vmem:[%s7377_s28 + $0xc] sm:$0xff] }
 0x1e4   : > { %v8724_v3 = vadd.f32 %v2344_v1, %v2219_v59  ;;  %6688 = vmatmul.mubr.bf16.gmra.mrb[208].mxu0 %v3698_v41  ;;  %6779 = vmatprep.subr.bf16.mxu1 %v7268_v2 }
 0x1e5   : > { %6724 = vmatmul.mubr.bf16.gmra.mrb[208].mxu1 %v3860_v44  ;;  %6744 = vmatpush3.bf16.msra.mxu0 %v7186_v45  ;;  %v7195_v44 = vld [vmem:[%s9273_s4 + $0x600] sm:$0xff]   ;;  %v4182_v45 = vpack.c.bf16 %v8786_v35, %v4172_v34 }
 0x1e6   : > { %6691 = vmatprep.mubr.msk.bf16.mxu0 %vm7269_vm0, %v7268_v2  ;;  %6727 = vmatprep.mubr.msk.bf16.mxu1 %vm7269_vm0, %v7268_v2 }
 0x1e7   : > { %v2187_v13 = vpop.f32.mrb[104].mxu0  ;;  %6745 = vmatprep.subr.bf16.mxu0 %v7268_v2  ;;  %6780 = vmatpush3.bf16.msra.mxu1 %v7189_v10  ;;  %v7198_v10 = vld [vmem:[%s9273_s4 + $0x640] sm:$0xff]  }
 0x1e8   : > { %v2220_v37 = vadd.f32 %v2187_v13, %v8616_v25  ;;  %v6325_v60 = vpop.f32.mrb[105].mxu0  ;;  %v2349_v62 = vpop.f32.mrb[104].mxu1  ;;  %6781 = vmatprep.subr.bf16.mxu1 %v7268_v2  ;;  %v7190_v25 = vld [vmem:[%s9273_s4 + $0x5b0] sm:$0xff]   ;;  %v8810_v13 = vld [vmem:[%s7377_s28 + $0x1c] sm:$0xff] }
 0x1e9   : > { %v2190_v22 = vpop.f32.mrb[106].mxu0  ;;  %v6361_v0 = vpop.f32.mrb[105].mxu1  ;;  %6746 = vmatpush3.bf16.msra.mxu0 %v7188_v31  ;;  %v7196_v31 = vld [vmem:[%s9273_s4 + $0x608] sm:$0xff]  }
 0x1ea   : > { %v2221_v5 = vadd.f32 %v2190_v22, %v8625_v50  ;;  %v8743_v7 = vadd.f32 %v2349_v62, %v2220_v37  ;;  %v6326_v18 = vpop.f32.mrb[107].mxu0  ;;  %v2352_v28 = vpop.f32.mrb[106].mxu1  ;;  %6747 = vmatprep.subr.bf16.mxu0 %v7268_v2  ;;  %v3695_v50 = vld [vmem:[%s7377_s28 + $0x4a] sm:$0x3f] }
 0x1eb   : > { %v6362_v17 = vpop.f32.mrb[107].mxu1  ;;  %6782 = vmatpush3.bf16.msra.mxu1 %v7191_v14  ;;  %v3700_v20 = vpack.c.bf16 %v3695_v50, %v3855_v56  ;;  %v4013_v56 = vld [vmem:[%s7377_s28 + $0x23] sm:$0xff] }
 0x1ec   : > { %v8752_v32 = vadd.f32 %v2352_v28, %v2221_v5  ;;  %6692 = vmatmul.mubr.bf16.gmra.mrb[212].mxu0 %v3699_v63  ;;  %6783 = vmatprep.subr.bf16.mxu1 %v7268_v2  ;;  %v8813_v14 = vld [vmem:[%s7377_s28 + $0x24] sm:$0xff]  ;;  %v7197_v28 = vld [vmem:[%s9273_s4 + $0x610] sm:$0xff]  }
 0x1ed   : > { %6728 = vmatmul.mubr.bf16.gmra.mrb[212].mxu1 %v3861_v46  ;;  %6695 = vmatprep.mubr.msk.bf16.mxu0 %vm7269_vm0, %v7268_v2  ;;  %v7199_v60 = vld [vmem:[%s9273_s4 + $0x648] sm:$0xff]   ;;  %v4183_v18 = vpack.c.bf16 %v8813_v14, %v8810_v13 }
 0x1ee   : > { %6748 = vmatpush3.bf16.msra.mxu0 %v7190_v25  ;;  %6731 = vmatprep.mubr.msk.bf16.mxu1 %vm7269_vm0, %v7268_v2 }
 0x1ef   : > { %v2195_v54 = vpop.f32.mrb[108].mxu0  ;;  %6749 = vmatprep.subr.bf16.mxu0 %v7268_v2  ;;  %6784 = vmatpush3.bf16.msra.mxu1 %v7192_v12 }
 0x1f0   : > { %v2222_v58 = vadd.f32 %v2195_v54, %v8646_v49  ;;  %v6329_v51 = vpop.f32.mrb[109].mxu0  ;;  %v2357_v19 = vpop.f32.mrb[108].mxu1  ;;  %6785 = vmatprep.subr.bf16.mxu1 %v7268_v2  ;;  %v7200_v54 = vld [vmem:[%s9273_s4 + $0x618] sm:$0xff]  }
 0x1f1   : > { %v2198_v24 = vpop.f32.mrb[110].mxu0  ;;  %v6365_v53 = vpop.f32.mrb[109].mxu1 }
 0x1f2   : > { %v2223_v42 = vadd.f32 %v2198_v24, %v8649_v61  ;;  %v8772_v36 = vadd.f32 %v2357_v19, %v2222_v58  ;;  %v6330_v29 = vpop.f32.mrb[111].mxu0  ;;  %v2360_v55 = vpop.f32.mrb[110].mxu1  ;;  %6750 = vmatpush3.bf16.msra.mxu0 %v7193_v30  ;;  %v4010_v61 = vld [vmem:[%s7377_s28 + $0xb] sm:$0xff]  ;;  %v4015_v30 = vld [vmem:[%s7377_s28 + $0x33] sm:$0xff] }
 0x1f3   : > { %v6366_v49 = vpop.f32.mrb[111].mxu1  ;;  %6786 = vmatpush3.bf16.msra.mxu1 %v7194_v16  ;;  %6807 = vmatprep.subr.bf16.mxu0 %v7268_v2  ;;  %v4020_v41 = vpack.c.bf16 %v4011_v33, %v4010_v61  ;;  %v8846_v16 = vld [vmem:[%s7377_s28 + $0x2c] sm:$0xff]  ;;  %v8849_v58 = vld [vmem:[%s7377_s28 + $0x34] sm:$0xff] }
 0x1f4   : > { %v8775_v47 = vadd.f32 %v2360_v55, %v2223_v42  ;;  %6696 = vmatmul.mubr.bf16.gmra.mrb[216].mxu0 %v3700_v20  ;;  %6843 = vmatprep.subr.bf16.mxu1 %v7268_v2  ;;  %v7203_v19 = vld [vmem:[%s9273_s4 + $0x658] sm:$0xff]   ;;  %v4184_v55 = vpack.c.bf16 %v8849_v58, %v8846_v16  ;;  %v7202_v49 = vld [vmem:[%s9273_s4 + $0x620] sm:$0xff]  }
 0x1f5   : > { %6732 = vmatmul.mubr.bf16.gmra.mrb[216].mxu1 %v3862_v26  ;;  %6751 = vmatprep.mubr.msk.bf16.mxu0 %vm7269_vm0, %v7268_v2 }
 0x1f6   : > { %6787 = vmatprep.mubr.msk.bf16.mxu1 %vm7269_vm0, %v7268_v2 }
 0x1f7   : > { %v2203_v15 = vpop.f32.mrb[112].mxu0 }
 0x1f8   : > { %v2224_v38 = vadd.f32 %v2203_v15, %v8664_v6  ;;  %v6333_v39 = vpop.f32.mrb[113].mxu0  ;;  %v2365_v9 = vpop.f32.mrb[112].mxu1 }
 0x1f9   : > { %v2206_v8 = vpop.f32.mrb[114].mxu0  ;;  %v6369_v57 = vpop.f32.mrb[113].mxu1 }
 0x1fa   : > { %v2225_v59 = vadd.f32 %v2206_v8, %v8669_v40  ;;  %v8794_v4 = vadd.f32 %v2365_v9, %v2224_v38  ;;  %v6334_v6 = vpop.f32.mrb[115].mxu0  ;;  %v2368_v1 = vpop.f32.mrb[114].mxu1  ;;  %v4012_v40 = vld [vmem:[%s7377_s28 + $0x1b] sm:$0xff]  ;;  %v4017_v9 = vld [vmem:[%s7377_s28 + $0x43] sm:$0xff] }
 0x1fb   : > { %v6370_v21 = vpop.f32.mrb[115].mxu1  ;;  %v4021_v0 = vpack.c.bf16 %v4013_v56, %v4012_v40  ;;  %v7205_v38 = vld [vmem:[%s9273_s4 + $0x660] sm:$0xff]  }
 0x1fc   : > { %v8799_v11 = vadd.f32 %v2368_v1, %v2225_v59  ;;  %6752 = vmatmul.mubr.bf16.vlgmr.msra.gmra.mrb[220].mxu0 %v4020_v41  ;;  %v7204_v41 = vld [vmem:[%s9273_s4 + $0x628] sm:$0xff]   ;;  %v8883_v8 = vld [vmem:[%s7377_s28 + $0x3c] sm:$0xff] }
 0x1fd   : > { %6808 = vmatpush3.bf16.msra.mxu0 %v7195_v44  ;;  %6788 = vmatmul.mubr.bf16.vlgmr.msra.gmra.mrb[220].mxu1 %v4182_v45  ;;  %v8886_v57 = vld [vmem:[%s7377_s28 + $0x44] sm:$0xff] }
 0x1fe   : > { %6809 = vmatprep.subr.bf16.mxu0 %v7268_v2  ;;  %6755 = vmatprep.mubr.msk.bf16.mxu0 %vm7269_vm0, %v7268_v2  ;;  %v7207_v45 = vld [vmem:[%s9273_s4 + $0x668] sm:$0xff]   ;;  %v4185_v40 = vpack.c.bf16 %v8886_v57, %v8883_v8 }
 0x1ff   : > { %v2211_v37 = vpop.f32.mrb[116].mxu0  ;;  %6791 = vmatprep.mubr.msk.bf16.mxu1 %vm7269_vm0, %v7268_v2  ;;  %6844 = vmatpush3.bf16.msra.mxu1 %v7198_v10 }
 0x200   : > { %v2226_v62 = vadd.f32 %v2211_v37, %v8690_v27  ;;  %v6337_v63 = vpop.f32.mrb[117].mxu0  ;;  %v2373_v22 = vpop.f32.mrb[116].mxu1  ;;  %6845 = vmatprep.subr.bf16.mxu1 %v7268_v2 }
 0x201   : > { %v2214_v46 = vpop.f32.mrb[118].mxu0  ;;  %v6373_v5 = vpop.f32.mrb[117].mxu1  ;;  %6810 = vmatpush3.bf16.msra.mxu0 %v7196_v31 }
 0x202   : > { %v2227_v25 = vadd.f32 %v2214_v46, %v8696_v43  ;;  %v8828_v27 = vadd.f32 %v2373_v22, %v2226_v62  ;;  %v6338_v17 = vpop.f32.mrb[119].mxu0  ;;  %v2376_v12 = vpop.f32.mrb[118].mxu1  ;;  %6811 = vmatprep.subr.bf16.mxu0 %v7268_v2  ;;  %v4014_v43 = vld [vmem:[%s7377_s28 + $0x2b] sm:$0xff]  ;;  %v4019_v46 = vld [vmem:[%s7377_s28 + $0x53] sm:$0x3f] }
 0x203   : > { %v6374_v50 = vpop.f32.mrb[119].mxu1  ;;  %6846 = vmatpush3.bf16.msra.mxu1 %v7199_v60  ;;  %v4022_v26 = vpack.c.bf16 %v4015_v30, %v4014_v43  ;;  %v7206_v62 = vld [vmem:[%s9273_s4 + $0x630] sm:$0xff]   ;;  %v7210_v17 = vld [vmem:[%s9273_s4 + $0x678] sm:$0xff]  }
 0x204   : > { %v8834_v52 = vadd.f32 %v2376_v12, %v2227_v25  ;;  %6756 = vmatmul.mubr.bf16.gmra.mrb[224].mxu0 %v4021_v0  ;;  %6847 = vmatprep.subr.bf16.mxu1 %v7268_v2  ;;  %v7208_v22 = vld [vmem:[%s9273_s4 + $0x670] sm:$0xff]  }
 0x205   : > { %6792 = vmatmul.mubr.bf16.gmra.mrb[224].mxu1 %v4183_v18  ;;  %6812 = vmatpush3.bf16.msra.mxu0 %v7197_v28  ;;  %v8916_v5 = vld [vmem:[%s7377_s28 + $0x4c] sm:$0xff]  ;;  %v4181_v18 = vld [vmem:[%s7377_s28 + $0x54] sm:$0x3f] }
 0x206   : > { %6759 = vmatprep.mubr.msk.bf16.mxu0 %vm7269_vm0, %v7268_v2  ;;  %6813 = vmatprep.subr.bf16.mxu0 %v7268_v2  ;;  %v7209_v28 = vld [vmem:[%s9273_s4 + $0x638] sm:$0xff]  }
 0x207   : > { %v2503_v51 = vpop.f32.mrb[120].mxu0  ;;  %6795 = vmatprep.mubr.msk.bf16.mxu1 %vm7269_vm0, %v7268_v2  ;;  %6848 = vmatpush3.bf16.msra.mxu1 %v7201_v23 }
 0x208   : > { %v2542_v20 = vadd.f32 %v2503_v51, %v8718_v48  ;;  %v6393_v24 = vpop.f32.mrb[121].mxu0  ;;  %v2665_v53 = vpop.f32.mrb[120].mxu1  ;;  %6849 = vmatprep.subr.bf16.mxu1 %v7268_v2  ;;  %v4186_v51 = vpack.c.bf16 %v4181_v18, %v8916_v5 }
 0x209   : > { %v2506_v42 = vpop.f32.mrb[122].mxu0  ;;  %v6429_v29 = vpop.f32.mrb[121].mxu1  ;;  %6814 = vmatpush3.bf16.msra.mxu0 %v7200_v54 }
 0x20a   : > { %v2543_v61 = vadd.f32 %v2506_v42, %v8724_v3  ;;  %v8864_v48 = vadd.f32 %v2665_v53, %v2542_v20  ;;  %v6394_v33 = vpop.f32.mrb[123].mxu0  ;;  %v2668_v34 = vpop.f32.mrb[122].mxu1  ;;  %6815 = vmatprep.subr.bf16.mxu0 %v7268_v2  ;;  %v4016_v3 = vld [vmem:[%s7377_s28 + $0x3b] sm:$0xff] }
 0x20b   : > { %v6430_v15 = vpop.f32.mrb[123].mxu1  ;;  %6850 = vmatpush3.bf16.msra.mxu1 %v7203_v19  ;;  %v4023_v21 = vpack.c.bf16 %v4017_v9, %v4016_v3  ;;  %v4497_v42 = vld [vmem:[%s7377_s28 + $0x1d] sm:$0xff]  ;;  %v4344_v33 = vpack.c.bf16 %v8810_v13, %v8786_v35  ;;  %v7212_v35 = vld [vmem:[%s9273_s4 + $0x688] sm:$0xff]  }
 0x20c   : > { %v8870_v39 = vadd.f32 %v2668_v34, %v2543_v61  ;;  %6760 = vmatmul.mubr.bf16.gmra.mrb[228].mxu0 %v4022_v26  ;;  %6851 = vmatprep.subr.bf16.mxu1 %v7268_v2  ;;  %v4499_v13 = vld [vmem:[%s7377_s28 + $0x2d] sm:$0xff] }
 0x20d   : > { %6796 = vmatmul.mubr.bf16.gmra.mrb[228].mxu1 %v4184_v55  ;;  %6816 = vmatpush3.bf16.msra.mxu0 %v7202_v49 }
 0x20e   : > { %6763 = vmatprep.mubr.msk.bf16.mxu0 %vm7269_vm0, %v7268_v2  ;;  %6799 = vmatprep.mubr.msk.bf16.mxu1 %vm7269_vm0, %v7268_v2 }
 0x20f   : > { %v2511_v44 = vpop.f32.mrb[124].mxu0  ;;  %6817 = vmatprep.subr.bf16.mxu0 %v7268_v2  ;;  %6852 = vmatpush3.bf16.msra.mxu1 %v7205_v38  ;;  %v7211_v38 = vld [vmem:[%s9273_s4 + $0x680] sm:$0xff]  }
 0x210   : > { %v2544_v59 = vadd.f32 %v2511_v44, %v8743_v7  ;;  %v6397_v6 = vpop.f32.mrb[125].mxu0  ;;  %v2673_v1 = vpop.f32.mrb[124].mxu1  ;;  %6853 = vmatprep.subr.bf16.mxu1 %v7268_v2 }
 0x211   : > { %v2514_v10 = vpop.f32.mrb[126].mxu0  ;;  %v6433_v31 = vpop.f32.mrb[125].mxu1  ;;  %6818 = vmatpush3.bf16.msra.mxu0 %v7204_v41 }
 0x212   : > { %v2545_v56 = vadd.f32 %v2514_v10, %v8752_v32  ;;  %v8897_v37 = vadd.f32 %v2673_v1, %v2544_v59  ;;  %v6398_v60 = vpop.f32.mrb[127].mxu0  ;;  %v2676_v7 = vpop.f32.mrb[126].mxu1  ;;  %6819 = vmatprep.subr.bf16.mxu0 %v7268_v2  ;;  %v4018_v32 = vld [vmem:[%s7377_s28 + $0x4b] sm:$0xff]  ;;  %v4345_v31 = vpack.c.bf16 %v8846_v16, %v8813_v14  ;;  %v7214_v16 = vld [vmem:[%s9273_s4 + $0x698] sm:$0xff]  }
 0x213   : > { %v6434_v63 = vpop.f32.mrb[127].mxu1  ;;  %6854 = vmatpush3.bf16.msra.mxu1 %v7207_v45  ;;  %v4024_v43 = vpack.c.bf16 %v4019_v46, %v4018_v32  ;;  %v4501_v46 = vld [vmem:[%s7377_s28 + $0x3d] sm:$0xff] }
 0x214   : > { %v8906_v0 = vadd.f32 %v2676_v7, %v2545_v56  ;;  %6764 = vmatmul.mubr.bf16.gmra.mrb[232].mxu0 %v4023_v21  ;;  %6855 = vmatprep.subr.bf16.mxu1 %v7268_v2  ;;  %v7213_v7 = vld [vmem:[%s9273_s4 + $0x690] sm:$0xff]  }
 0x215   : > { %6800 = vmatmul.mubr.bf16.gmra.mrb[232].mxu1 %v4185_v40  ;;  %6767 = vmatprep.mubr.msk.bf16.mxu0 %vm7269_vm0, %v7268_v2 }
 0x216   : > { %6820 = vmatpush3.bf16.msra.mxu0 %v7206_v62  ;;  %6803 = vmatprep.mubr.msk.bf16.mxu1 %vm7269_vm0, %v7268_v2 }
 0x217   : > { %v2519_v25 = vpop.f32.mrb[128].mxu0  ;;  %6821 = vmatprep.subr.bf16.mxu0 %v7268_v2  ;;  %6856 = vmatpush3.bf16.msra.mxu1 %v7208_v22 }
 0x218   : > { %v2546_v12 = vadd.f32 %v2519_v25, %v8772_v36  ;;  %v6401_v50 = vpop.f32.mrb[129].mxu0  ;;  %v2681_v23 = vpop.f32.mrb[128].mxu1  ;;  %6857 = vmatprep.subr.bf16.mxu1 %v7268_v2 }
 0x219   : > { %v2522_v30 = vpop.f32.mrb[130].mxu0  ;;  %v6437_v54 = vpop.f32.mrb[129].mxu1 }
 0x21a   : > { %v2547_v19 = vadd.f32 %v2522_v30, %v8775_v47  ;;  %v8930_v20 = vadd.f32 %v2681_v23, %v2546_v12  ;;  %v6402_v24 = vpop.f32.mrb[131].mxu0  ;;  %v2684_v53 = vpop.f32.mrb[130].mxu1  ;;  %6822 = vmatpush3.bf16.msra.mxu0 %v7209_v28  ;;  %v4496_v47 = vld [vmem:[%s7377_s28 + $0x15] sm:$0xff]  ;;  %v4346_v12 = vpack.c.bf16 %v8883_v8, %v8849_v58  ;;  %v7215_v30 = vld [vmem:[%s9273_s4 + $0x6a0] sm:$0xff]   ;;  %v7216_v8 = vld [vmem:[%s9273_s4 + $0x6a8] sm:$0xff]  }
 0x21b   : > { %v6438_v26 = vpop.f32.mrb[131].mxu1  ;;  %6858 = vmatpush3.bf16.msra.mxu1 %v7210_v17  ;;  %6879 = vmatprep.subr.bf16.mxu0 %v7268_v2  ;;  %v4506_v3 = vpack.c.bf16 %v4497_v42, %v4496_v47 }
 0x21c   : > { %v8933_v36 = vadd.f32 %v2684_v53, %v2547_v19  ;;  %6768 = vmatmul.mubr.bf16.gmra.mrb[236].mxu0 %v4024_v43  ;;  %6915 = vmatprep.subr.bf16.mxu1 %v7268_v2  ;;  %v4503_v53 = vld [vmem:[%s7377_s28 + $0x4d] sm:$0xff] }
 0x21d   : > { %6804 = vmatmul.mubr.bf16.gmra.mrb[236].mxu1 %v4186_v51  ;;  %6823 = vmatprep.mubr.msk.bf16.mxu0 %vm7269_vm0, %v7268_v2 }
 0x21e   : > { %6859 = vmatprep.mubr.msk.bf16.mxu1 %vm7269_vm0, %v7268_v2 }
 0x21f   : > { %v2527_v29 = vpop.f32.mrb[132].mxu0 }
 0x220   : > { %v2548_v55 = vadd.f32 %v2527_v29, %v8794_v4  ;;  %v6405_v49 = vpop.f32.mrb[133].mxu0  ;;  %v2689_v61 = vpop.f32.mrb[132].mxu1 }
 0x221   : > { %v2530_v34 = vpop.f32.mrb[134].mxu0  ;;  %v6441_v15 = vpop.f32.mrb[133].mxu1 }
 0x222   : > { %v2549_v9 = vadd.f32 %v2530_v34, %v8799_v11  ;;  %v8949_v41 = vadd.f32 %v2689_v61, %v2548_v55  ;;  %v6406_v44 = vpop.f32.mrb[135].mxu0  ;;  %v2692_v4 = vpop.f32.mrb[134].mxu1  ;;  %v4498_v11 = vld [vmem:[%s7377_s28 + $0x25] sm:$0xff]  ;;  %v4347_v55 = vpack.c.bf16 %v8916_v5, %v8886_v57  ;;  %v7217_v57 = vld [vmem:[%s9273_s4 + $0x6b0] sm:$0xff]  }
 0x223   : > { %v6442_v45 = vpop.f32.mrb[135].mxu1  ;;  %v4507_v60 = vpack.c.bf16 %v4499_v13, %v4498_v11  ;;  %v4504_v44 = vld [vmem:[%s7377_s28 + $0x55] sm:$0xff] }
 0x224   : > { %v8951_v59 = vadd.f32 %v2692_v4, %v2549_v9  ;;  %6824 = vmatmul.mubr.bf16.vlgmr.msra.gmra.mrb[240].mxu0 %v4344_v33  ;;  %v4343_v9 = vld [vmem:[%s7377_s28 + $0x5c] sm:$0x3f] }
 0x225   : > { %6880 = vmatpush3.bf16.msra.mxu0 %v7211_v38  ;;  %6860 = vmatmul.mubr.bf16.vlgmr.msra.gmra.mrb[240].mxu1 %v4506_v3  ;;  %v4505_v4 = vld [vmem:[%s7377_s28 + $0x5d] sm:$0x3f] }
 0x226   : > { %6881 = vmatprep.subr.bf16.mxu0 %v7268_v2  ;;  %6827 = vmatprep.mubr.msk.bf16.mxu0 %vm7269_vm0, %v7268_v2  ;;  %v7218_v45 = vld [vmem:[%s9273_s4 + $0x6b8] sm:$0xff]  }
 0x227   : > { %v2535_v6 = vpop.f32.mrb[136].mxu0  ;;  %6863 = vmatprep.mubr.msk.bf16.mxu1 %vm7269_vm0, %v7268_v2 }
 0x228   : > { %v2550_v1 = vadd.f32 %v2535_v6, %v8828_v27  ;;  %v6409_v21 = vpop.f32.mrb[137].mxu0  ;;  %v2697_v10 = vpop.f32.mrb[136].mxu1 }
 0x229   : > { %v2538_v40 = vpop.f32.mrb[138].mxu0  ;;  %v6445_v56 = vpop.f32.mrb[137].mxu1  ;;  %6882 = vmatpush3.bf16.msra.mxu0 %v7212_v35 }
 0x22a   : > { %v2551_v62 = vadd.f32 %v2538_v40, %v8834_v52  ;;  %v8970_v63 = vadd.f32 %v2697_v10, %v2550_v1  ;;  %v6410_v27 = vpop.f32.mrb[139].mxu0  ;;  %v2700_v22 = vpop.f32.mrb[138].mxu1  ;;  %6883 = vmatprep.subr.bf16.mxu0 %v7268_v2  ;;  %v4500_v52 = vld [vmem:[%s7377_s28 + $0x35] sm:$0xff] }
 0x22b   : > { %v6446_v32 = vpop.f32.mrb[139].mxu1  ;;  %v4508_v43 = vpack.c.bf16 %v4501_v46, %v4500_v52 }
 0x22c   : > { %v8973_v14 = vadd.f32 %v2700_v22, %v2551_v62  ;;  %6828 = vmatmul.mubr.bf16.gmra.mrb[244].mxu0 %v4345_v31  ;;  %v4510_v31 = vpack.c.bf16 %v4505_v4, %v4504_v44  ;;  %v4659_v22 = vld [vmem:[%s7377_s28 + $0x1e] sm:$0xff] }
 0x22d   : > { %6864 = vmatmul.mubr.bf16.gmra.mrb[244].mxu1 %v4507_v60  ;;  %6884 = vmatpush3.bf16.msra.mxu0 %v7213_v7 }
 0x22e   : > { %6831 = vmatprep.mubr.msk.bf16.mxu0 %vm7269_vm0, %v7268_v2  ;;  %6885 = vmatprep.subr.bf16.mxu0 %v7268_v2 }
 0x22f   : > { %v2827_v18 = vpop.f32.mrb[140].mxu0  ;;  %6867 = vmatprep.mubr.msk.bf16.mxu1 %vm7269_vm0, %v7268_v2 }
 0x230   : > { %v2866_v28 = vadd.f32 %v2827_v18, %v8864_v48  ;;  %v6465_v25 = vpop.f32.mrb[141].mxu0  ;;  %v2989_v17 = vpop.f32.mrb[140].mxu1 }
 0x231   : > { %v2830_v50 = vpop.f32.mrb[142].mxu0  ;;  %v6501_v23 = vpop.f32.mrb[141].mxu1  ;;  %6886 = vmatpush3.bf16.msra.mxu0 %v7214_v16 }
 0x232   : > { %v2867_v54 = vadd.f32 %v2830_v50, %v8870_v39  ;;  %v8992_v51 = vadd.f32 %v2989_v17, %v2866_v28  ;;  %v6466_v48 = vpop.f32.mrb[143].mxu0  ;;  %v2992_v19 = vpop.f32.mrb[142].mxu1  ;;  %6887 = vmatprep.subr.bf16.mxu0 %v7268_v2  ;;  %v4502_v39 = vld [vmem:[%s7377_s28 + $0x45] sm:$0xff] }
 0x233   : > { %v6502_v24 = vpop.f32.mrb[143].mxu1  ;;  %v4509_v33 = vpack.c.bf16 %v4503_v53, %v4502_v39 }
 0x234   : > { %v8995_v58 = vadd.f32 %v2992_v19, %v2867_v54  ;;  %6832 = vmatmul.mubr.bf16.gmra.mrb[248].mxu0 %v4346_v12 }
 0x235   : > { %6868 = vmatmul.mubr.bf16.gmra.mrb[248].mxu1 %v4508_v43  ;;  %6888 = vmatpush3.bf16.msra.mxu0 %v7215_v30  ;;  %v4660_v30 = vld [vmem:[%s7377_s28 + $0x26] sm:$0xff] }
 0x236   : > { %6835 = vmatprep.mubr.msk.bf16.mxu0 %vm7269_vm0, %v7268_v2  ;;  %6871 = vmatprep.mubr.msk.bf16.mxu1 %vm7269_vm0, %v7268_v2 }
 0x237   : > { %v2835_v26 = vpop.f32.mrb[144].mxu0  ;;  %6889 = vmatprep.subr.bf16.mxu0 %v7268_v2 }
 0x238   : > { %v2868_v47 = vadd.f32 %v2835_v26, %v8897_v37  ;;  %v6469_v42 = vpop.f32.mrb[145].mxu0  ;;  %v2997_v29 = vpop.f32.mrb[144].mxu1 }
 0x239   : > { %v2838_v49 = vpop.f32.mrb[146].mxu0  ;;  %v6505_v61 = vpop.f32.mrb[145].mxu1  ;;  %6890 = vmatpush3.bf16.msra.mxu0 %v7216_v8 }
 0x23a   : > { %v2869_v34 = vadd.f32 %v2838_v49, %v8906_v0  ;;  %v9011_v15 = vadd.f32 %v2997_v29, %v2868_v47  ;;  %v6470_v38 = vpop.f32.mrb[147].mxu0  ;;  %v3000_v3 = vpop.f32.mrb[146].mxu1  ;;  %6891 = vmatprep.subr.bf16.mxu0 %v7268_v2  ;;  %v4342_v0 = vld [vmem:[%s7377_s28 + $0x54] sm:$0xff] }
 0x23b   : > { %v6506_v37 = vpop.f32.mrb[147].mxu1  ;;  %v4348_v1 = vpack.c.bf16 %v4343_v9, %v4342_v0  ;;  %v4662_v49 = vld [vmem:[%s7377_s28 + $0x36] sm:$0xff] }
 0x23c   : > { %v9017_v5 = vadd.f32 %v3000_v3, %v2869_v34  ;;  %6836 = vmatmul.mubr.bf16.gmra.mrb[252].mxu0 %v4347_v55 }
 0x23d   : > { %6872 = vmatmul.mubr.bf16.gmra.mrb[252].mxu1 %v4509_v33  ;;  %6839 = vmatprep.mubr.msk.bf16.mxu0 %vm7269_vm0, %v7268_v2 }
 0x23e   : > { %6892 = vmatpush3.bf16.msra.mxu0 %v7217_v57  ;;  %6875 = vmatprep.mubr.msk.bf16.mxu1 %vm7269_vm0, %v7268_v2 }
 0x23f   : > { %v2843_v35 = vpop.f32.mrb[148].mxu0  ;;  %6893 = vmatprep.subr.bf16.mxu0 %v7268_v2 }
 0x240   : > { %v2870_v11 = vadd.f32 %v2843_v35, %v8930_v20  ;;  %v6473_v13 = vpop.f32.mrb[149].mxu0  ;;  %v3005_v6 = vpop.f32.mrb[148].mxu1  ;;  %v4658_v20 = vld [vmem:[%s7377_s28 + $0x16] sm:$0xff]  ;;  %v4664_v35 = vld [vmem:[%s7377_s28 + $0x46] sm:$0xff] }
 0x241   : > { %v2846_v21 = vpop.f32.mrb[150].mxu0  ;;  %v6509_v10 = vpop.f32.mrb[149].mxu1  ;;  %v4668_v46 = vpack.c.bf16 %v4659_v22, %v4658_v20  ;;  %v4666_v22 = vld [vmem:[%s7377_s28 + $0x56] sm:$0xff] }
 0x242   : > { %v2871_v40 = vadd.f32 %v2846_v21, %v8933_v36  ;;  %v9033_v56 = vadd.f32 %v3005_v6, %v2870_v11  ;;  %v6474_v60 = vpop.f32.mrb[151].mxu0  ;;  %v3008_v7 = vpop.f32.mrb[150].mxu1  ;;  %6894 = vmatpush3.bf16.msra.mxu0 %v7218_v45 }
 0x243   : > { %v6510_v62 = vpop.f32.mrb[151].mxu1 }
 0x244   : > { %v9035_v27 = vadd.f32 %v3008_v7, %v2871_v40  ;;  %6840 = vmatmul.mubr.bf16.gmra.mrb[0].mxu0 %v4348_v1 }
 0x245   : > { %6876 = vmatmul.mubr.bf16.gmra.mrb[0].mxu1 %v4510_v31  ;;  %6895 = vmatprep.mubr.msk.bf16.mxu0 %vm7269_vm0, %v7268_v2 }
 0x246   : > { %6931 = vmatprep.mubr.msk.bf16.mxu1 %vm7269_vm0, %v7268_v2 }
 0x247   : > { %v2851_v36 = vpop.f32.mrb[152].mxu0 }
 0x248   : > { %v2872_v32 = vadd.f32 %v2851_v36, %v8949_v41  ;;  %v6477_v16 = vpop.f32.mrb[153].mxu0  ;;  %v3013_v52 = vpop.f32.mrb[152].mxu1  ;;  %v4661_v41 = vld [vmem:[%s7377_s28 + $0x2e] sm:$0xff] }
 0x249   : > { %v2854_v18 = vpop.f32.mrb[154].mxu0  ;;  %v6513_v28 = vpop.f32.mrb[153].mxu1  ;;  %v4669_v24 = vpack.c.bf16 %v4661_v41, %v4660_v30 }
 0x24a   : > { %v2873_v25 = vadd.f32 %v2854_v18, %v8951_v59  ;;  %v9045_v17 = vadd.f32 %v3013_v52, %v2872_v32  ;;  %v6478_v12 = vpop.f32.mrb[155].mxu0  ;;  %v3016_v50 = vpop.f32.mrb[154].mxu1 }
 0x24b   : > { %v6514_v23 = vpop.f32.mrb[155].mxu1 }
 0x24c   : > { %v9047_v43 = vadd.f32 %v3016_v50, %v2873_v25  ;;  %6896 = vmatmul.mubr.bf16.vlgmr.msra.gmra.mrb[4].mxu0 %v4668_v46 }
 0x24d   : > { %6899 = vmatprep.mubr.msk.bf16.mxu0 %vm7269_vm0, %v7268_v2 }
 0x24f   : > { %v2859_v54 = vpop.f32.mrb[156].mxu0 }
 0x250   : > { %v2874_v48 = vadd.f32 %v2859_v54, %v8970_v63  ;;  %v6481_v19 = vpop.f32.mrb[157].mxu0  ;;  %v3021_v59 = vpop.f32.mrb[156].mxu1  ;;  %v4663_v63 = vld [vmem:[%s7377_s28 + $0x3e] sm:$0xff] }
 0x251   : > { %v2862_v8 = vpop.f32.mrb[158].mxu0  ;;  %v6517_v39 = vpop.f32.mrb[157].mxu1  ;;  %v4670_v38 = vpack.c.bf16 %v4663_v63, %v4662_v49 }
 0x252   : > { %v2875_v53 = vadd.f32 %v2862_v8, %v8973_v14  ;;  %v9055_v26 = vadd.f32 %v3021_v59, %v2874_v48  ;;  %v6482_v47 = vpop.f32.mrb[159].mxu0  ;;  %v3024_v42 = vpop.f32.mrb[158].mxu1 }
 0x253   : > { %v6518_v29 = vpop.f32.mrb[159].mxu1 }
 0x254   : > { %v9057_v55 = vadd.f32 %v3024_v42, %v2875_v53  ;;  %6900 = vmatmul.mubr.bf16.gmra.mrb[8].mxu0 %v4669_v24 }
 0x255   : > { %6903 = vmatprep.mubr.msk.bf16.mxu0 %vm7269_vm0, %v7268_v2 }
 0x257   : > { %v3151_v61 = vpop.f32.mrb[160].mxu0 }
 0x258   : > { %v3190_v33 = vadd.f32 %v3151_v61, %v8992_v51  ;;  %v6537_v34 = vpop.f32.mrb[161].mxu0  ;;  %v3313_v14 = vpop.f32.mrb[160].mxu1  ;;  %v4665_v51 = vld [vmem:[%s7377_s28 + $0x4e] sm:$0xff] }
 0x259   : > { %v3154_v3 = vpop.f32.mrb[162].mxu0  ;;  %v6573_v57 = vpop.f32.mrb[161].mxu1  ;;  %v4671_v1 = vpack.c.bf16 %v4665_v51, %v4664_v35 }
 0x25a   : > { %v3191_v37 = vadd.f32 %v3154_v3, %v8995_v58  ;;  %v9065_v0 = vadd.f32 %v3313_v14, %v3190_v33  ;;  %v6538_v9 = vpop.f32.mrb[163].mxu0  ;;  %v3316_v44 = vpop.f32.mrb[162].mxu1 }
 0x25b   : > { %v6574_v4 = vpop.f32.mrb[163].mxu1 }
 0x25c   : > { %v9067_v45 = vadd.f32 %v3316_v44, %v3191_v37  ;;  %6904 = vmatmul.mubr.bf16.gmra.mrb[12].mxu0 %v4670_v38 }
 0x25d   : > { %6907 = vmatprep.mubr.msk.bf16.mxu0 %vm7269_vm0, %v7268_v2 }
 0x25f   : > { %v3159_v11 = vpop.f32.mrb[164].mxu0 }
 0x260   : > { %v3192_v13 = vadd.f32 %v3159_v11, %v9011_v15  ;;  %v6541_v6 = vpop.f32.mrb[165].mxu0  ;;  %v3321_v58 = vpop.f32.mrb[164].mxu1  ;;  %v4667_v15 = vld [vmem:[%s7377_s28 + $0x5e] sm:$0x3f] }
 0x261   : > { %v3162_v21 = vpop.f32.mrb[166].mxu0  ;;  %v6577_v10 = vpop.f32.mrb[165].mxu1  ;;  %v4672_v46 = vpack.c.bf16 %v4667_v15, %v4666_v22 }
 0x262   : > { %v3193_v31 = vadd.f32 %v3162_v21, %v9017_v5  ;;  %v9075_v40 = vadd.f32 %v3321_v58, %v3192_v13  ;;  %v6542_v60 = vpop.f32.mrb[167].mxu0  ;;  %v3324_v7 = vpop.f32.mrb[166].mxu1  ;;  %v7219_v58 = vld [vmem:[%s9275_s6] sm:$0xff]  }
 0x263   : > { %v6578_v62 = vpop.f32.mrb[167].mxu1  ;;  %6916 = vmatpush3.bf16.msra.mxu1 %v7219_v58 }
 0x264   : > { %v9077_v20 = vadd.f32 %v3324_v7, %v3193_v31  ;;  %6908 = vmatmul.mubr.bf16.gmra.mrb[16].mxu0 %v4671_v1  ;;  %6917 = vmatprep.subr.bf16.mxu1 %v7268_v2 }
 0x265   : > { %6911 = vmatprep.mubr.msk.bf16.mxu0 %vm7269_vm0, %v7268_v2 }
 0x267   : > { %v3167_v36 = vpop.f32.mrb[168].mxu0 }
 0x268   : > { %v3194_v32 = vadd.f32 %v3167_v36, %v9033_v56  ;;  %v6545_v16 = vpop.f32.mrb[169].mxu0  ;;  %v3329_v52 = vpop.f32.mrb[168].mxu1 }
 0x269   : > { %v3170_v5 = vpop.f32.mrb[170].mxu0  ;;  %v6581_v18 = vpop.f32.mrb[169].mxu1 }
 0x26a   : > { %v3195_v28 = vadd.f32 %v3170_v5, %v9035_v27  ;;  %v9085_v25 = vadd.f32 %v3329_v52, %v3194_v32  ;;  %v6546_v12 = vpop.f32.mrb[171].mxu0  ;;  %v3332_v50 = vpop.f32.mrb[170].mxu1 }
 0x26b   : > { %v6582_v23 = vpop.f32.mrb[171].mxu1 }
 0x26c   : > { %v9087_v30 = vadd.f32 %v3332_v50, %v3195_v28  ;;  %6912 = vmatmul.mubr.bf16.gmra.mrb[20].mxu0 %v4672_v46 }
 0x26f   : > { %v3175_v41 = vpop.f32.mrb[172].mxu0 }
 0x270   : > { %v3196_v54 = vadd.f32 %v3175_v41, %v9045_v17  ;;  %v6549_v48 = vpop.f32.mrb[173].mxu0  ;;  %v3337_v56 = vpop.f32.mrb[172].mxu1  ;;  %v7222_v41 = vld [vmem:[%s9275_s6 + $0x18] sm:$0xff]  }
 0x271   : > { %v3178_v19 = vpop.f32.mrb[174].mxu0  ;;  %v6585_v59 = vpop.f32.mrb[173].mxu1 }
 0x272   : > { %v3197_v24 = vadd.f32 %v3178_v19, %v9047_v43  ;;  %v9091_v8 = vadd.f32 %v3337_v56, %v3196_v54  ;;  %v6550_v27 = vpop.f32.mrb[175].mxu0  ;;  %v3340_v39 = vpop.f32.mrb[174].mxu1 }
 0x273   : > { %v6586_v53 = vpop.f32.mrb[175].mxu1 }
 0x274   : > { %v9093_v47 = vadd.f32 %v3340_v39, %v3197_v24 }
 0x277   : > { %v3183_v42 = vpop.f32.mrb[176].mxu0 }
 0x278   : > { %v3198_v29 = vadd.f32 %v3183_v42, %v9055_v26  ;;  %v6553_v49 = vpop.f32.mrb[177].mxu0  ;;  %v3345_v63 = vpop.f32.mrb[176].mxu1 }
 0x279   : > { %v3186_v61 = vpop.f32.mrb[178].mxu0  ;;  %v6589_v17 = vpop.f32.mrb[177].mxu1 }
 0x27a   : > { %v3199_v33 = vadd.f32 %v3186_v61, %v9057_v55  ;;  %v9097_v34 = vadd.f32 %v3345_v63, %v3198_v29  ;;  %v6554_v14 = vpop.f32.mrb[179].mxu0  ;;  %v3348_v43 = vpop.f32.mrb[178].mxu1 }
 0x27b   : > { %v6590_v38 = vpop.f32.mrb[179].mxu1 }
 0x27c   : > { %v9099_v3 = vadd.f32 %v3348_v43, %v3199_v33 }
 0x27f   : > { %v3475_v57 = vpop.f32.mrb[180].mxu0 }
 0x280   : > { %v3514_v37 = vadd.f32 %v3475_v57, %v9065_v0  ;;  %v6609_v9 = vpop.f32.mrb[181].mxu0  ;;  %v3637_v44 = vpop.f32.mrb[180].mxu1 }
 0x281   : > { %v3478_v4 = vpop.f32.mrb[182].mxu0  ;;  %v6645_v26 = vpop.f32.mrb[181].mxu1 }
 0x282   : > { %v3515_v35 = vadd.f32 %v3478_v4, %v9067_v45  ;;  %v9103_v51 = vadd.f32 %v3637_v44, %v3514_v37  ;;  %v6610_v11 = vpop.f32.mrb[183].mxu0  ;;  %v3640_v55 = vpop.f32.mrb[182].mxu1  ;;  %v7220_v45 = vld [vmem:[%s9275_s6 + $0x8] sm:$0xff]   ;;  %v7225_v44 = vld [vmem:[%s9275_s6 + $0x30] sm:$0xff]  }
 0x283   : > { %v6646_v13 = vpop.f32.mrb[183].mxu1  ;;  %6918 = vmatpush3.bf16.msra.mxu1 %v7220_v45 }
 0x284   : > { %v9105_v6 = vadd.f32 %v3640_v55, %v3515_v35  ;;  %6919 = vmatprep.subr.bf16.mxu1 %v7268_v2 }
 0x287   : > { %v3483_v1 = vpop.f32.mrb[184].mxu0 }
 0x288   : > { %v3516_v0 = vadd.f32 %v3483_v1, %v9075_v40  ;;  %v6613_v21 = vpop.f32.mrb[185].mxu0  ;;  %v3645_v10 = vpop.f32.mrb[184].mxu1  ;;  %v7221_v40 = vld [vmem:[%s9275_s6 + $0x10] sm:$0xff]  }
 0x289   : > { %v3486_v31 = vpop.f32.mrb[186].mxu0  ;;  %v6649_v60 = vpop.f32.mrb[185].mxu1  ;;  %6920 = vmatpush3.bf16.msra.mxu1 %v7221_v40 }
 0x28a   : > { %v3517_v7 = vadd.f32 %v3486_v31, %v9077_v20  ;;  %v9116_v62 = vadd.f32 %v3645_v10, %v3516_v0  ;;  %v6614_v22 = vpop.f32.mrb[187].mxu0  ;;  %v3648_v15 = vpop.f32.mrb[186].mxu1  ;;  %6921 = vmatprep.subr.bf16.mxu1 %v7268_v2 }
 0x28b   : > { %v6650_v36 = vpop.f32.mrb[187].mxu1 }
 0x28c   : > { %v9119_v32 = vadd.f32 %v3648_v15, %v3517_v7 }
 0x28d   : > { %6922 = vmatpush3.bf16.msra.mxu1 %v7222_v41 }
 0x28e   : > { %6923 = vmatprep.subr.bf16.mxu1 %v7268_v2 }
 0x28f   : > { %v3491_v16 = vpop.f32.mrb[188].mxu0 }
 0x290   : > { %v3518_v20 = vadd.f32 %v3491_v16, %v9085_v25  ;;  %v6617_v52 = vpop.f32.mrb[189].mxu0  ;;  %v3653_v46 = vpop.f32.mrb[188].mxu1 }
 0x291   : > { %v3494_v5 = vpop.f32.mrb[190].mxu0  ;;  %v6653_v18 = vpop.f32.mrb[189].mxu1 }
 0x292   : > { %v3519_v28 = vadd.f32 %v3494_v5, %v9087_v30  ;;  %v9127_v12 = vadd.f32 %v3653_v46, %v3518_v20  ;;  %v6618_v50 = vpop.f32.mrb[191].mxu0  ;;  %v3656_v23 = vpop.f32.mrb[190].mxu1  ;;  %v7223_v30 = vld [vmem:[%s9275_s6 + $0x20] sm:$0xff]  }
 0x293   : > { %v6654_v54 = vpop.f32.mrb[191].mxu1  ;;  %6924 = vmatpush3.bf16.msra.mxu1 %v7223_v30 }
 0x294   : > { %v9132_v48 = vadd.f32 %v3656_v23, %v3519_v28  ;;  %6925 = vmatprep.subr.bf16.mxu1 %v7268_v2 }
 0x297   : > { %v3499_v25 = vpop.f32.mrb[192].mxu0 }
 0x298   : > { %v3520_v56 = vadd.f32 %v3499_v25, %v9091_v8  ;;  %v6621_v19 = vpop.f32.mrb[193].mxu0  ;;  %v3661_v59 = vpop.f32.mrb[192].mxu1  ;;  %v7224_v8 = vld [vmem:[%s9275_s6 + $0x28] sm:$0xff]  }
 0x299   : > { %v3502_v24 = vpop.f32.mrb[194].mxu0  ;;  %v6657_v27 = vpop.f32.mrb[193].mxu1  ;;  %6926 = vmatpush3.bf16.msra.mxu1 %v7224_v8 }
 0x29a   : > { %v3521_v39 = vadd.f32 %v3502_v24, %v9093_v47  ;;  %v9140_v53 = vadd.f32 %v3661_v59, %v3520_v56  ;;  %v6622_v42 = vpop.f32.mrb[195].mxu0  ;;  %v3664_v29 = vpop.f32.mrb[194].mxu1  ;;  %6927 = vmatprep.subr.bf16.mxu1 %v7268_v2 }
 0x29b   : > { %v6658_v49 = vpop.f32.mrb[195].mxu1 }
 0x29c   : > { %v9143_v63 = vadd.f32 %v3664_v29, %v3521_v39 }
 0x29d   : > { %6928 = vmatpush3.bf16.msra.mxu1 %v7225_v44 }
 0x29e   : > { %6929 = vmatprep.subr.bf16.mxu1 %v7268_v2 }
 0x29f   : > { %v3507_v61 = vpop.f32.mrb[196].mxu0 }
 0x2a0   : > { %v3522_v47 = vadd.f32 %v3507_v61, %v9097_v34  ;;  %v6625_v17 = vpop.f32.mrb[197].mxu0  ;;  %v3669_v33 = vpop.f32.mrb[196].mxu1  ;;  %v7226_v34 = vld [vmem:[%s9275_s6 + $0x38] sm:$0xff]  }
 0x2a1   : > { %v3510_v14 = vpop.f32.mrb[198].mxu0  ;;  %v6661_v43 = vpop.f32.mrb[197].mxu1  ;;  %6930 = vmatpush3.bf16.msra.mxu1 %v7226_v34 }
 0x2a2   : > { %v3523_v38 = vadd.f32 %v3510_v14, %v9099_v3  ;;  %v3684_v57 = vadd.f32 %v3669_v33, %v3522_v47  ;;  %v6626_v37 = vpop.f32.mrb[199].mxu0  ;;  %v3672_v9 = vpop.f32.mrb[198].mxu1 }
 0x2a3   : > { %v6662_v4 = vpop.f32.mrb[199].mxu1 }
 0x2a4   : > { %v3685_v26 = vadd.f32 %v3672_v9, %v3523_v38  ;;  %v5049_v4 = vld [vmem:[%s9269_s0 + $0x10] sm:$0xff] }
 0x2a7   : > { %v3799_v35 = vpop.f32.mrb[200].mxu0 }
 0x2a8   : > { %v3838_v11 = vadd.f32 %v3799_v35, %v9103_v51  ;;  %v6681_v3 = vpop.f32.mrb[201].mxu0  ;;  %v3961_v55 = vpop.f32.mrb[200].mxu1  ;;  %v7270_v35 = vmov 0  }
 0x2a9   : > { %v3802_v13 = vpop.f32.mrb[202].mxu0  ;;  %v6717_v58 = vpop.f32.mrb[201].mxu1  ;;  %7001 = vset.pattern.permute.xlu0 %v7270_v35  ;;  %7002 = vset.pattern.permute.xlu1 %v7270_v35 }
 0x2aa   : > { %v3839_v1 = vadd.f32 %v3802_v13, %v9105_v6  ;;  %v9160_v0 = vadd.f32 %v3961_v55, %v3838_v11  ;;  %v6682_v21 = vpop.f32.mrb[203].mxu0  ;;  %v3964_v10 = vpop.f32.mrb[202].mxu1  ;;  %5069 = vperm.xlu1 %7002, %v5049_v4   ;;  %v5050_v11 = vld [vmem:[%s9269_s0 + $0x18] sm:$0xff] }
 0x2ab   : > { %v6718_v45 = vpop.f32.mrb[203].mxu1 }
 0x2ac   : > { %v9162_v31 = vadd.f32 %v3964_v10, %v3839_v1  ;;  %v5051_v10 = vld [vmem:[%s9269_s0 + $0x20] sm:$0xff]  ;;  %v5052_v45 = vld [vmem:[%s9269_s0 + $0x28] sm:$0xff] }
 0x2ae   : > { %5074 = vperm.xlu1 %7002, %v5050_v11  }
 0x2af   : > { %v3807_v60 = vpop.f32.mrb[204].mxu0 }
 0x2b0   : > { %v3840_v7 = vadd.f32 %v3807_v60, %v9116_v62  ;;  %v6685_v22 = vpop.f32.mrb[205].mxu0  ;;  %v3969_v15 = vpop.f32.mrb[204].mxu1 }
 0x2b1   : > { %v3810_v51 = vpop.f32.mrb[206].mxu0  ;;  %v6721_v36 = vpop.f32.mrb[205].mxu1 }
 0x2b2   : > { %v3841_v40 = vadd.f32 %v3810_v51, %v9119_v32  ;;  %v9166_v16 = vadd.f32 %v3969_v15, %v3840_v7  ;;  %v6686_v20 = vpop.f32.mrb[207].mxu0  ;;  %v3972_v6 = vpop.f32.mrb[206].mxu1  ;;  %5084 = vperm.xlu1 %7002, %v5052_v45   ;;  %v5053_v36 = vld [vmem:[%s9269_s0 + $0x30] sm:$0xff] }
 0x2b3   : > { %v6722_v52 = vpop.f32.mrb[207].mxu1 }
 0x2b4   : > { %v9168_v46 = vadd.f32 %v3972_v6, %v3841_v40  ;;  %v5054_v40 = vld [vmem:[%s9269_s0 + $0x38] sm:$0xff] }
 0x2b6   : > { %5094 = vperm.xlu1 %7002, %v5054_v40  }
 0x2b7   : > { %v3815_v5 = vpop.f32.mrb[208].mxu0 }
 0x2b8   : > { %v3842_v18 = vadd.f32 %v3815_v5, %v9127_v12  ;;  %v6689_v28 = vpop.f32.mrb[209].mxu0  ;;  %v3977_v50 = vpop.f32.mrb[208].mxu1 }
 0x2b9   : > { %v3818_v23 = vpop.f32.mrb[210].mxu0  ;;  %v6725_v62 = vpop.f32.mrb[209].mxu1  ;;  %v5055_v28 = vld [vmem:[%s9269_s0 + $0x40] sm:$0xff] }
 0x2ba   : > { %v3843_v41 = vadd.f32 %v3818_v23, %v9132_v48  ;;  %v9172_v54 = vadd.f32 %v3977_v50, %v3842_v18  ;;  %v6690_v25 = vpop.f32.mrb[211].mxu0  ;;  %v3980_v32 = vpop.f32.mrb[210].mxu1  ;;  %v5056_v50 = vld [vmem:[%s9269_s0 + $0x48] sm:$0x3f] }
 0x2bb   : > { %v6726_v56 = vpop.f32.mrb[211].mxu1  ;;  %5104 = vperm.xlu1 %7002, %v5056_v50  }
 0x2bc   : > { %v9174_v19 = vadd.f32 %v3980_v32, %v3843_v41 }
 0x2bf   : > { %v3823_v59 = vpop.f32.mrb[212].mxu0 }
 0x2c0   : > { %v3844_v30 = vadd.f32 %v3823_v59, %v9140_v53  ;;  %v6693_v24 = vpop.f32.mrb[213].mxu0  ;;  %v3985_v27 = vpop.f32.mrb[212].mxu1 }
 0x2c1   : > { %v3826_v39 = vpop.f32.mrb[214].mxu0  ;;  %v6729_v12 = vpop.f32.mrb[213].mxu1 }
 0x2c2   : > { %v3845_v42 = vadd.f32 %v3826_v39, %v9143_v63  ;;  %v9178_v29 = vadd.f32 %v3985_v27, %v3844_v30  ;;  %v6694_v49 = vpop.f32.mrb[215].mxu0  ;;  %v3988_v48 = vpop.f32.mrb[214].mxu1  ;;  %v5047_v63 = vld [vmem:[%s9269_s0] sm:$0xff] }
 0x2c3   : > { %v6730_v8 = vpop.f32.mrb[215].mxu1  ;;  %5059 = vperm.xlu0 %7001, %v5047_v63  }
 0x2c4   : > { %v9180_v61 = vadd.f32 %v3988_v48, %v3845_v42 }
 0x2c7   : > { %v3831_v47 = vpop.f32.mrb[216].mxu0 }
 0x2c8   : > { %v3846_v17 = vadd.f32 %v3831_v47, %v3684_v57  ;;  %v6697_v33 = vpop.f32.mrb[217].mxu0  ;;  %v3993_v14 = vpop.f32.mrb[216].mxu1 }
 0x2c9   : > { %v3834_v43 = vpop.f32.mrb[218].mxu0  ;;  %v6733_v38 = vpop.f32.mrb[217].mxu1 }
 0x2ca   : > { %v3847_v53 = vadd.f32 %v3834_v43, %v3685_v26  ;;  %v9182_v37 = vadd.f32 %v3993_v14, %v3846_v17  ;;  %v6698_v9 = vpop.f32.mrb[219].mxu0  ;;  %v3996_v44 = vpop.f32.mrb[218].mxu1  ;;  %v5048_v26 = vld [vmem:[%s9269_s0 + $0x8] sm:$0xff] }
 0x2cb   : > { %v6734_v34 = vpop.f32.mrb[219].mxu1  ;;  %5064 = vperm.xlu0 %7001, %v5048_v26  }
 0x2cc   : > { %v9190_v57 = vadd.f32 %v3996_v44, %v3847_v53 }
 0x2cf   : > { %v4123_v3 = vpop.f32.mrb[220].mxu0  ;;  %5079 = vperm.xlu0 %7001, %v5051_v10  }
 0x2d0   : > { %v4162_v55 = vadd.f32 %v4123_v3, %v9160_v0  ;;  %v6753_v13 = vpop.f32.mrb[221].mxu0  ;;  %v4285_v58 = vpop.f32.mrb[220].mxu1 }
 0x2d1   : > { %v4126_v1 = vpop.f32.mrb[222].mxu0  ;;  %v6789_v21 = vpop.f32.mrb[221].mxu1 }
 0x2d2   : > { %v4163_v60 = vadd.f32 %v4126_v1, %v9162_v31  ;;  %v9206_v7 = vadd.f32 %v4285_v58, %v4162_v55  ;;  %v6754_v22 = vpop.f32.mrb[223].mxu0  ;;  %v4288_v0 = vpop.f32.mrb[222].mxu1 }
 0x2d3   : > { %v6790_v15 = vpop.f32.mrb[223].mxu1  ;;  %5089 = vperm.xlu0 %7001, %v5053_v36  }
 0x2d4   : > { %v9208_v51 = vadd.f32 %v4288_v0, %v4163_v60 }
 0x2d7   : > { %v4131_v20 = vpop.f32.mrb[224].mxu0  ;;  %5099 = vperm.xlu0 %7001, %v5055_v28  }
 0x2d8   : > { %v4164_v31 = vadd.f32 %v4131_v20, %v9166_v16  ;;  %v6757_v6 = vpop.f32.mrb[225].mxu0  ;;  %v4293_v52 = vpop.f32.mrb[224].mxu1 }
 0x2d9   : > { %v4134_v5 = vpop.f32.mrb[226].mxu0  ;;  %v6793_v18 = vpop.f32.mrb[225].mxu1 }
 0x2da   : > { %v4165_v23 = vadd.f32 %v4134_v5, %v9168_v46  ;;  %v4326_v62 = vadd.f32 %v4293_v52, %v4164_v31  ;;  %v6758_v41 = vpop.f32.mrb[227].mxu0  ;;  %v4296_v25 = vpop.f32.mrb[226].mxu1 }
 0x2db   : > { %v6794_v16 = vpop.f32.mrb[227].mxu1 }
 0x2dc   : > { %v4327_v32 = vadd.f32 %v4296_v25, %v4165_v23 }
 0x2df   : > { %v4139_v56 = vpop.f32.mrb[228].mxu0 }
 0x2e0   : > { %v4166_v59 = vadd.f32 %v4139_v56, %v9172_v54  ;;  %v6761_v30 = vpop.f32.mrb[229].mxu0  ;;  %v4301_v24 = vpop.f32.mrb[228].mxu1 }
 0x2e1   : > { %v4142_v27 = vpop.f32.mrb[230].mxu0  ;;  %v6797_v39 = vpop.f32.mrb[229].mxu1 }
 0x2e2   : > { %v4167_v12 = vadd.f32 %v4142_v27, %v9174_v19  ;;  %v4328_v42 = vadd.f32 %v4301_v24, %v4166_v59  ;;  %v6762_v49 = vpop.f32.mrb[231].mxu0  ;;  %v4304_v48 = vpop.f32.mrb[230].mxu1 }
 0x2e3   : > { %v6798_v46 = vpop.f32.mrb[231].mxu1 }
 0x2e4   : > { %v4329_v8 = vadd.f32 %v4304_v48, %v4167_v12 }
 0x2e7   : > { %v4147_v47 = vpop.f32.mrb[232].mxu0 }
 0x2e8   : > { %v4168_v17 = vadd.f32 %v4147_v47, %v9178_v29  ;;  %v6765_v33 = vpop.f32.mrb[233].mxu0  ;;  %v4309_v14 = vpop.f32.mrb[232].mxu1 }
 0x2e9   : > { %v4150_v43 = vpop.f32.mrb[234].mxu0  ;;  %v6801_v38 = vpop.f32.mrb[233].mxu1 }
 0x2ea   : > { %v4169_v54 = vadd.f32 %v4150_v43, %v9180_v61  ;;  %v4330_v53 = vadd.f32 %v4309_v14, %v4168_v17  ;;  %v6766_v9 = vpop.f32.mrb[235].mxu0  ;;  %v4312_v44 = vpop.f32.mrb[234].mxu1 }
 0x2eb   : > { %v6802_v63 = vpop.f32.mrb[235].mxu1 }
 0x2ec   : > { %v4331_v4 = vadd.f32 %v4312_v44, %v4169_v54 }
 0x2ef   : > { %v4155_v19 = vpop.f32.mrb[236].mxu0 }
 0x2f0   : > { %v4170_v34 = vadd.f32 %v4155_v19, %v9182_v37  ;;  %v6769_v35 = vpop.f32.mrb[237].mxu0  ;;  %v4317_v26 = vpop.f32.mrb[236].mxu1 }
 0x2f1   : > { %v4158_v11 = vpop.f32.mrb[238].mxu0  ;;  %v6805_v3 = vpop.f32.mrb[237].mxu1 }
 0x2f2   : > { %v4171_v29 = vadd.f32 %v4158_v11, %v9190_v57  ;;  %v4332_v55 = vadd.f32 %v4317_v26, %v4170_v34  ;;  %v6770_v13 = vpop.f32.mrb[239].mxu0  ;;  %v4320_v58 = vpop.f32.mrb[238].mxu1 }
 0x2f3   : > { %v6806_v1 = vpop.f32.mrb[239].mxu1 }
 0x2f4   : > { %v4333_v21 = vadd.f32 %v4320_v58, %v4171_v29 }
 0x2f7   : > { %v4447_v61 = vpop.f32.mrb[240].mxu0 }
 0x2f8   : > { %v4486_v10 = vadd.f32 %v4447_v61, %v9206_v7  ;;  %v6825_v45 = vpop.f32.mrb[241].mxu0  ;;  %v4609_v60 = vpop.f32.mrb[240].mxu1 }
 0x2f9   : > { %v4450_v22 = vpop.f32.mrb[242].mxu0  ;;  %v6861_v0 = vpop.f32.mrb[241].mxu1 }
 0x2fa   : > { %v4487_v37 = vadd.f32 %v4450_v22, %v9208_v51  ;;  %v4648_v15 = vadd.f32 %v4609_v60, %v4486_v10  ;;  %v6826_v36 = vpop.f32.mrb[243].mxu0  ;;  %v4612_v40 = vpop.f32.mrb[242].mxu1 }
 0x2fb   : > { %v6862_v20 = vpop.f32.mrb[243].mxu1 }
 0x2fc   : > { %v4649_v31 = vadd.f32 %v4612_v40, %v4487_v37 }
 0x2ff   : > { %v4455_v57 = vpop.f32.mrb[244].mxu0 }
 0x300   : > { %v4488_v6 = vadd.f32 %v4455_v57, %v4326_v62  ;;  %v6829_v52 = vpop.f32.mrb[245].mxu0  ;;  %v4617_v5 = vpop.f32.mrb[244].mxu1 }
 0x301   : > { %v4458_v18 = vpop.f32.mrb[246].mxu0  ;;  %v6865_v28 = vpop.f32.mrb[245].mxu1 }
 0x302   : > { %v4489_v50 = vadd.f32 %v4458_v18, %v4327_v32  ;;  %v4650_v23 = vadd.f32 %v4617_v5, %v4488_v6  ;;  %v6830_v7 = vpop.f32.mrb[247].mxu0  ;;  %v4620_v41 = vpop.f32.mrb[246].mxu1 }
 0x303   : > { %v6866_v25 = vpop.f32.mrb[247].mxu1 }
 0x304   : > { %v4651_v16 = vadd.f32 %v4620_v41, %v4489_v50 }
 0x307   : > { %v4463_v56 = vpop.f32.mrb[248].mxu0 }
 0x308   : > { %v4490_v59 = vadd.f32 %v4463_v56, %v4328_v42  ;;  %v6833_v51 = vpop.f32.mrb[249].mxu0  ;;  %v4625_v30 = vpop.f32.mrb[248].mxu1 }
 0x309   : > { %v4466_v24 = vpop.f32.mrb[250].mxu0  ;;  %v6869_v27 = vpop.f32.mrb[249].mxu1 }
 0x30a   : > { %v4491_v39 = vadd.f32 %v4466_v24, %v4329_v8  ;;  %v4652_v12 = vadd.f32 %v4625_v30, %v4490_v59  ;;  %v6834_v49 = vpop.f32.mrb[251].mxu0  ;;  %v4628_v62 = vpop.f32.mrb[250].mxu1 }
 0x30b   : > { %v6870_v48 = vpop.f32.mrb[251].mxu1 }
 0x30c   : > { %v4653_v46 = vadd.f32 %v4628_v62, %v4491_v39 }
 0x30f   : > { %v4471_v47 = vpop.f32.mrb[252].mxu0 }
 0x310   : > { %v4492_v17 = vadd.f32 %v4471_v47, %v4330_v53  ;;  %v6837_v32 = vpop.f32.mrb[253].mxu0  ;;  %v4633_v33 = vpop.f32.mrb[252].mxu1 }
 0x311   : > { %v4474_v14 = vpop.f32.mrb[254].mxu0  ;;  %v6873_v43 = vpop.f32.mrb[253].mxu1 }
 0x312   : > { %v4493_v38 = vadd.f32 %v4474_v14, %v4331_v4  ;;  %v4654_v54 = vadd.f32 %v4633_v33, %v4492_v17  ;;  %v6838_v9 = vpop.f32.mrb[255].mxu0  ;;  %v4636_v42 = vpop.f32.mrb[254].mxu1  ;;  %v5524_v4 = vld [vmem:[%s9274_s5] ss:$0 sm:$0xff] }
 0x313   : > { %v6874_v44 = vpop.f32.mrb[255].mxu1 }
 0x314   : > { %v4655_v63 = vadd.f32 %v4636_v42, %v4493_v38 }
 0x317   : > { %v4479_v19 = vpop.f32.mrb[0].mxu0 }
 0x318   : > { %v4494_v34 = vadd.f32 %v4479_v19, %v4332_v55  ;;  %v6841_v8 = vpop.f32.mrb[1].mxu0  ;;  %v4641_v35 = vpop.f32.mrb[0].mxu1 }
 0x319   : > { %v4482_v26 = vpop.f32.mrb[2].mxu0  ;;  %v6877_v11 = vpop.f32.mrb[1].mxu1 }
 0x31a   : > { %v4495_v3 = vadd.f32 %v4482_v26, %v4333_v21  ;;  %v4656_v29 = vadd.f32 %v4641_v35, %v4494_v34  ;;  %v6842_v13 = vpop.f32.mrb[3].mxu0  ;;  %v4644_v53 = vpop.f32.mrb[2].mxu1 }
 0x31b   : > { %v6878_v58 = vpop.f32.mrb[3].mxu1 }
 0x31c   : > { %v4657_v1 = vadd.f32 %v4644_v53, %v4495_v3  ;;  %v5525_v3 = vld [vmem:[%s9276_s7] ss:$0 sm:$0xff] }
 0x31f   : > { %v4771_v61 = vpop.f32.mrb[4].mxu0 }
 0x320   : > { %v4810_v10 = vadd.f32 %v4771_v61, %v4648_v15  ;;  %v6897_v45 = vpop.f32.mrb[5].mxu0 }
 0x321   : > { %v4774_v60 = vpop.f32.mrb[6].mxu0 }
 0x322   : > { %v4827_v22 = vadd.f32 %v5524_v4, %v4810_v10  ;;  %v4811_v55 = vadd.f32 %v4774_v60, %v4649_v31  ;;  %v6898_v0 = vpop.f32.mrb[7].mxu0 }
 0x324   : > { %v4828_v37 = vadd.f32 %v5524_v4, %v4811_v55  ;;  %v4837_v36 = vmax.f32 %v4827_v22, 0.0 }
 0x326   : > { %v4838_v40 = vmax.f32 %v4828_v37, 0.0 }
 0x327   : > { %v4779_v21 = vpop.f32.mrb[8].mxu0 }
 0x328   : > { %v4847_v20 = vpack.c.bf16 %v4838_v40, %v4837_v36  ;;  %v4812_v57 = vadd.f32 %v4779_v21, %v4650_v23  ;;  %v6901_v6 = vpop.f32.mrb[9].mxu0 }
 0x329   : > { %v4782_v52 = vpop.f32.mrb[10].mxu0  ;;  %v5070_v60 = vpop.permute.xlu1 %5069 }
 0x32a   : > { %v4829_v5 = vadd.f32 %v5524_v4, %v4812_v57  ;;  %v4813_v18 = vadd.f32 %v4782_v52, %v4651_v16  ;;  %v6902_v28 = vpop.f32.mrb[11].mxu0  ;;  %6932 = vmatmul.mubr.bf16.vlgmr.msra.gmra.mrb[4].mxu1 %v4847_v20 }
 0x32b   : > { %6935 = vmatprep.mubr.msk.bf16.mxu1 %vm7269_vm0, %v7268_v2 }
 0x32c   : > { %v4830_v15 = vadd.f32 %v5524_v4, %v4813_v18  ;;  %v4839_v50 = vmax.f32 %v4829_v5, 0.0 }
 0x32d   : > { %v5075_v57 = vpop.permute.xlu1 %5074 }
 0x32e   : > { %v4840_v7 = vmax.f32 %v4830_v15, 0.0 }
 0x32f   : > { %v4787_v31 = vpop.f32.mrb[12].mxu0 }
 0x330   : > { %v4848_v41 = vpack.c.bf16 %v4840_v7, %v4839_v50  ;;  %v4814_v25 = vadd.f32 %v4787_v31, %v4652_v12  ;;  %v6905_v56 = vpop.f32.mrb[13].mxu0 }
 0x331   : > { %v4790_v59 = vpop.f32.mrb[14].mxu0 }
 0x332   : > { %v4831_v51 = vadd.f32 %v5524_v4, %v4814_v25  ;;  %v4815_v30 = vadd.f32 %v4790_v59, %v4653_v46  ;;  %v6906_v23 = vpop.f32.mrb[15].mxu0  ;;  %6936 = vmatmul.mubr.bf16.gmra.mrb[8].mxu1 %v4848_v41  ;;  %v5085_v59 = vpop.permute.xlu1 %5084 }
 0x333   : > { %6939 = vmatprep.mubr.msk.bf16.mxu1 %vm7269_vm0, %v7268_v2 }
 0x334   : > { %v4832_v16 = vadd.f32 %v5524_v4, %v4815_v30  ;;  %v4841_v24 = vmax.f32 %v4831_v51, 0.0 }
 0x336   : > { %v4842_v27 = vmax.f32 %v4832_v16, 0.0 }
 0x337   : > { %v4795_v39 = vpop.f32.mrb[16].mxu0 }
 0x338   : > { %v4849_v49 = vpack.c.bf16 %v4842_v27, %v4841_v24  ;;  %v4816_v62 = vadd.f32 %v4795_v39, %v4654_v54  ;;  %v6909_v48 = vpop.f32.mrb[17].mxu0 }
 0x339   : > { %v4798_v47 = vpop.f32.mrb[18].mxu0 }
 0x33a   : > { %v4833_v17 = vadd.f32 %v5524_v4, %v4816_v62  ;;  %v4817_v32 = vadd.f32 %v4798_v47, %v4655_v63  ;;  %v6910_v12 = vpop.f32.mrb[19].mxu0  ;;  %6940 = vmatmul.mubr.bf16.gmra.mrb[12].mxu1 %v4849_v49 }
 0x33b   : > { %6943 = vmatprep.mubr.msk.bf16.mxu1 %vm7269_vm0, %v7268_v2 }
 0x33c   : > { %v4834_v46 = vadd.f32 %v5524_v4, %v4817_v32  ;;  %v4843_v33 = vmax.f32 %v4833_v17, 0.0  ;;  %v5095_v32 = vpop.permute.xlu1 %5094 }
 0x33e   : > { %v4844_v14 = vmax.f32 %v4834_v46, 0.0 }
 0x33f   : > { %v4803_v43 = vpop.f32.mrb[20].mxu0 }
 0x340   : > { %v4850_v38 = vpack.c.bf16 %v4844_v14, %v4843_v33  ;;  %v4818_v9 = vadd.f32 %v4803_v43, %v4656_v29  ;;  %v6913_v42 = vpop.f32.mrb[21].mxu0 }
 0x341   : > { %v4806_v44 = vpop.f32.mrb[22].mxu0 }
 0x342   : > { %v4835_v19 = vadd.f32 %v5524_v4, %v4818_v9  ;;  %v4819_v34 = vadd.f32 %v4806_v44, %v4657_v1  ;;  %v6914_v54 = vpop.f32.mrb[23].mxu0  ;;  %6944 = vmatmul.mubr.bf16.gmra.mrb[16].mxu1 %v4850_v38  ;;  %v5060_v11 = vpop.permute.xlu0 %5059 }
 0x343   : > { %6947 = vmatprep.mubr.msk.bf16.mxu1 %vm7269_vm0, %v7268_v2 }
 0x344   : > { %v4836_v63 = vadd.f32 %v5524_v4, %v4819_v34  ;;  %v4845_v8 = vmax.f32 %v4835_v19, 0.0 }
 0x346   : > { %v4846_v35 = vmax.f32 %v4836_v63, 0.0 }
 0x348   : > { %v4851_v26 = vpack.c.bf16 %v4846_v35, %v4845_v8  ;;  %v5105_v8 = vpop.permute.xlu1 %5104 }
 0x34a   : > { %6948 = vmatmul.mubr.bf16.gmra.mrb[20].mxu1 %v4851_v26  ;;  %v5065_v1 = vpop.permute.xlu0 %5064 }
 0x34e   : > { %v5080_v7 = vpop.permute.xlu0 %5079 }
 0x352   : > { %v5090_v49 = vpop.permute.xlu0 %5089 }
 0x356   : > { %v5100_v42 = vpop.permute.xlu0 %5099 }
 0x3fd   : > { %v4957_v29 = vpop.f32.mrb[4].mxu1 }
 0x3fe   : > { %v4958_v13 = vadd.f32 %v5525_v3, %v4957_v29  ;;  %v6933_v53 = vpop.f32.mrb[5].mxu1 }
 0x3ff   : > { %v4960_v58 = vpop.f32.mrb[6].mxu1 }
 0x400   : > { %v4961_v61 = vadd.f32 %v5525_v3, %v4960_v58  ;;  %v6934_v10 = vpop.f32.mrb[7].mxu1  ;;  %v5107_v45 = vmul.f32 %v5060_v11, %v4958_v13 }
 0x402   : > { %v5559_v2 = vpack.c.bf16 %v4961_v61, %v4958_v13  ;;  %v5108_v4 = vmul.f32 %v5065_v1, %v4961_v61 }
 0x404   : > { %5560 = vst [vmem:[%s7382_s12] sm:$0xff] %v5559_v2   ;;  %v5117_v22 = vadd.f32 %v5108_v4, %v5107_v45  ;;  %v5046_v45 = vld [vmem:[%s7366_s15] sm:$0x1] }
 0x405   : > { %v4965_v55 = vpop.f32.mrb[8].mxu1 }
 0x406   : > { %v4966_v0 = vadd.f32 %v5525_v3, %v4965_v55  ;;  %v6937_v37 = vpop.f32.mrb[9].mxu1 }
 0x407   : > { %v4968_v36 = vpop.f32.mrb[10].mxu1 }
 0x408   : > { %v5109_v40 = vmul.f32 %v5070_v60, %v4966_v0  ;;  %v4969_v21 = vadd.f32 %v5525_v3, %v4968_v36  ;;  %v6938_v20 = vpop.f32.mrb[11].mxu1 }
 0x40a   : > { %v5118_v6 = vadd.f32 %v5117_v22, %v5109_v40  ;;  %v5564_v52 = vpack.c.bf16 %v4969_v21, %v4966_v0  ;;  %v5110_v5 = vmul.f32 %v5075_v57, %v4969_v21 }
 0x40c   : > { %5576 = vst [vmem:[%s7382_s12 + $0x8] sm:$0xff] %v5564_v52   ;;  %v5119_v18 = vadd.f32 %v5118_v6, %v5110_v5 }
 0x40d   : > { %v4973_v28 = vpop.f32.mrb[12].mxu1 }
 0x40e   : > { %v4974_v15 = vadd.f32 %v5525_v3, %v4973_v28  ;;  %v6941_v50 = vpop.f32.mrb[13].mxu1 }
 0x40f   : > { %v4976_v31 = vpop.f32.mrb[14].mxu1 }
 0x410   : > { %v5111_v41 = vmul.f32 %v5080_v7, %v4974_v15  ;;  %v4977_v25 = vadd.f32 %v5525_v3, %v4976_v31  ;;  %v6942_v56 = vpop.f32.mrb[15].mxu1 }
 0x412   : > { %v5120_v51 = vadd.f32 %v5119_v18, %v5111_v41  ;;  %v5569_v30 = vpack.c.bf16 %v4977_v25, %v4974_v15  ;;  %v5112_v23 = vmul.f32 %v5085_v59, %v4977_v25 }
 0x414   : > { %5577 = vst [vmem:[%s7382_s12 + $0x10] sm:$0xff] %v5569_v30   ;;  %v5121_v16 = vadd.f32 %v5120_v51, %v5112_v23 }
 0x415   : > { %v4981_v24 = vpop.f32.mrb[16].mxu1 }
 0x416   : > { %v4982_v27 = vadd.f32 %v5525_v3, %v4981_v24  ;;  %v6945_v39 = vpop.f32.mrb[17].mxu1 }
 0x417   : > { %v4984_v62 = vpop.f32.mrb[18].mxu1 }
 0x418   : > { %v5113_v48 = vmul.f32 %v5090_v49, %v4982_v27  ;;  %v4985_v47 = vadd.f32 %v5525_v3, %v4984_v62  ;;  %v6946_v17 = vpop.f32.mrb[19].mxu1 }
 0x41a   : > { %v5122_v12 = vadd.f32 %v5121_v16, %v5113_v48  ;;  %v5574_v46 = vpack.c.bf16 %v4985_v47, %v4982_v27  ;;  %v5114_v33 = vmul.f32 %v5095_v32, %v4985_v47 }
 0x41c   : > { %5578 = vst [vmem:[%s7382_s12 + $0x18] sm:$0xff] %v5574_v46   ;;  %v5123_v14 = vadd.f32 %v5122_v12, %v5114_v33 }
 0x41d   : > { %v4989_v43 = vpop.f32.mrb[20].mxu1 }
 0x41e   : > { %v4990_v38 = vadd.f32 %v5525_v3, %v4989_v43  ;;  %v6949_v9 = vpop.f32.mrb[21].mxu1 }
 0x41f   : > { %v4992_v44 = vpop.f32.mrb[22].mxu1 }
 0x420   : > { %v5554_v19 = vpack.c.bf16 %v4990_v38, %v4990_v38  ;;  %v5115_v34 = vmul.f32 %v5100_v42, %v4990_v38  ;;  %v4993_v54 = vadd.f32 %v5525_v3, %v4992_v44  ;;  %v6950_v63 = vpop.f32.mrb[23].mxu1 }
 0x422   : > { %5044 = vst [vmem:[%s7382_s12 + $0x20] sm:$0xf] %v5554_v19  ;;  %v5124_v35 = vadd.f32 %v5123_v14, %v5115_v34  ;;  %v5555_v26 = vpack.c.bf16 %v4993_v54, %v4993_v54  ;;  %v5116_v11 = vmul.f32 %v5105_v8, %v4993_v54 }
 0x424   : > { %5045 = vst [vmem:[%s7382_s12 + $0x24] sm:$0x7] %v5555_v26  ;;  %v5126_v29 = vsel %vm5125_vm1, %v5116_v11, 0.0 }
 0x425   : > { %v5127_v13 = vadd.f32 %v5126_v29, %v5124_v35 }
 0x427   : > { %v5128_v53 = vrot.slane %v5127_v13, 4 }
 0x429   : > { %v5129_v58 = vadd.f32 %v5128_v53, %v5127_v13 }
 0x42b   : > { %v5130_v1 = vrot.slane %v5129_v58, 2 }
 0x42d   : > { %v5131_v61 = vadd.f32 %v5130_v1, %v5129_v58 }
 0x42f   : > { %v5132_v10 = vrot.slane %v5131_v61, 1 }
 0x431   : > { %v5133_v2 = vadd.f32 %v5132_v10, %v5131_v61 }
 0x433   : > { %v5134_v3 = vadd.f32 %v5133_v2, %v5046_v45 }
 0x435   : > { %5135 = vst [vmem:[%s7366_s15] sm:$0x1] %v5134_v3 }
 0x436 PF: > { %s9291_s23 = sld [smem:[#allocation4_spill]]  ;;  %s9292_s30 = sld [smem:[#allocation2_spill]] }
 0x437   : > { %s9293_s10 = sld [smem:[#allocation3_spill]]  ;;  %s9294_s11 = sld [smem:[#allocation5_spill]] }
 0x438   : > { %s9295_s12 = sld [smem:[#allocation6_spill]] }
 0x43c   : > { %s20_s13 = sadd.s32 1, %s9291_s23  }
 0x43d   : > { %p17_p11 = scmp.ge.s32.totalorder %s20_s13, 18  }
 0x43f   :  { %19 = sbr.rel (!%p17_p11) target bundleno = 4 (0x4), region = 104 }

</bundles_post_ra>
